<compile_context>
chip_gen: v7x
topology: tpu7x:2x2x1
jax: 0.10.0
libtpu: 0.0.40
codegen_flags: <defaults>
</compile_context>

<pallas_src>
import functools
import math

import jax
import jax.numpy as jnp
from jax.experimental import pallas as pl
from jax.experimental.pallas import tpu as pltpu

KW = 4            # Conv3d kernel size
PADW = 2          # Conv3d padding (ceil((4-1)/2))
EPS = 1e-5        # BatchNorm eps (PyTorch default)
NEG_SLOPE = 0.2   # LeakyReLU slope
LANE = 128        # channel padding granularity (TPU lane width)


def _round_up(x, m):
    return ((x + m - 1) // m) * m


# ----------------------------- Pallas kernels ------------------------------


def _conv_accumulate(planes, w_ref, *, stride, ww, rows):
    """Accumulate the 64 Conv3d taps as (rows, Cin) x (Cin, TN) MXU GEMMs.

    planes : 4 refs (one per depth tap kd)
             stride==1 -> (Lp, Cin)      flattened padded H*W plane (+ slack row)
             stride==2 -> (2, 2, Lq, Cin) parity-split flattened plane
    Every tap is a single contiguous sublane slice of length rows = Ho*ww, so
    there are no in-kernel reshapes; columns >= Wo of each output row are
    "wide" garbage that the wrapper crops.
    """
    tn = w_ref.shape[-1]
    acc = jnp.zeros((rows, tn), jnp.float32)
    for kd in range(KW):
        xk = planes[kd]
        for kh in range(KW):
            for kw in range(KW):
                t = (kd * KW + kh) * KW + kw
                if stride == 2:
                    off = (kh // 2) * ww + (kw // 2)
                    lhs = xk[kh % 2, kw % 2, pl.ds(off, rows), :]
                else:
                    off = kh * ww + kw
                    lhs = xk[pl.ds(off, rows), :]
                acc = acc + jnp.dot(lhs, w_ref[t],
                                    preferred_element_type=jnp.float32)
    return acc


def _conv_kernel(x0, x1, x2, x3, w_ref, b_ref, o_ref, *, stride, ww,
                 apply_lrelu):
    """Conv tile (no BN): bias + optional fused LeakyReLU epilogue."""
    rows = o_ref.shape[0]
    y = _conv_accumulate((x0, x1, x2, x3), w_ref, stride=stride, ww=ww,
                         rows=rows) + b_ref[...]
    if apply_lrelu:
        y = jnp.where(y > 0, y, NEG_SLOPE * y)
    o_ref[...] = y


def _conv_stats_kernel(x0, x1, x2, x3, w_ref, b_ref, m_ref, o_ref,
                       sum_ref, sq_ref, *, stride, ww):
    """Conv tile + fused per-channel sum / sum-of-squares for BatchNorm.

    sum/sq accumulators (1, TN) are revisited across the (batch, depth) grid
    axes (P3 pattern); the mask zeroes the wide garbage columns so the sums are
    exactly over valid output voxels.
    """
    rows = o_ref.shape[0]
    y = _conv_accumulate((x0, x1, x2, x3), w_ref, stride=stride, ww=ww,
                         rows=rows) + b_ref[...]
    o_ref[...] = y

    @pl.when((pl.program_id(1) == 0) & (pl.program_id(2) == 0))
    def _():
        sum_ref[...] = jnp.zeros_like(sum_ref)
        sq_ref[...] = jnp.zeros_like(sq_ref)

    ym = y * m_ref[...]                     # mask out wide garbage columns
    sum_ref[...] += jnp.sum(ym, axis=0, keepdims=True)
    sq_ref[...] += jnp.sum(ym * y, axis=0, keepdims=True)


def _bn_apply_kernel(x_ref, sc_ref, sh_ref, o_ref):
    """y = x*scale + shift, then LeakyReLU(0.2) -- one lane-dense pass."""
    y = x_ref[...] * sc_ref[...] + sh_ref[...]
    o_ref[...] = jnp.where(y > 0, y, NEG_SLOPE * y)


# ----------------------------- index maps -----------------------------------


def _xmap_s2(kd, n, b, d):
    return (b, 2 * d + kd, 0, 0, 0, 0)


def _xmap_s1(kd, n, b, d):
    return (b, d + kd, 0, 0)


def _wmap(n, b, d):
    return (0, 0, n)


def _bmap(n, b, d):       # bias and per-channel stats tiles
    return (0, n)


def _omap(n, b, d):
    return (b, d, 0, n)


def _mmap(n, b, d):
    return (0, 0)


# ----------------------------- conv wrapper ---------------------------------


def conv3d_pallas(h, p):
    """Conv3d(kernel=4, padding=2, stride) without im2col.

    h : (B, D, H, W, Cin) float32 channels-last (Cin lane-padded for every
        layer except the first).
    Returns (y_wide, (Do, Ho, Wo, Ww), stats):
      y_wide : (B, Do, Ho, Ww, Cout_pad) f32; columns >= Wo are garbage.
      stats  : (sum, sumsq) per channel over valid voxels if the layer has BN,
               else None.
    """
    B, D, H, W, C = h.shape
    s = p["stride"]
    assert p["w"].shape[1] == C
    coutp = p["w"].shape[-1]
    TN = LANE
    Nt = coutp // TN
    Do = (D + 2 * PADW - KW) // s + 1
    Ho = (H + 2 * PADW - KW) // s + 1
    Wo = (W + 2 * PADW - KW) // s + 1

    # Zero pad spatially; cast to bf16 for the MXU (also halves HBM reads).
    xp = jnp.pad(h, ((0, 0), (PADW, PADW), (PADW, PADW), (PADW, PADW), (0, 0)))
    xp = xp.astype(jnp.bfloat16)
    Dp, Hp, Wp = D + 2 * PADW, H + 2 * PADW, W + 2 * PADW

    if s == 2:
        # Parity-split H/W (pure permutation) so every tap is unit-stride, then
        # flatten (H, W) per parity plane (+1 slack row) so the whole output
        # plane is a single contiguous GEMM LHS per tap.
        Hp2, Wp2 = Hp + Hp % 2, Wp + Wp % 2
        xp = jnp.pad(xp, ((0, 0), (0, 0), (0, Hp2 - Hp), (0, Wp2 - Wp), (0, 0)))
        Hq, Wq = Hp2 // 2, Wp2 // 2
        xq = xp.reshape(B, Dp, Hq, 2, Wq, 2, C).transpose(0, 1, 3, 5, 2, 4, 6)
        xq = jnp.pad(xq, ((0, 0), (0, 0), (0, 0), (0, 0), (0, 1), (0, 0), (0, 0)))
        L = (Hq + 1) * Wq
        xs = xq.reshape(B, Dp, 2, 2, L, C)
        Ww = Wq
        x_block = (None, None, 2, 2, L, C)
        xmap = _xmap_s2
    else:
        xp = jnp.pad(xp, ((0, 0), (0, 0), (0, 1), (0, 0), (0, 0)))
        L = (Hp + 1) * Wp
        xs = xp.reshape(B, Dp, L, C)
        Ww = Wp
        x_block = (None, None, L, C)
        xmap = _xmap_s1

    rows = Ho * Ww

    # TODO(synk): for very large H*W planes the per-depth plane blocks should
    # additionally be H-tiled (with a +3 halo) instead of holding full planes
    # in VMEM.
    in_specs = [pl.BlockSpec(x_block, functools.partial(xmap, kd))
                for kd in range(KW)]
    in_specs += [
        pl.BlockSpec((KW ** 3, C, TN), _wmap),   # weight N-tile stays resident
        pl.BlockSpec((1, TN), _bmap),
    ]
    operands = [xs, xs, xs, xs, p["w"], p["b"]]

    if p["has_bn"]:
        mask = (jnp.arange(rows, dtype=jnp.int32) % Ww) < Wo
        mask = mask.astype(jnp.float32).reshape(rows, 1)
        in_specs.append(pl.BlockSpec((rows, 1), _mmap))
        operands.append(mask)
        kern = functools.partial(_conv_stats_kernel, stride=s, ww=Ww)
        out_shape = (jax.ShapeDtypeStruct((B, Do, rows, coutp), jnp.float32),
                     jax.ShapeDtypeStruct((1, coutp), jnp.float32),
                     jax.ShapeDtypeStruct((1, coutp), jnp.float32))
        out_specs = (pl.BlockSpec((None, None, rows, TN), _omap),
                     pl.BlockSpec((1, TN), _bmap),
                     pl.BlockSpec((1, TN), _bmap))
        dims = ("parallel", "arbitrary", "arbitrary")   # (b, d) accumulate stats
    else:
        kern = functools.partial(_conv_kernel, stride=s, ww=Ww,
                                 apply_lrelu=p["has_lrelu"])
        out_shape = jax.ShapeDtypeStruct((B, Do, rows, coutp), jnp.float32)
        out_specs = pl.BlockSpec((None, None, rows, TN), _omap)
        dims = ("parallel", "parallel", "parallel")

    out = pl.pallas_call(
        kern,
        out_shape=out_shape,
        grid=(Nt, B, Do),                    # N outermost -> weight resident
        in_specs=in_specs,
        out_specs=out_specs,
        compiler_params=pltpu.CompilerParams(
            dimension_semantics=dims,
            vmem_limit_bytes=64 * 1024 * 1024),
    )(*operands)

    if p["has_bn"]:
        y, ssum, ssq = out
        stats = (ssum, ssq)
    else:
        y, stats = out, None
    y = y.reshape(B, Do, Ho, Ww, coutp)
    return y, (Do, Ho, Wo, Ww), stats


# ------------------------------ BN wrapper -----------------------------------


def batchnorm_lrelu_apply(y_wide, stats, gamma, beta, n_valid):
    """Training-mode (Sync)BatchNorm apply + LeakyReLU(0.2), one pass.

    Uses the per-channel sums fused into the conv kernel.  Single-device batch
    statistics.
    """
    # TODO(synk): eval-mode BN (running stats) / cross-replica stat sync would
    # only change how `scale`/`shift` below are produced.
    B, Do, Ho, Ww, Cp = y_wide.shape
    ssum, ssq = stats
    mean = ssum / n_valid
    var = jnp.maximum(ssq / n_valid - mean * mean, 0.0)   # biased variance
    scale = gamma * jax.lax.rsqrt(var + EPS)
    shift = beta - mean * scale

    G = B * Do
    rows = Ho * Ww
    x3 = y_wide.reshape(G, rows, Cp)
    out = pl.pallas_call(
        _bn_apply_kernel,
        out_shape=jax.ShapeDtypeStruct((G, rows, Cp), jnp.float32),
        grid=(G,),
        in_specs=[pl.BlockSpec((None, rows, Cp), lambda i: (i, 0, 0)),
                  pl.BlockSpec((1, Cp), lambda i: (0, 0)),
                  pl.BlockSpec((1, Cp), lambda i: (0, 0))],
        out_specs=pl.BlockSpec((None, rows, Cp), lambda i: (i, 0, 0)),
        compiler_params=pltpu.CompilerParams(
            dimension_semantics=("parallel",),
            vmem_limit_bytes=64 * 1024 * 1024),
    )(x3, scale, shift)
    return out.reshape(B, Do, Ho, Ww, Cp)


# --------------------------- parameter construction --------------------------


def init_params(key, input_nc, ndf=64, n_layers=3):
    """Synthetic params, pre-laid-out in GEMM layout (hoisted out of forward).

    Weights: (KW^3, Cin_pad, Cout_pad) bf16, zero in padded rows/cols.
    """
    cfgs = [(input_nc, ndf, 2, False, True)]        # (cin, cout, stride, bn, lrelu)
    nf = ndf
    for _ in range(1, n_layers):
        nf_prev, nf = nf, min(nf * 2, 512)
        cfgs.append((nf_prev, nf, 2, True, True))
    nf_prev, nf = nf, min(nf * 2, 512)
    cfgs.append((nf_prev, nf, 1, True, True))
    cfgs.append((nf, 1, 1, False, False))

    params = []
    prev_cout_pad = None
    for li, (cin, cout, stride, has_bn, has_lrelu) in enumerate(cfgs):
        key, k_w, k_b = jax.random.split(key, 3)
        cin_pad = cin if li == 0 else prev_cout_pad
        cout_pad = _round_up(cout, LANE)
        fan_in = cin * KW ** 3
        bound = 1.0 / math.sqrt(fan_in)
        w_true = jax.random.uniform(k_w, (KW ** 3, cin, cout), jnp.float32,
                                    -bound, bound)
        b_true = jax.random.uniform(k_b, (cout,), jnp.float32, -bound, bound)
        w = jnp.zeros((KW ** 3, cin_pad, cout_pad), jnp.float32)
        w = w.at[:, :cin, :cout].set(w_true).astype(jnp.bfloat16)
        b = jnp.zeros((1, cout_pad), jnp.float32).at[0, :cout].set(b_true)
        p = {"w": w, "b": b, "stride": stride, "has_bn": has_bn,
             "has_lrelu": has_lrelu, "cout": cout}
        if has_bn:
            p["gamma"] = jnp.zeros((1, cout_pad), jnp.float32).at[0, :cout].set(1.0)
            p["beta"] = jnp.zeros((1, cout_pad), jnp.float32)
        params.append(p)
        prev_cout_pad = cout_pad
    return params


# ------------------------------- forward pass --------------------------------


def nlayer_discriminator_3d(params, x, get_interm_feat=True):
    """Returns (final_output, intermediate_features) like the PyTorch module.

    Internally stays channels-last with lane-padded channels; NCDHW with true
    channel counts is only produced for the returned features.
    """
    h = jnp.transpose(x, (0, 2, 3, 4, 1)).astype(jnp.float32)   # NDHWC
    feats = []
    for p in params:
        B = h.shape[0]
        y, (Do, Ho, Wo, Ww), stats = conv3d_pallas(h, p)
        if p["has_bn"]:
            n_valid = B * Do * Ho * Wo
            y = batchnorm_lrelu_apply(y, stats, p["gamma"], p["beta"], n_valid)
        h = y[:, :, :, :Wo, :]               # crop the wide garbage columns
        feats.append(jnp.transpose(h[..., :p["cout"]], (0, 4, 1, 2, 3)))
    out = feats[-1]
    if get_interm_feat:
        return out, feats
    return out, None
    # TODO(synk): use_sigmoid=False path only (module default); sigmoid head omitted.


# ------------------------ pure-JAX reference (test only) ---------------------


def _reference_forward(params, x):
    h = jnp.transpose(x, (0, 2, 3, 4, 1)).astype(jnp.float32)
    feats = []
    for p in params:
        s = p["stride"]
        xp = jnp.pad(h, ((0, 0), (PADW, PADW), (PADW, PADW), (PADW, PADW), (0, 0)))
        xp = xp.astype(jnp.bfloat16).astype(jnp.float32)    # match kernel operand rounding
        w = p["w"].astype(jnp.float32).reshape(
            KW, KW, KW, p["w"].shape[1], p["w"].shape[2])
        y = jax.lax.conv_general_dilated(
            xp, w, window_strides=(s, s, s), padding="VALID",
            dimension_numbers=("NDHWC", "DHWIO", "NDHWC"),
            precision=jax.lax.Precision.HIGHEST)
        y = y + p["b"][0]
        if p["has_lrelu"] and not p["has_bn"]:
            y = jnp.where(y > 0, y, NEG_SLOPE * y)
        if p["has_bn"]:
            mean = jnp.mean(y, axis=(0, 1, 2, 3), keepdims=True)
            var = jnp.mean((y - mean) ** 2, axis=(0, 1, 2, 3), keepdims=True)
            y = (y - mean) * jax.lax.rsqrt(var + EPS)
            y = y * p["gamma"][0] + p["beta"][0]
            y = jnp.where(y > 0, y, NEG_SLOPE * y)
        h = y
        feats.append(jnp.transpose(h[..., :p["cout"]], (0, 4, 1, 2, 3)))
    return feats[-1], feats


# ----------------------------------- main ------------------------------------


if __name__ == "__main__":
    key = jax.random.PRNGKey(0)
    k_x, k_p = jax.random.split(key)

    B, Cin, D, H, W = 2, 3, 8, 8, 8
    ndf, n_layers = 8, 3

    x = jax.random.normal(k_x, (B, Cin, D, H, W), jnp.float32)
    params = init_params(k_p, input_nc=Cin, ndf=ndf, n_layers=n_layers)

    out, feats = nlayer_discriminator_3d(params, x, get_interm_feat=True)
    jax.block_until_ready(out)
    for f in feats:
        jax.block_until_ready(f)

    # shape sanity: 5 layers -> 5 features; final is (B, 1, 4, 4, 4) for 8^3 input
    assert len(feats) == n_layers + 2
    assert out.shape == (B, 1, 4, 4, 4)

    # numeric check against a pure-JAX reference (same bf16-rounded operands)
    ref_out, ref_feats = _reference_forward(params, x)
    for f, fr in zip(feats, ref_feats):
        err = float(jnp.max(jnp.abs(f - fr)))
        assert err < 5e-2, f"mismatch vs reference: {err}"

    print("KERNEL_OK")
</pallas_src>

<mosaic_0001>
module attributes {stable_mosaic.version = 11 : i64} {
  func.func @_conv_kernel(%arg0: i32, %arg1: i32, %arg2: i32, %arg3: memref<1x1x2x2x42x3xbf16, #tpu.memory_space<vmem>>, %arg4: memref<1x1x2x2x42x3xbf16, #tpu.memory_space<vmem>>, %arg5: memref<1x1x2x2x42x3xbf16, #tpu.memory_space<vmem>>, %arg6: memref<1x1x2x2x42x3xbf16, #tpu.memory_space<vmem>>, %arg7: memref<64x3x128xbf16, #tpu.memory_space<vmem>>, %arg8: memref<1x128xf32, #tpu.memory_space<vmem>>, %arg9: memref<1x1x30x128xf32, #tpu.memory_space<vmem>>) attributes {dimension_semantics = [#tpu.dimension_semantics<parallel>, #tpu.dimension_semantics<parallel>, #tpu.dimension_semantics<parallel>], iteration_bounds = array<i64: 1, 2, 5>, scalar_prefetch = 0 : i64, scratch_operands = 0 : i64, tpu.core_type = #tpu.core_type<tc>, window_params = [{transform_indices = @transform_0, window_bounds = array<i64: 1, 1, 2, 2, 42, 3>}, {transform_indices = @transform_1, window_bounds = array<i64: 1, 1, 2, 2, 42, 3>}, {transform_indices = @transform_2, window_bounds = array<i64: 1, 1, 2, 2, 42, 3>}, {transform_indices = @transform_3, window_bounds = array<i64: 1, 1, 2, 2, 42, 3>}, {transform_indices = @transform_4, window_bounds = array<i64: 64, 3, 128>}, {transform_indices = @transform_5, window_bounds = array<i64: 1, 128>}, {transform_indices = @transform_6, window_bounds = array<i64: 1, 1, 30, 128>}]} {
    %cst = arith.constant 0.000000e+00 : f32
    %0 = vector.broadcast %cst : f32 to vector<30x128xf32>
    %c0 = arith.constant 0 : index
    %c0_0 = arith.constant 0 : index
    %c0_1 = arith.constant 0 : index
    %c0_2 = arith.constant 0 : index
    %c0_3 = arith.constant 0 : index
    %c0_4 = arith.constant 0 : index
    %1 = vector.load %arg3[%c0, %c0_0, %c0_1, %c0_2, %c0_3, %c0_4] : memref<1x1x2x2x42x3xbf16, #tpu.memory_space<vmem>>, vector<1x1x1x1x30x3xbf16>
    %2 = vector.shape_cast %1 : vector<1x1x1x1x30x3xbf16> to vector<30x3xbf16>
    %c0_5 = arith.constant 0 : index
    %c0_6 = arith.constant 0 : index
    %c0_7 = arith.constant 0 : index
    %3 = vector.load %arg7[%c0_5, %c0_6, %c0_7] : memref<64x3x128xbf16, #tpu.memory_space<vmem>>, vector<1x3x128xbf16>
    %4 = vector.shape_cast %3 : vector<1x3x128xbf16> to vector<3x128xbf16>
    %cst_8 = arith.constant dense<0.000000e+00> : vector<30x128xf32>
    %5 = tpu.matmul %2, %4, %cst_8 {dimension_numbers = #tpu.dot_dimension_numbers<[1], [0], [0], [1], [0, 0, 1, 1], [], []>} : vector<30x3xbf16>, vector<3x128xbf16>, vector<30x128xf32> -> vector<30x128xf32>
    %6 = arith.addf %0, %5 : vector<30x128xf32>
    %c0_9 = arith.constant 0 : index
    %c0_10 = arith.constant 0 : index
    %c0_11 = arith.constant 0 : index
    %c1 = arith.constant 1 : index
    %c0_12 = arith.constant 0 : index
    %c0_13 = arith.constant 0 : index
    %7 = vector.load %arg3[%c0_9, %c0_10, %c0_11, %c1, %c0_12, %c0_13] : memref<1x1x2x2x42x3xbf16, #tpu.memory_space<vmem>>, vector<1x1x1x1x30x3xbf16>
    %8 = vector.shape_cast %7 : vector<1x1x1x1x30x3xbf16> to vector<30x3xbf16>
    %c1_14 = arith.constant 1 : index
    %c0_15 = arith.constant 0 : index
    %c0_16 = arith.constant 0 : index
    %9 = vector.load %arg7[%c1_14, %c0_15, %c0_16] : memref<64x3x128xbf16, #tpu.memory_space<vmem>>, vector<1x3x128xbf16>
    %10 = vector.shape_cast %9 : vector<1x3x128xbf16> to vector<3x128xbf16>
    %cst_17 = arith.constant dense<0.000000e+00> : vector<30x128xf32>
    %11 = tpu.matmul %8, %10, %cst_17 {dimension_numbers = #tpu.dot_dimension_numbers<[1], [0], [0], [1], [0, 0, 1, 1], [], []>} : vector<30x3xbf16>, vector<3x128xbf16>, vector<30x128xf32> -> vector<30x128xf32>
    %12 = arith.addf %6, %11 : vector<30x128xf32>
    %c0_18 = arith.constant 0 : index
    %c0_19 = arith.constant 0 : index
    %c0_20 = arith.constant 0 : index
    %c0_21 = arith.constant 0 : index
    %c1_22 = arith.constant 1 : index
    %c0_23 = arith.constant 0 : index
    %13 = vector.load %arg3[%c0_18, %c0_19, %c0_20, %c0_21, %c1_22, %c0_23] : memref<1x1x2x2x42x3xbf16, #tpu.memory_space<vmem>>, vector<1x1x1x1x30x3xbf16>
    %14 = vector.shape_cast %13 : vector<1x1x1x1x30x3xbf16> to vector<30x3xbf16>
    %c2 = arith.constant 2 : index
    %c0_24 = arith.constant 0 : index
    %c0_25 = arith.constant 0 : index
    %15 = vector.load %arg7[%c2, %c0_24, %c0_25] : memref<64x3x128xbf16, #tpu.memory_space<vmem>>, vector<1x3x128xbf16>
    %16 = vector.shape_cast %15 : vector<1x3x128xbf16> to vector<3x128xbf16>
    %cst_26 = arith.constant dense<0.000000e+00> : vector<30x128xf32>
    %17 = tpu.matmul %14, %16, %cst_26 {dimension_numbers = #tpu.dot_dimension_numbers<[1], [0], [0], [1], [0, 0, 1, 1], [], []>} : vector<30x3xbf16>, vector<3x128xbf16>, vector<30x128xf32> -> vector<30x128xf32>
    %18 = arith.addf %12, %17 : vector<30x128xf32>
    %c0_27 = arith.constant 0 : index
    %c0_28 = arith.constant 0 : index
    %c0_29 = arith.constant 0 : index
    %c1_30 = arith.constant 1 : index
    %c1_31 = arith.constant 1 : index
    %c0_32 = arith.constant 0 : index
    %19 = vector.load %arg3[%c0_27, %c0_28, %c0_29, %c1_30, %c1_31, %c0_32] : memref<1x1x2x2x42x3xbf16, #tpu.memory_space<vmem>>, vector<1x1x1x1x30x3xbf16>
    %20 = vector.shape_cast %19 : vector<1x1x1x1x30x3xbf16> to vector<30x3xbf16>
    %c3 = arith.constant 3 : index
    %c0_33 = arith.constant 0 : index
    %c0_34 = arith.constant 0 : index
    %21 = vector.load %arg7[%c3, %c0_33, %c0_34] : memref<64x3x128xbf16, #tpu.memory_space<vmem>>, vector<1x3x128xbf16>
    %22 = vector.shape_cast %21 : vector<1x3x128xbf16> to vector<3x128xbf16>
    %cst_35 = arith.constant dense<0.000000e+00> : vector<30x128xf32>
    %23 = tpu.matmul %20, %22, %cst_35 {dimension_numbers = #tpu.dot_dimension_numbers<[1], [0], [0], [1], [0, 0, 1, 1], [], []>} : vector<30x3xbf16>, vector<3x128xbf16>, vector<30x128xf32> -> vector<30x128xf32>
    %24 = arith.addf %18, %23 : vector<30x128xf32>
    %c0_36 = arith.constant 0 : index
    %c0_37 = arith.constant 0 : index
    %c1_38 = arith.constant 1 : index
    %c0_39 = arith.constant 0 : index
    %c0_40 = arith.constant 0 : index
    %c0_41 = arith.constant 0 : index
    %25 = vector.load %arg3[%c0_36, %c0_37, %c1_38, %c0_39, %c0_40, %c0_41] : memref<1x1x2x2x42x3xbf16, #tpu.memory_space<vmem>>, vector<1x1x1x1x30x3xbf16>
    %26 = vector.shape_cast %25 : vector<1x1x1x1x30x3xbf16> to vector<30x3xbf16>
    %c4 = arith.constant 4 : index
    %c0_42 = arith.constant 0 : index
    %c0_43 = arith.constant 0 : index
    %27 = vector.load %arg7[%c4, %c0_42, %c0_43] : memref<64x3x128xbf16, #tpu.memory_space<vmem>>, vector<1x3x128xbf16>
    %28 = vector.shape_cast %27 : vector<1x3x128xbf16> to vector<3x128xbf16>
    %cst_44 = arith.constant dense<0.000000e+00> : vector<30x128xf32>
    %29 = tpu.matmul %26, %28, %cst_44 {dimension_numbers = #tpu.dot_dimension_numbers<[1], [0], [0], [1], [0, 0, 1, 1], [], []>} : vector<30x3xbf16>, vector<3x128xbf16>, vector<30x128xf32> -> vector<30x128xf32>
    %30 = arith.addf %24, %29 : vector<30x128xf32>
    %c0_45 = arith.constant 0 : index
    %c0_46 = arith.constant 0 : index
    %c1_47 = arith.constant 1 : index
    %c1_48 = arith.constant 1 : index
    %c0_49 = arith.constant 0 : index
    %c0_50 = arith.constant 0 : index
    %31 = vector.load %arg3[%c0_45, %c0_46, %c1_47, %c1_48, %c0_49, %c0_50] : memref<1x1x2x2x42x3xbf16, #tpu.memory_space<vmem>>, vector<1x1x1x1x30x3xbf16>
    %32 = vector.shape_cast %31 : vector<1x1x1x1x30x3xbf16> to vector<30x3xbf16>
    %c5 = arith.constant 5 : index
    %c0_51 = arith.constant 0 : index
    %c0_52 = arith.constant 0 : index
    %33 = vector.load %arg7[%c5, %c0_51, %c0_52] : memref<64x3x128xbf16, #tpu.memory_space<vmem>>, vector<1x3x128xbf16>
    %34 = vector.shape_cast %33 : vector<1x3x128xbf16> to vector<3x128xbf16>
    %cst_53 = arith.constant dense<0.000000e+00> : vector<30x128xf32>
    %35 = tpu.matmul %32, %34, %cst_53 {dimension_numbers = #tpu.dot_dimension_numbers<[1], [0], [0], [1], [0, 0, 1, 1], [], []>} : vector<30x3xbf16>, vector<3x128xbf16>, vector<30x128xf32> -> vector<30x128xf32>
    %36 = arith.addf %30, %35 : vector<30x128xf32>
    %c0_54 = arith.constant 0 : index
    %c0_55 = arith.constant 0 : index
    %c1_56 = arith.constant 1 : index
    %c0_57 = arith.constant 0 : index
    %c1_58 = arith.constant 1 : index
    %c0_59 = arith.constant 0 : index
    %37 = vector.load %arg3[%c0_54, %c0_55, %c1_56, %c0_57, %c1_58, %c0_59] : memref<1x1x2x2x42x3xbf16, #tpu.memory_space<vmem>>, vector<1x1x1x1x30x3xbf16>
    %38 = vector.shape_cast %37 : vector<1x1x1x1x30x3xbf16> to vector<30x3xbf16>
    %c6 = arith.constant 6 : index
    %c0_60 = arith.constant 0 : index
    %c0_61 = arith.constant 0 : index
    %39 = vector.load %arg7[%c6, %c0_60, %c0_61] : memref<64x3x128xbf16, #tpu.memory_space<vmem>>, vector<1x3x128xbf16>
    %40 = vector.shape_cast %39 : vector<1x3x128xbf16> to vector<3x128xbf16>
    %cst_62 = arith.constant dense<0.000000e+00> : vector<30x128xf32>
    %41 = tpu.matmul %38, %40, %cst_62 {dimension_numbers = #tpu.dot_dimension_numbers<[1], [0], [0], [1], [0, 0, 1, 1], [], []>} : vector<30x3xbf16>, vector<3x128xbf16>, vector<30x128xf32> -> vector<30x128xf32>
    %42 = arith.addf %36, %41 : vector<30x128xf32>
    %c0_63 = arith.constant 0 : index
    %c0_64 = arith.constant 0 : index
    %c1_65 = arith.constant 1 : index
    %c1_66 = arith.constant 1 : index
    %c1_67 = arith.constant 1 : index
    %c0_68 = arith.constant 0 : index
    %43 = vector.load %arg3[%c0_63, %c0_64, %c1_65, %c1_66, %c1_67, %c0_68] : memref<1x1x2x2x42x3xbf16, #tpu.memory_space<vmem>>, vector<1x1x1x1x30x3xbf16>
    %44 = vector.shape_cast %43 : vector<1x1x1x1x30x3xbf16> to vector<30x3xbf16>
    %c7 = arith.constant 7 : index
    %c0_69 = arith.constant 0 : index
    %c0_70 = arith.constant 0 : index
    %45 = vector.load %arg7[%c7, %c0_69, %c0_70] : memref<64x3x128xbf16, #tpu.memory_space<vmem>>, vector<1x3x128xbf16>
    %46 = vector.shape_cast %45 : vector<1x3x128xbf16> to vector<3x128xbf16>
    %cst_71 = arith.constant dense<0.000000e+00> : vector<30x128xf32>
    %47 = tpu.matmul %44, %46, %cst_71 {dimension_numbers = #tpu.dot_dimension_numbers<[1], [0], [0], [1], [0, 0, 1, 1], [], []>} : vector<30x3xbf16>, vector<3x128xbf16>, vector<30x128xf32> -> vector<30x128xf32>
    %48 = arith.addf %42, %47 : vector<30x128xf32>
    %c0_72 = arith.constant 0 : index
    %c0_73 = arith.constant 0 : index
    %c0_74 = arith.constant 0 : index
    %c0_75 = arith.constant 0 : index
    %c6_76 = arith.constant 6 : index
    %c0_77 = arith.constant 0 : index
    %49 = vector.load %arg3[%c0_72, %c0_73, %c0_74, %c0_75, %c6_76, %c0_77] : memref<1x1x2x2x42x3xbf16, #tpu.memory_space<vmem>>, vector<1x1x1x1x30x3xbf16>
    %50 = vector.shape_cast %49 : vector<1x1x1x1x30x3xbf16> to vector<30x3xbf16>
    %c8 = arith.constant 8 : index
    %c0_78 = arith.constant 0 : index
    %c0_79 = arith.constant 0 : index
    %51 = vector.load %arg7[%c8, %c0_78, %c0_79] : memref<64x3x128xbf16, #tpu.memory_space<vmem>>, vector<1x3x128xbf16>
    %52 = vector.shape_cast %51 : vector<1x3x128xbf16> to vector<3x128xbf16>
    %cst_80 = arith.constant dense<0.000000e+00> : vector<30x128xf32>
    %53 = tpu.matmul %50, %52, %cst_80 {dimension_numbers = #tpu.dot_dimension_numbers<[1], [0], [0], [1], [0, 0, 1, 1], [], []>} : vector<30x3xbf16>, vector<3x128xbf16>, vector<30x128xf32> -> vector<30x128xf32>
    %54 = arith.addf %48, %53 : vector<30x128xf32>
    %c0_81 = arith.constant 0 : index
    %c0_82 = arith.constant 0 : index
    %c0_83 = arith.constant 0 : index
    %c1_84 = arith.constant 1 : index
    %c6_85 = arith.constant 6 : index
    %c0_86 = arith.constant 0 : index
    %55 = vector.load %arg3[%c0_81, %c0_82, %c0_83, %c1_84, %c6_85, %c0_86] : memref<1x1x2x2x42x3xbf16, #tpu.memory_space<vmem>>, vector<1x1x1x1x30x3xbf16>
    %56 = vector.shape_cast %55 : vector<1x1x1x1x30x3xbf16> to vector<30x3xbf16>
    %c9 = arith.constant 9 : index
    %c0_87 = arith.constant 0 : index
    %c0_88 = arith.constant 0 : index
    %57 = vector.load %arg7[%c9, %c0_87, %c0_88] : memref<64x3x128xbf16, #tpu.memory_space<vmem>>, vector<1x3x128xbf16>
    %58 = vector.shape_cast %57 : vector<1x3x128xbf16> to vector<3x128xbf16>
    %cst_89 = arith.constant dense<0.000000e+00> : vector<30x128xf32>
    %59 = tpu.matmul %56, %58, %cst_89 {dimension_numbers = #tpu.dot_dimension_numbers<[1], [0], [0], [1], [0, 0, 1, 1], [], []>} : vector<30x3xbf16>, vector<3x128xbf16>, vector<30x128xf32> -> vector<30x128xf32>
    %60 = arith.addf %54, %59 : vector<30x128xf32>
    %c0_90 = arith.constant 0 : index
    %c0_91 = arith.constant 0 : index
    %c0_92 = arith.constant 0 : index
    %c0_93 = arith.constant 0 : index
    %c7_94 = arith.constant 7 : index
    %c0_95 = arith.constant 0 : index
    %61 = vector.load %arg3[%c0_90, %c0_91, %c0_92, %c0_93, %c7_94, %c0_95] : memref<1x1x2x2x42x3xbf16, #tpu.memory_space<vmem>>, vector<1x1x1x1x30x3xbf16>
    %62 = vector.shape_cast %61 : vector<1x1x1x1x30x3xbf16> to vector<30x3xbf16>
    %c10 = arith.constant 10 : index
    %c0_96 = arith.constant 0 : index
    %c0_97 = arith.constant 0 : index
    %63 = vector.load %arg7[%c10, %c0_96, %c0_97] : memref<64x3x128xbf16, #tpu.memory_space<vmem>>, vector<1x3x128xbf16>
    %64 = vector.shape_cast %63 : vector<1x3x128xbf16> to vector<3x128xbf16>
    %cst_98 = arith.constant dense<0.000000e+00> : vector<30x128xf32>
    %65 = tpu.matmul %62, %64, %cst_98 {dimension_numbers = #tpu.dot_dimension_numbers<[1], [0], [0], [1], [0, 0, 1, 1], [], []>} : vector<30x3xbf16>, vector<3x128xbf16>, vector<30x128xf32> -> vector<30x128xf32>
    %66 = arith.addf %60, %65 : vector<30x128xf32>
    %c0_99 = arith.constant 0 : index
    %c0_100 = arith.constant 0 : index
    %c0_101 = arith.constant 0 : index
    %c1_102 = arith.constant 1 : index
    %c7_103 = arith.constant 7 : index
    %c0_104 = arith.constant 0 : index
    %67 = vector.load %arg3[%c0_99, %c0_100, %c0_101, %c1_102, %c7_103, %c0_104] : memref<1x1x2x2x42x3xbf16, #tpu.memory_space<vmem>>, vector<1x1x1x1x30x3xbf16>
    %68 = vector.shape_cast %67 : vector<1x1x1x1x30x3xbf16> to vector<30x3xbf16>
    %c11 = arith.constant 11 : index
    %c0_105 = arith.constant 0 : index
    %c0_106 = arith.constant 0 : index
    %69 = vector.load %arg7[%c11, %c0_105, %c0_106] : memref<64x3x128xbf16, #tpu.memory_space<vmem>>, vector<1x3x128xbf16>
    %70 = vector.shape_cast %69 : vector<1x3x128xbf16> to vector<3x128xbf16>
    %cst_107 = arith.constant dense<0.000000e+00> : vector<30x128xf32>
    %71 = tpu.matmul %68, %70, %cst_107 {dimension_numbers = #tpu.dot_dimension_numbers<[1], [0], [0], [1], [0, 0, 1, 1], [], []>} : vector<30x3xbf16>, vector<3x128xbf16>, vector<30x128xf32> -> vector<30x128xf32>
    %72 = arith.addf %66, %71 : vector<30x128xf32>
    %c0_108 = arith.constant 0 : index
    %c0_109 = arith.constant 0 : index
    %c1_110 = arith.constant 1 : index
    %c0_111 = arith.constant 0 : index
    %c6_112 = arith.constant 6 : index
    %c0_113 = arith.constant 0 : index
    %73 = vector.load %arg3[%c0_108, %c0_109, %c1_110, %c0_111, %c6_112, %c0_113] : memref<1x1x2x2x42x3xbf16, #tpu.memory_space<vmem>>, vector<1x1x1x1x30x3xbf16>
    %74 = vector.shape_cast %73 : vector<1x1x1x1x30x3xbf16> to vector<30x3xbf16>
    %c12 = arith.constant 12 : index
    %c0_114 = arith.constant 0 : index
    %c0_115 = arith.constant 0 : index
    %75 = vector.load %arg7[%c12, %c0_114, %c0_115] : memref<64x3x128xbf16, #tpu.memory_space<vmem>>, vector<1x3x128xbf16>
    %76 = vector.shape_cast %75 : vector<1x3x128xbf16> to vector<3x128xbf16>
    %cst_116 = arith.constant dense<0.000000e+00> : vector<30x128xf32>
    %77 = tpu.matmul %74, %76, %cst_116 {dimension_numbers = #tpu.dot_dimension_numbers<[1], [0], [0], [1], [0, 0, 1, 1], [], []>} : vector<30x3xbf16>, vector<3x128xbf16>, vector<30x128xf32> -> vector<30x128xf32>
    %78 = arith.addf %72, %77 : vector<30x128xf32>
    %c0_117 = arith.constant 0 : index
    %c0_118 = arith.constant 0 : index
    %c1_119 = arith.constant 1 : index
    %c1_120 = arith.constant 1 : index
    %c6_121 = arith.constant 6 : index
    %c0_122 = arith.constant 0 : index
    %79 = vector.load %arg3[%c0_117, %c0_118, %c1_119, %c1_120, %c6_121, %c0_122] : memref<1x1x2x2x42x3xbf16, #tpu.memory_space<vmem>>, vector<1x1x1x1x30x3xbf16>
    %80 = vector.shape_cast %79 : vector<1x1x1x1x30x3xbf16> to vector<30x3xbf16>
    %c13 = arith.constant 13 : index
    %c0_123 = arith.constant 0 : index
    %c0_124 = arith.constant 0 : index
    %81 = vector.load %arg7[%c13, %c0_123, %c0_124] : memref<64x3x128xbf16, #tpu.memory_space<vmem>>, vector<1x3x128xbf16>
    %82 = vector.shape_cast %81 : vector<1x3x128xbf16> to vector<3x128xbf16>
    %cst_125 = arith.constant dense<0.000000e+00> : vector<30x128xf32>
    %83 = tpu.matmul %80, %82, %cst_125 {dimension_numbers = #tpu.dot_dimension_numbers<[1], [0], [0], [1], [0, 0, 1, 1], [], []>} : vector<30x3xbf16>, vector<3x128xbf16>, vector<30x128xf32> -> vector<30x128xf32>
    %84 = arith.addf %78, %83 : vector<30x128xf32>
    %c0_126 = arith.constant 0 : index
    %c0_127 = arith.constant 0 : index
    %c1_128 = arith.constant 1 : index
    %c0_129 = arith.constant 0 : index
    %c7_130 = arith.constant 7 : index
    %c0_131 = arith.constant 0 : index
    %85 = vector.load %arg3[%c0_126, %c0_127, %c1_128, %c0_129, %c7_130, %c0_131] : memref<1x1x2x2x42x3xbf16, #tpu.memory_space<vmem>>, vector<1x1x1x1x30x3xbf16>
    %86 = vector.shape_cast %85 : vector<1x1x1x1x30x3xbf16> to vector<30x3xbf16>
    %c14 = arith.constant 14 : index
    %c0_132 = arith.constant 0 : index
    %c0_133 = arith.constant 0 : index
    %87 = vector.load %arg7[%c14, %c0_132, %c0_133] : memref<64x3x128xbf16, #tpu.memory_space<vmem>>, vector<1x3x128xbf16>
    %88 = vector.shape_cast %87 : vector<1x3x128xbf16> to vector<3x128xbf16>
    %cst_134 = arith.constant dense<0.000000e+00> : vector<30x128xf32>
    %89 = tpu.matmul %86, %88, %cst_134 {dimension_numbers = #tpu.dot_dimension_numbers<[1], [0], [0], [1], [0, 0, 1, 1], [], []>} : vector<30x3xbf16>, vector<3x128xbf16>, vector<30x128xf32> -> vector<30x128xf32>
    %90 = arith.addf %84, %89 : vector<30x128xf32>
    %c0_135 = arith.constant 0 : index
    %c0_136 = arith.constant 0 : index
    %c1_137 = arith.constant 1 : index
    %c1_138 = arith.constant 1 : index
    %c7_139 = arith.constant 7 : index
    %c0_140 = arith.constant 0 : index
    %91 = vector.load %arg3[%c0_135, %c0_136, %c1_137, %c1_138, %c7_139, %c0_140] : memref<1x1x2x2x42x3xbf16, #tpu.memory_space<vmem>>, vector<1x1x1x1x30x3xbf16>
    %92 = vector.shape_cast %91 : vector<1x1x1x1x30x3xbf16> to vector<30x3xbf16>
    %c15 = arith.constant 15 : index
    %c0_141 = arith.constant 0 : index
    %c0_142 = arith.constant 0 : index
    %93 = vector.load %arg7[%c15, %c0_141, %c0_142] : memref<64x3x128xbf16, #tpu.memory_space<vmem>>, vector<1x3x128xbf16>
    %94 = vector.shape_cast %93 : vector<1x3x128xbf16> to vector<3x128xbf16>
    %cst_143 = arith.constant dense<0.000000e+00> : vector<30x128xf32>
    %95 = tpu.matmul %92, %94, %cst_143 {dimension_numbers = #tpu.dot_dimension_numbers<[1], [0], [0], [1], [0, 0, 1, 1], [], []>} : vector<30x3xbf16>, vector<3x128xbf16>, vector<30x128xf32> -> vector<30x128xf32>
    %96 = arith.addf %90, %95 : vector<30x128xf32>
    %c0_144 = arith.constant 0 : index
    %c0_145 = arith.constant 0 : index
    %c0_146 = arith.constant 0 : index
    %c0_147 = arith.constant 0 : index
    %c0_148 = arith.constant 0 : index
    %c0_149 = arith.constant 0 : index
    %97 = vector.load %arg4[%c0_144, %c0_145, %c0_146, %c0_147, %c0_148, %c0_149] : memref<1x1x2x2x42x3xbf16, #tpu.memory_space<vmem>>, vector<1x1x1x1x30x3xbf16>
    %98 = vector.shape_cast %97 : vector<1x1x1x1x30x3xbf16> to vector<30x3xbf16>
    %c16 = arith.constant 16 : index
    %c0_150 = arith.constant 0 : index
    %c0_151 = arith.constant 0 : index
    %99 = vector.load %arg7[%c16, %c0_150, %c0_151] : memref<64x3x128xbf16, #tpu.memory_space<vmem>>, vector<1x3x128xbf16>
    %100 = vector.shape_cast %99 : vector<1x3x128xbf16> to vector<3x128xbf16>
    %cst_152 = arith.constant dense<0.000000e+00> : vector<30x128xf32>
    %101 = tpu.matmul %98, %100, %cst_152 {dimension_numbers = #tpu.dot_dimension_numbers<[1], [0], [0], [1], [0, 0, 1, 1], [], []>} : vector<30x3xbf16>, vector<3x128xbf16>, vector<30x128xf32> -> vector<30x128xf32>
    %102 = arith.addf %96, %101 : vector<30x128xf32>
    %c0_153 = arith.constant 0 : index
    %c0_154 = arith.constant 0 : index
    %c0_155 = arith.constant 0 : index
    %c1_156 = arith.constant 1 : index
    %c0_157 = arith.constant 0 : index
    %c0_158 = arith.constant 0 : index
    %103 = vector.load %arg4[%c0_153, %c0_154, %c0_155, %c1_156, %c0_157, %c0_158] : memref<1x1x2x2x42x3xbf16, #tpu.memory_space<vmem>>, vector<1x1x1x1x30x3xbf16>
    %104 = vector.shape_cast %103 : vector<1x1x1x1x30x3xbf16> to vector<30x3xbf16>
    %c17 = arith.constant 17 : index
    %c0_159 = arith.constant 0 : index
    %c0_160 = arith.constant 0 : index
    %105 = vector.load %arg7[%c17, %c0_159, %c0_160] : memref<64x3x128xbf16, #tpu.memory_space<vmem>>, vector<1x3x128xbf16>
    %106 = vector.shape_cast %105 : vector<1x3x128xbf16> to vector<3x128xbf16>
    %cst_161 = arith.constant dense<0.000000e+00> : vector<30x128xf32>
    %107 = tpu.matmul %104, %106, %cst_161 {dimension_numbers = #tpu.dot_dimension_numbers<[1], [0], [0], [1], [0, 0, 1, 1], [], []>} : vector<30x3xbf16>, vector<3x128xbf16>, vector<30x128xf32> -> vector<30x128xf32>
    %108 = arith.addf %102, %107 : vector<30x128xf32>
    %c0_162 = arith.constant 0 : index
    %c0_163 = arith.constant 0 : index
    %c0_164 = arith.constant 0 : index
    %c0_165 = arith.constant 0 : index
    %c1_166 = arith.constant 1 : index
    %c0_167 = arith.constant 0 : index
    %109 = vector.load %arg4[%c0_162, %c0_163, %c0_164, %c0_165, %c1_166, %c0_167] : memref<1x1x2x2x42x3xbf16, #tpu.memory_space<vmem>>, vector<1x1x1x1x30x3xbf16>
    %110 = vector.shape_cast %109 : vector<1x1x1x1x30x3xbf16> to vector<30x3xbf16>
    %c18 = arith.constant 18 : index
    %c0_168 = arith.constant 0 : index
    %c0_169 = arith.constant 0 : index
    %111 = vector.load %arg7[%c18, %c0_168, %c0_169] : memref<64x3x128xbf16, #tpu.memory_space<vmem>>, vector<1x3x128xbf16>
    %112 = vector.shape_cast %111 : vector<1x3x128xbf16> to vector<3x128xbf16>
    %cst_170 = arith.constant dense<0.000000e+00> : vector<30x128xf32>
    %113 = tpu.matmul %110, %112, %cst_170 {dimension_numbers = #tpu.dot_dimension_numbers<[1], [0], [0], [1], [0, 0, 1, 1], [], []>} : vector<30x3xbf16>, vector<3x128xbf16>, vector<30x128xf32> -> vector<30x128xf32>
    %114 = arith.addf %108, %113 : vector<30x128xf32>
    %c0_171 = arith.constant 0 : index
    %c0_172 = arith.constant 0 : index
    %c0_173 = arith.constant 0 : index
    %c1_174 = arith.constant 1 : index
    %c1_175 = arith.constant 1 : index
    %c0_176 = arith.constant 0 : index
    %115 = vector.load %arg4[%c0_171, %c0_172, %c0_173, %c1_174, %c1_175, %c0_176] : memref<1x1x2x2x42x3xbf16, #tpu.memory_space<vmem>>, vector<1x1x1x1x30x3xbf16>
    %116 = vector.shape_cast %115 : vector<1x1x1x1x30x3xbf16> to vector<30x3xbf16>
    %c19 = arith.constant 19 : index
    %c0_177 = arith.constant 0 : index
    %c0_178 = arith.constant 0 : index
    %117 = vector.load %arg7[%c19, %c0_177, %c0_178] : memref<64x3x128xbf16, #tpu.memory_space<vmem>>, vector<1x3x128xbf16>
    %118 = vector.shape_cast %117 : vector<1x3x128xbf16> to vector<3x128xbf16>
    %cst_179 = arith.constant dense<0.000000e+00> : vector<30x128xf32>
    %119 = tpu.matmul %116, %118, %cst_179 {dimension_numbers = #tpu.dot_dimension_numbers<[1], [0], [0], [1], [0, 0, 1, 1], [], []>} : vector<30x3xbf16>, vector<3x128xbf16>, vector<30x128xf32> -> vector<30x128xf32>
    %120 = arith.addf %114, %119 : vector<30x128xf32>
    %c0_180 = arith.constant 0 : index
    %c0_181 = arith.constant 0 : index
    %c1_182 = arith.constant 1 : index
    %c0_183 = arith.constant 0 : index
    %c0_184 = arith.constant 0 : index
    %c0_185 = arith.constant 0 : index
    %121 = vector.load %arg4[%c0_180, %c0_181, %c1_182, %c0_183, %c0_184, %c0_185] : memref<1x1x2x2x42x3xbf16, #tpu.memory_space<vmem>>, vector<1x1x1x1x30x3xbf16>
    %122 = vector.shape_cast %121 : vector<1x1x1x1x30x3xbf16> to vector<30x3xbf16>
    %c20 = arith.constant 20 : index
    %c0_186 = arith.constant 0 : index
    %c0_187 = arith.constant 0 : index
    %123 = vector.load %arg7[%c20, %c0_186, %c0_187] : memref<64x3x128xbf16, #tpu.memory_space<vmem>>, vector<1x3x128xbf16>
    %124 = vector.shape_cast %123 : vector<1x3x128xbf16> to vector<3x128xbf16>
    %cst_188 = arith.constant dense<0.000000e+00> : vector<30x128xf32>
    %125 = tpu.matmul %122, %124, %cst_188 {dimension_numbers = #tpu.dot_dimension_numbers<[1], [0], [0], [1], [0, 0, 1, 1], [], []>} : vector<30x3xbf16>, vector<3x128xbf16>, vector<30x128xf32> -> vector<30x128xf32>
    %126 = arith.addf %120, %125 : vector<30x128xf32>
    %c0_189 = arith.constant 0 : index
    %c0_190 = arith.constant 0 : index
    %c1_191 = arith.constant 1 : index
    %c1_192 = arith.constant 1 : index
    %c0_193 = arith.constant 0 : index
    %c0_194 = arith.constant 0 : index
    %127 = vector.load %arg4[%c0_189, %c0_190, %c1_191, %c1_192, %c0_193, %c0_194] : memref<1x1x2x2x42x3xbf16, #tpu.memory_space<vmem>>, vector<1x1x1x1x30x3xbf16>
    %128 = vector.shape_cast %127 : vector<1x1x1x1x30x3xbf16> to vector<30x3xbf16>
    %c21 = arith.constant 21 : index
    %c0_195 = arith.constant 0 : index
    %c0_196 = arith.constant 0 : index
    %129 = vector.load %arg7[%c21, %c0_195, %c0_196] : memref<64x3x128xbf16, #tpu.memory_space<vmem>>, vector<1x3x128xbf16>
    %130 = vector.shape_cast %129 : vector<1x3x128xbf16> to vector<3x128xbf16>
    %cst_197 = arith.constant dense<0.000000e+00> : vector<30x128xf32>
    %131 = tpu.matmul %128, %130, %cst_197 {dimension_numbers = #tpu.dot_dimension_numbers<[1], [0], [0], [1], [0, 0, 1, 1], [], []>} : vector<30x3xbf16>, vector<3x128xbf16>, vector<30x128xf32> -> vector<30x128xf32>
    %132 = arith.addf %126, %131 : vector<30x128xf32>
    %c0_198 = arith.constant 0 : index
    %c0_199 = arith.constant 0 : index
    %c1_200 = arith.constant 1 : index
    %c0_201 = arith.constant 0 : index
    %c1_202 = arith.constant 1 : index
    %c0_203 = arith.constant 0 : index
    %133 = vector.load %arg4[%c0_198, %c0_199, %c1_200, %c0_201, %c1_202, %c0_203] : memref<1x1x2x2x42x3xbf16, #tpu.memory_space<vmem>>, vector<1x1x1x1x30x3xbf16>
    %134 = vector.shape_cast %133 : vector<1x1x1x1x30x3xbf16> to vector<30x3xbf16>
    %c22 = arith.constant 22 : index
    %c0_204 = arith.constant 0 : index
    %c0_205 = arith.constant 0 : index
    %135 = vector.load %arg7[%c22, %c0_204, %c0_205] : memref<64x3x128xbf16, #tpu.memory_space<vmem>>, vector<1x3x128xbf16>
    %136 = vector.shape_cast %135 : vector<1x3x128xbf16> to vector<3x128xbf16>
    %cst_206 = arith.constant dense<0.000000e+00> : vector<30x128xf32>
    %137 = tpu.matmul %134, %136, %cst_206 {dimension_numbers = #tpu.dot_dimension_numbers<[1], [0], [0], [1], [0, 0, 1, 1], [], []>} : vector<30x3xbf16>, vector<3x128xbf16>, vector<30x128xf32> -> vector<30x128xf32>
    %138 = arith.addf %132, %137 : vector<30x128xf32>
    %c0_207 = arith.constant 0 : index
    %c0_208 = arith.constant 0 : index
    %c1_209 = arith.constant 1 : index
    %c1_210 = arith.constant 1 : index
    %c1_211 = arith.constant 1 : index
    %c0_212 = arith.constant 0 : index
    %139 = vector.load %arg4[%c0_207, %c0_208, %c1_209, %c1_210, %c1_211, %c0_212] : memref<1x1x2x2x42x3xbf16, #tpu.memory_space<vmem>>, vector<1x1x1x1x30x3xbf16>
    %140 = vector.shape_cast %139 : vector<1x1x1x1x30x3xbf16> to vector<30x3xbf16>
    %c23 = arith.constant 23 : index
    %c0_213 = arith.constant 0 : index
    %c0_214 = arith.constant 0 : index
    %141 = vector.load %arg7[%c23, %c0_213, %c0_214] : memref<64x3x128xbf16, #tpu.memory_space<vmem>>, vector<1x3x128xbf16>
    %142 = vector.shape_cast %141 : vector<1x3x128xbf16> to vector<3x128xbf16>
    %cst_215 = arith.constant dense<0.000000e+00> : vector<30x128xf32>
    %143 = tpu.matmul %140, %142, %cst_215 {dimension_numbers = #tpu.dot_dimension_numbers<[1], [0], [0], [1], [0, 0, 1, 1], [], []>} : vector<30x3xbf16>, vector<3x128xbf16>, vector<30x128xf32> -> vector<30x128xf32>
    %144 = arith.addf %138, %143 : vector<30x128xf32>
    %c0_216 = arith.constant 0 : index
    %c0_217 = arith.constant 0 : index
    %c0_218 = arith.constant 0 : index
    %c0_219 = arith.constant 0 : index
    %c6_220 = arith.constant 6 : index
    %c0_221 = arith.constant 0 : index
    %145 = vector.load %arg4[%c0_216, %c0_217, %c0_218, %c0_219, %c6_220, %c0_221] : memref<1x1x2x2x42x3xbf16, #tpu.memory_space<vmem>>, vector<1x1x1x1x30x3xbf16>
    %146 = vector.shape_cast %145 : vector<1x1x1x1x30x3xbf16> to vector<30x3xbf16>
    %c24 = arith.constant 24 : index
    %c0_222 = arith.constant 0 : index
    %c0_223 = arith.constant 0 : index
    %147 = vector.load %arg7[%c24, %c0_222, %c0_223] : memref<64x3x128xbf16, #tpu.memory_space<vmem>>, vector<1x3x128xbf16>
    %148 = vector.shape_cast %147 : vector<1x3x128xbf16> to vector<3x128xbf16>
    %cst_224 = arith.constant dense<0.000000e+00> : vector<30x128xf32>
    %149 = tpu.matmul %146, %148, %cst_224 {dimension_numbers = #tpu.dot_dimension_numbers<[1], [0], [0], [1], [0, 0, 1, 1], [], []>} : vector<30x3xbf16>, vector<3x128xbf16>, vector<30x128xf32> -> vector<30x128xf32>
    %150 = arith.addf %144, %149 : vector<30x128xf32>
    %c0_225 = arith.constant 0 : index
    %c0_226 = arith.constant 0 : index
    %c0_227 = arith.constant 0 : index
    %c1_228 = arith.constant 1 : index
    %c6_229 = arith.constant 6 : index
    %c0_230 = arith.constant 0 : index
    %151 = vector.load %arg4[%c0_225, %c0_226, %c0_227, %c1_228, %c6_229, %c0_230] : memref<1x1x2x2x42x3xbf16, #tpu.memory_space<vmem>>, vector<1x1x1x1x30x3xbf16>
    %152 = vector.shape_cast %151 : vector<1x1x1x1x30x3xbf16> to vector<30x3xbf16>
    %c25 = arith.constant 25 : index
    %c0_231 = arith.constant 0 : index
    %c0_232 = arith.constant 0 : index
    %153 = vector.load %arg7[%c25, %c0_231, %c0_232] : memref<64x3x128xbf16, #tpu.memory_space<vmem>>, vector<1x3x128xbf16>
    %154 = vector.shape_cast %153 : vector<1x3x128xbf16> to vector<3x128xbf16>
    %cst_233 = arith.constant dense<0.000000e+00> : vector<30x128xf32>
    %155 = tpu.matmul %152, %154, %cst_233 {dimension_numbers = #tpu.dot_dimension_numbers<[1], [0], [0], [1], [0, 0, 1, 1], [], []>} : vector<30x3xbf16>, vector<3x128xbf16>, vector<30x128xf32> -> vector<30x128xf32>
    %156 = arith.addf %150, %155 : vector<30x128xf32>
    %c0_234 = arith.constant 0 : index
    %c0_235 = arith.constant 0 : index
    %c0_236 = arith.constant 0 : index
    %c0_237 = arith.constant 0 : index
    %c7_238 = arith.constant 7 : index
    %c0_239 = arith.constant 0 : index
    %157 = vector.load %arg4[%c0_234, %c0_235, %c0_236, %c0_237, %c7_238, %c0_239] : memref<1x1x2x2x42x3xbf16, #tpu.memory_space<vmem>>, vector<1x1x1x1x30x3xbf16>
    %158 = vector.shape_cast %157 : vector<1x1x1x1x30x3xbf16> to vector<30x3xbf16>
    %c26 = arith.constant 26 : index
    %c0_240 = arith.constant 0 : index
    %c0_241 = arith.constant 0 : index
    %159 = vector.load %arg7[%c26, %c0_240, %c0_241] : memref<64x3x128xbf16, #tpu.memory_space<vmem>>, vector<1x3x128xbf16>
    %160 = vector.shape_cast %159 : vector<1x3x128xbf16> to vector<3x128xbf16>
    %cst_242 = arith.constant dense<0.000000e+00> : vector<30x128xf32>
    %161 = tpu.matmul %158, %160, %cst_242 {dimension_numbers = #tpu.dot_dimension_numbers<[1], [0], [0], [1], [0, 0, 1, 1], [], []>} : vector<30x3xbf16>, vector<3x128xbf16>, vector<30x128xf32> -> vector<30x128xf32>
    %162 = arith.addf %156, %161 : vector<30x128xf32>
    %c0_243 = arith.constant 0 : index
    %c0_244 = arith.constant 0 : index
    %c0_245 = arith.constant 0 : index
    %c1_246 = arith.constant 1 : index
    %c7_247 = arith.constant 7 : index
    %c0_248 = arith.constant 0 : index
    %163 = vector.load %arg4[%c0_243, %c0_244, %c0_245, %c1_246, %c7_247, %c0_248] : memref<1x1x2x2x42x3xbf16, #tpu.memory_space<vmem>>, vector<1x1x1x1x30x3xbf16>
    %164 = vector.shape_cast %163 : vector<1x1x1x1x30x3xbf16> to vector<30x3xbf16>
    %c27 = arith.constant 27 : index
    %c0_249 = arith.constant 0 : index
    %c0_250 = arith.constant 0 : index
    %165 = vector.load %arg7[%c27, %c0_249, %c0_250] : memref<64x3x128xbf16, #tpu.memory_space<vmem>>, vector<1x3x128xbf16>
    %166 = vector.shape_cast %165 : vector<1x3x128xbf16> to vector<3x128xbf16>
    %cst_251 = arith.constant dense<0.000000e+00> : vector<30x128xf32>
    %167 = tpu.matmul %164, %166, %cst_251 {dimension_numbers = #tpu.dot_dimension_numbers<[1], [0], [0], [1], [0, 0, 1, 1], [], []>} : vector<30x3xbf16>, vector<3x128xbf16>, vector<30x128xf32> -> vector<30x128xf32>
    %168 = arith.addf %162, %167 : vector<30x128xf32>
    %c0_252 = arith.constant 0 : index
    %c0_253 = arith.constant 0 : index
    %c1_254 = arith.constant 1 : index
    %c0_255 = arith.constant 0 : index
    %c6_256 = arith.constant 6 : index
    %c0_257 = arith.constant 0 : index
    %169 = vector.load %arg4[%c0_252, %c0_253, %c1_254, %c0_255, %c6_256, %c0_257] : memref<1x1x2x2x42x3xbf16, #tpu.memory_space<vmem>>, vector<1x1x1x1x30x3xbf16>
    %170 = vector.shape_cast %169 : vector<1x1x1x1x30x3xbf16> to vector<30x3xbf16>
    %c28 = arith.constant 28 : index
    %c0_258 = arith.constant 0 : index
    %c0_259 = arith.constant 0 : index
    %171 = vector.load %arg7[%c28, %c0_258, %c0_259] : memref<64x3x128xbf16, #tpu.memory_space<vmem>>, vector<1x3x128xbf16>
    %172 = vector.shape_cast %171 : vector<1x3x128xbf16> to vector<3x128xbf16>
    %cst_260 = arith.constant dense<0.000000e+00> : vector<30x128xf32>
    %173 = tpu.matmul %170, %172, %cst_260 {dimension_numbers = #tpu.dot_dimension_numbers<[1], [0], [0], [1], [0, 0, 1, 1], [], []>} : vector<30x3xbf16>, vector<3x128xbf16>, vector<30x128xf32> -> vector<30x128xf32>
    %174 = arith.addf %168, %173 : vector<30x128xf32>
    %c0_261 = arith.constant 0 : index
    %c0_262 = arith.constant 0 : index
    %c1_263 = arith.constant 1 : index
    %c1_264 = arith.constant 1 : index
    %c6_265 = arith.constant 6 : index
    %c0_266 = arith.constant 0 : index
    %175 = vector.load %arg4[%c0_261, %c0_262, %c1_263, %c1_264, %c6_265, %c0_266] : memref<1x1x2x2x42x3xbf16, #tpu.memory_space<vmem>>, vector<1x1x1x1x30x3xbf16>
    %176 = vector.shape_cast %175 : vector<1x1x1x1x30x3xbf16> to vector<30x3xbf16>
    %c29 = arith.constant 29 : index
    %c0_267 = arith.constant 0 : index
    %c0_268 = arith.constant 0 : index
    %177 = vector.load %arg7[%c29, %c0_267, %c0_268] : memref<64x3x128xbf16, #tpu.memory_space<vmem>>, vector<1x3x128xbf16>
    %178 = vector.shape_cast %177 : vector<1x3x128xbf16> to vector<3x128xbf16>
    %cst_269 = arith.constant dense<0.000000e+00> : vector<30x128xf32>
    %179 = tpu.matmul %176, %178, %cst_269 {dimension_numbers = #tpu.dot_dimension_numbers<[1], [0], [0], [1], [0, 0, 1, 1], [], []>} : vector<30x3xbf16>, vector<3x128xbf16>, vector<30x128xf32> -> vector<30x128xf32>
    %180 = arith.addf %174, %179 : vector<30x128xf32>
    %c0_270 = arith.constant 0 : index
    %c0_271 = arith.constant 0 : index
    %c1_272 = arith.constant 1 : index
    %c0_273 = arith.constant 0 : index
    %c7_274 = arith.constant 7 : index
    %c0_275 = arith.constant 0 : index
    %181 = vector.load %arg4[%c0_270, %c0_271, %c1_272, %c0_273, %c7_274, %c0_275] : memref<1x1x2x2x42x3xbf16, #tpu.memory_space<vmem>>, vector<1x1x1x1x30x3xbf16>
    %182 = vector.shape_cast %181 : vector<1x1x1x1x30x3xbf16> to vector<30x3xbf16>
    %c30 = arith.constant 30 : index
    %c0_276 = arith.constant 0 : index
    %c0_277 = arith.constant 0 : index
    %183 = vector.load %arg7[%c30, %c0_276, %c0_277] : memref<64x3x128xbf16, #tpu.memory_space<vmem>>, vector<1x3x128xbf16>
    %184 = vector.shape_cast %183 : vector<1x3x128xbf16> to vector<3x128xbf16>
    %cst_278 = arith.constant dense<0.000000e+00> : vector<30x128xf32>
    %185 = tpu.matmul %182, %184, %cst_278 {dimension_numbers = #tpu.dot_dimension_numbers<[1], [0], [0], [1], [0, 0, 1, 1], [], []>} : vector<30x3xbf16>, vector<3x128xbf16>, vector<30x128xf32> -> vector<30x128xf32>
    %186 = arith.addf %180, %185 : vector<30x128xf32>
    %c0_279 = arith.constant 0 : index
    %c0_280 = arith.constant 0 : index
    %c1_281 = arith.constant 1 : index
    %c1_282 = arith.constant 1 : index
    %c7_283 = arith.constant 7 : index
    %c0_284 = arith.constant 0 : index
    %187 = vector.load %arg4[%c0_279, %c0_280, %c1_281, %c1_282, %c7_283, %c0_284] : memref<1x1x2x2x42x3xbf16, #tpu.memory_space<vmem>>, vector<1x1x1x1x30x3xbf16>
    %188 = vector.shape_cast %187 : vector<1x1x1x1x30x3xbf16> to vector<30x3xbf16>
    %c31 = arith.constant 31 : index
    %c0_285 = arith.constant 0 : index
    %c0_286 = arith.constant 0 : index
    %189 = vector.load %arg7[%c31, %c0_285, %c0_286] : memref<64x3x128xbf16, #tpu.memory_space<vmem>>, vector<1x3x128xbf16>
    %190 = vector.shape_cast %189 : vector<1x3x128xbf16> to vector<3x128xbf16>
    %cst_287 = arith.constant dense<0.000000e+00> : vector<30x128xf32>
    %191 = tpu.matmul %188, %190, %cst_287 {dimension_numbers = #tpu.dot_dimension_numbers<[1], [0], [0], [1], [0, 0, 1, 1], [], []>} : vector<30x3xbf16>, vector<3x128xbf16>, vector<30x128xf32> -> vector<30x128xf32>
    %192 = arith.addf %186, %191 : vector<30x128xf32>
    %c0_288 = arith.constant 0 : index
    %c0_289 = arith.constant 0 : index
    %c0_290 = arith.constant 0 : index
    %c0_291 = arith.constant 0 : index
    %c0_292 = arith.constant 0 : index
    %c0_293 = arith.constant 0 : index
    %193 = vector.load %arg5[%c0_288, %c0_289, %c0_290, %c0_291, %c0_292, %c0_293] : memref<1x1x2x2x42x3xbf16, #tpu.memory_space<vmem>>, vector<1x1x1x1x30x3xbf16>
    %194 = vector.shape_cast %193 : vector<1x1x1x1x30x3xbf16> to vector<30x3xbf16>
    %c32 = arith.constant 32 : index
    %c0_294 = arith.constant 0 : index
    %c0_295 = arith.constant 0 : index
    %195 = vector.load %arg7[%c32, %c0_294, %c0_295] : memref<64x3x128xbf16, #tpu.memory_space<vmem>>, vector<1x3x128xbf16>
    %196 = vector.shape_cast %195 : vector<1x3x128xbf16> to vector<3x128xbf16>
    %cst_296 = arith.constant dense<0.000000e+00> : vector<30x128xf32>
    %197 = tpu.matmul %194, %196, %cst_296 {dimension_numbers = #tpu.dot_dimension_numbers<[1], [0], [0], [1], [0, 0, 1, 1], [], []>} : vector<30x3xbf16>, vector<3x128xbf16>, vector<30x128xf32> -> vector<30x128xf32>
    %198 = arith.addf %192, %197 : vector<30x128xf32>
    %c0_297 = arith.constant 0 : index
    %c0_298 = arith.constant 0 : index
    %c0_299 = arith.constant 0 : index
    %c1_300 = arith.constant 1 : index
    %c0_301 = arith.constant 0 : index
    %c0_302 = arith.constant 0 : index
    %199 = vector.load %arg5[%c0_297, %c0_298, %c0_299, %c1_300, %c0_301, %c0_302] : memref<1x1x2x2x42x3xbf16, #tpu.memory_space<vmem>>, vector<1x1x1x1x30x3xbf16>
    %200 = vector.shape_cast %199 : vector<1x1x1x1x30x3xbf16> to vector<30x3xbf16>
    %c33 = arith.constant 33 : index
    %c0_303 = arith.constant 0 : index
    %c0_304 = arith.constant 0 : index
    %201 = vector.load %arg7[%c33, %c0_303, %c0_304] : memref<64x3x128xbf16, #tpu.memory_space<vmem>>, vector<1x3x128xbf16>
    %202 = vector.shape_cast %201 : vector<1x3x128xbf16> to vector<3x128xbf16>
    %cst_305 = arith.constant dense<0.000000e+00> : vector<30x128xf32>
    %203 = tpu.matmul %200, %202, %cst_305 {dimension_numbers = #tpu.dot_dimension_numbers<[1], [0], [0], [1], [0, 0, 1, 1], [], []>} : vector<30x3xbf16>, vector<3x128xbf16>, vector<30x128xf32> -> vector<30x128xf32>
    %204 = arith.addf %198, %203 : vector<30x128xf32>
    %c0_306 = arith.constant 0 : index
    %c0_307 = arith.constant 0 : index
    %c0_308 = arith.constant 0 : index
    %c0_309 = arith.constant 0 : index
    %c1_310 = arith.constant 1 : index
    %c0_311 = arith.constant 0 : index
    %205 = vector.load %arg5[%c0_306, %c0_307, %c0_308, %c0_309, %c1_310, %c0_311] : memref<1x1x2x2x42x3xbf16, #tpu.memory_space<vmem>>, vector<1x1x1x1x30x3xbf16>
    %206 = vector.shape_cast %205 : vector<1x1x1x1x30x3xbf16> to vector<30x3xbf16>
    %c34 = arith.constant 34 : index
    %c0_312 = arith.constant 0 : index
    %c0_313 = arith.constant 0 : index
    %207 = vector.load %arg7[%c34, %c0_312, %c0_313] : memref<64x3x128xbf16, #tpu.memory_space<vmem>>, vector<1x3x128xbf16>
    %208 = vector.shape_cast %207 : vector<1x3x128xbf16> to vector<3x128xbf16>
    %cst_314 = arith.constant dense<0.000000e+00> : vector<30x128xf32>
    %209 = tpu.matmul %206, %208, %cst_314 {dimension_numbers = #tpu.dot_dimension_numbers<[1], [0], [0], [1], [0, 0, 1, 1], [], []>} : vector<30x3xbf16>, vector<3x128xbf16>, vector<30x128xf32> -> vector<30x128xf32>
    %210 = arith.addf %204, %209 : vector<30x128xf32>
    %c0_315 = arith.constant 0 : index
    %c0_316 = arith.constant 0 : index
    %c0_317 = arith.constant 0 : index
    %c1_318 = arith.constant 1 : index
    %c1_319 = arith.constant 1 : index
    %c0_320 = arith.constant 0 : index
    %211 = vector.load %arg5[%c0_315, %c0_316, %c0_317, %c1_318, %c1_319, %c0_320] : memref<1x1x2x2x42x3xbf16, #tpu.memory_space<vmem>>, vector<1x1x1x1x30x3xbf16>
    %212 = vector.shape_cast %211 : vector<1x1x1x1x30x3xbf16> to vector<30x3xbf16>
    %c35 = arith.constant 35 : index
    %c0_321 = arith.constant 0 : index
    %c0_322 = arith.constant 0 : index
    %213 = vector.load %arg7[%c35, %c0_321, %c0_322] : memref<64x3x128xbf16, #tpu.memory_space<vmem>>, vector<1x3x128xbf16>
    %214 = vector.shape_cast %213 : vector<1x3x128xbf16> to vector<3x128xbf16>
    %cst_323 = arith.constant dense<0.000000e+00> : vector<30x128xf32>
    %215 = tpu.matmul %212, %214, %cst_323 {dimension_numbers = #tpu.dot_dimension_numbers<[1], [0], [0], [1], [0, 0, 1, 1], [], []>} : vector<30x3xbf16>, vector<3x128xbf16>, vector<30x128xf32> -> vector<30x128xf32>
    %216 = arith.addf %210, %215 : vector<30x128xf32>
    %c0_324 = arith.constant 0 : index
    %c0_325 = arith.constant 0 : index
    %c1_326 = arith.constant 1 : index
    %c0_327 = arith.constant 0 : index
    %c0_328 = arith.constant 0 : index
    %c0_329 = arith.constant 0 : index
    %217 = vector.load %arg5[%c0_324, %c0_325, %c1_326, %c0_327, %c0_328, %c0_329] : memref<1x1x2x2x42x3xbf16, #tpu.memory_space<vmem>>, vector<1x1x1x1x30x3xbf16>
    %218 = vector.shape_cast %217 : vector<1x1x1x1x30x3xbf16> to vector<30x3xbf16>
    %c36 = arith.constant 36 : index
    %c0_330 = arith.constant 0 : index
    %c0_331 = arith.constant 0 : index
    %219 = vector.load %arg7[%c36, %c0_330, %c0_331] : memref<64x3x128xbf16, #tpu.memory_space<vmem>>, vector<1x3x128xbf16>
    %220 = vector.shape_cast %219 : vector<1x3x128xbf16> to vector<3x128xbf16>
    %cst_332 = arith.constant dense<0.000000e+00> : vector<30x128xf32>
    %221 = tpu.matmul %218, %220, %cst_332 {dimension_numbers = #tpu.dot_dimension_numbers<[1], [0], [0], [1], [0, 0, 1, 1], [], []>} : vector<30x3xbf16>, vector<3x128xbf16>, vector<30x128xf32> -> vector<30x128xf32>
    %222 = arith.addf %216, %221 : vector<30x128xf32>
    %c0_333 = arith.constant 0 : index
    %c0_334 = arith.constant 0 : index
    %c1_335 = arith.constant 1 : index
    %c1_336 = arith.constant 1 : index
    %c0_337 = arith.constant 0 : index
    %c0_338 = arith.constant 0 : index
    %223 = vector.load %arg5[%c0_333, %c0_334, %c1_335, %c1_336, %c0_337, %c0_338] : memref<1x1x2x2x42x3xbf16, #tpu.memory_space<vmem>>, vector<1x1x1x1x30x3xbf16>
    %224 = vector.shape_cast %223 : vector<1x1x1x1x30x3xbf16> to vector<30x3xbf16>
    %c37 = arith.constant 37 : index
    %c0_339 = arith.constant 0 : index
    %c0_340 = arith.constant 0 : index
    %225 = vector.load %arg7[%c37, %c0_339, %c0_340] : memref<64x3x128xbf16, #tpu.memory_space<vmem>>, vector<1x3x128xbf16>
    %226 = vector.shape_cast %225 : vector<1x3x128xbf16> to vector<3x128xbf16>
    %cst_341 = arith.constant dense<0.000000e+00> : vector<30x128xf32>
    %227 = tpu.matmul %224, %226, %cst_341 {dimension_numbers = #tpu.dot_dimension_numbers<[1], [0], [0], [1], [0, 0, 1, 1], [], []>} : vector<30x3xbf16>, vector<3x128xbf16>, vector<30x128xf32> -> vector<30x128xf32>
    %228 = arith.addf %222, %227 : vector<30x128xf32>
    %c0_342 = arith.constant 0 : index
    %c0_343 = arith.constant 0 : index
    %c1_344 = arith.constant 1 : index
    %c0_345 = arith.constant 0 : index
    %c1_346 = arith.constant 1 : index
    %c0_347 = arith.constant 0 : index
    %229 = vector.load %arg5[%c0_342, %c0_343, %c1_344, %c0_345, %c1_346, %c0_347] : memref<1x1x2x2x42x3xbf16, #tpu.memory_space<vmem>>, vector<1x1x1x1x30x3xbf16>
    %230 = vector.shape_cast %229 : vector<1x1x1x1x30x3xbf16> to vector<30x3xbf16>
    %c38 = arith.constant 38 : index
    %c0_348 = arith.constant 0 : index
    %c0_349 = arith.constant 0 : index
    %231 = vector.load %arg7[%c38, %c0_348, %c0_349] : memref<64x3x128xbf16, #tpu.memory_space<vmem>>, vector<1x3x128xbf16>
    %232 = vector.shape_cast %231 : vector<1x3x128xbf16> to vector<3x128xbf16>
    %cst_350 = arith.constant dense<0.000000e+00> : vector<30x128xf32>
    %233 = tpu.matmul %230, %232, %cst_350 {dimension_numbers = #tpu.dot_dimension_numbers<[1], [0], [0], [1], [0, 0, 1, 1], [], []>} : vector<30x3xbf16>, vector<3x128xbf16>, vector<30x128xf32> -> vector<30x128xf32>
    %234 = arith.addf %228, %233 : vector<30x128xf32>
    %c0_351 = arith.constant 0 : index
    %c0_352 = arith.constant 0 : index
    %c1_353 = arith.constant 1 : index
    %c1_354 = arith.constant 1 : index
    %c1_355 = arith.constant 1 : index
    %c0_356 = arith.constant 0 : index
    %235 = vector.load %arg5[%c0_351, %c0_352, %c1_353, %c1_354, %c1_355, %c0_356] : memref<1x1x2x2x42x3xbf16, #tpu.memory_space<vmem>>, vector<1x1x1x1x30x3xbf16>
    %236 = vector.shape_cast %235 : vector<1x1x1x1x30x3xbf16> to vector<30x3xbf16>
    %c39 = arith.constant 39 : index
    %c0_357 = arith.constant 0 : index
    %c0_358 = arith.constant 0 : index
    %237 = vector.load %arg7[%c39, %c0_357, %c0_358] : memref<64x3x128xbf16, #tpu.memory_space<vmem>>, vector<1x3x128xbf16>
    %238 = vector.shape_cast %237 : vector<1x3x128xbf16> to vector<3x128xbf16>
    %cst_359 = arith.constant dense<0.000000e+00> : vector<30x128xf32>
    %239 = tpu.matmul %236, %238, %cst_359 {dimension_numbers = #tpu.dot_dimension_numbers<[1], [0], [0], [1], [0, 0, 1, 1], [], []>} : vector<30x3xbf16>, vector<3x128xbf16>, vector<30x128xf32> -> vector<30x128xf32>
    %240 = arith.addf %234, %239 : vector<30x128xf32>
    %c0_360 = arith.constant 0 : index
    %c0_361 = arith.constant 0 : index
    %c0_362 = arith.constant 0 : index
    %c0_363 = arith.constant 0 : index
    %c6_364 = arith.constant 6 : index
    %c0_365 = arith.constant 0 : index
    %241 = vector.load %arg5[%c0_360, %c0_361, %c0_362, %c0_363, %c6_364, %c0_365] : memref<1x1x2x2x42x3xbf16, #tpu.memory_space<vmem>>, vector<1x1x1x1x30x3xbf16>
    %242 = vector.shape_cast %241 : vector<1x1x1x1x30x3xbf16> to vector<30x3xbf16>
    %c40 = arith.constant 40 : index
    %c0_366 = arith.constant 0 : index
    %c0_367 = arith.constant 0 : index
    %243 = vector.load %arg7[%c40, %c0_366, %c0_367] : memref<64x3x128xbf16, #tpu.memory_space<vmem>>, vector<1x3x128xbf16>
    %244 = vector.shape_cast %243 : vector<1x3x128xbf16> to vector<3x128xbf16>
    %cst_368 = arith.constant dense<0.000000e+00> : vector<30x128xf32>
    %245 = tpu.matmul %242, %244, %cst_368 {dimension_numbers = #tpu.dot_dimension_numbers<[1], [0], [0], [1], [0, 0, 1, 1], [], []>} : vector<30x3xbf16>, vector<3x128xbf16>, vector<30x128xf32> -> vector<30x128xf32>
    %246 = arith.addf %240, %245 : vector<30x128xf32>
    %c0_369 = arith.constant 0 : index
    %c0_370 = arith.constant 0 : index
    %c0_371 = arith.constant 0 : index
    %c1_372 = arith.constant 1 : index
    %c6_373 = arith.constant 6 : index
    %c0_374 = arith.constant 0 : index
    %247 = vector.load %arg5[%c0_369, %c0_370, %c0_371, %c1_372, %c6_373, %c0_374] : memref<1x1x2x2x42x3xbf16, #tpu.memory_space<vmem>>, vector<1x1x1x1x30x3xbf16>
    %248 = vector.shape_cast %247 : vector<1x1x1x1x30x3xbf16> to vector<30x3xbf16>
    %c41 = arith.constant 41 : index
    %c0_375 = arith.constant 0 : index
    %c0_376 = arith.constant 0 : index
    %249 = vector.load %arg7[%c41, %c0_375, %c0_376] : memref<64x3x128xbf16, #tpu.memory_space<vmem>>, vector<1x3x128xbf16>
    %250 = vector.shape_cast %249 : vector<1x3x128xbf16> to vector<3x128xbf16>
    %cst_377 = arith.constant dense<0.000000e+00> : vector<30x128xf32>
    %251 = tpu.matmul %248, %250, %cst_377 {dimension_numbers = #tpu.dot_dimension_numbers<[1], [0], [0], [1], [0, 0, 1, 1], [], []>} : vector<30x3xbf16>, vector<3x128xbf16>, vector<30x128xf32> -> vector<30x128xf32>
    %252 = arith.addf %246, %251 : vector<30x128xf32>
    %c0_378 = arith.constant 0 : index
    %c0_379 = arith.constant 0 : index
    %c0_380 = arith.constant 0 : index
    %c0_381 = arith.constant 0 : index
    %c7_382 = arith.constant 7 : index
    %c0_383 = arith.constant 0 : index
    %253 = vector.load %arg5[%c0_378, %c0_379, %c0_380, %c0_381, %c7_382, %c0_383] : memref<1x1x2x2x42x3xbf16, #tpu.memory_space<vmem>>, vector<1x1x1x1x30x3xbf16>
    %254 = vector.shape_cast %253 : vector<1x1x1x1x30x3xbf16> to vector<30x3xbf16>
    %c42 = arith.constant 42 : index
    %c0_384 = arith.constant 0 : index
    %c0_385 = arith.constant 0 : index
    %255 = vector.load %arg7[%c42, %c0_384, %c0_385] : memref<64x3x128xbf16, #tpu.memory_space<vmem>>, vector<1x3x128xbf16>
    %256 = vector.shape_cast %255 : vector<1x3x128xbf16> to vector<3x128xbf16>
    %cst_386 = arith.constant dense<0.000000e+00> : vector<30x128xf32>
    %257 = tpu.matmul %254, %256, %cst_386 {dimension_numbers = #tpu.dot_dimension_numbers<[1], [0], [0], [1], [0, 0, 1, 1], [], []>} : vector<30x3xbf16>, vector<3x128xbf16>, vector<30x128xf32> -> vector<30x128xf32>
    %258 = arith.addf %252, %257 : vector<30x128xf32>
    %c0_387 = arith.constant 0 : index
    %c0_388 = arith.constant 0 : index
    %c0_389 = arith.constant 0 : index
    %c1_390 = arith.constant 1 : index
    %c7_391 = arith.constant 7 : index
    %c0_392 = arith.constant 0 : index
    %259 = vector.load %arg5[%c0_387, %c0_388, %c0_389, %c1_390, %c7_391, %c0_392] : memref<1x1x2x2x42x3xbf16, #tpu.memory_space<vmem>>, vector<1x1x1x1x30x3xbf16>
    %260 = vector.shape_cast %259 : vector<1x1x1x1x30x3xbf16> to vector<30x3xbf16>
    %c43 = arith.constant 43 : index
    %c0_393 = arith.constant 0 : index
    %c0_394 = arith.constant 0 : index
    %261 = vector.load %arg7[%c43, %c0_393, %c0_394] : memref<64x3x128xbf16, #tpu.memory_space<vmem>>, vector<1x3x128xbf16>
    %262 = vector.shape_cast %261 : vector<1x3x128xbf16> to vector<3x128xbf16>
    %cst_395 = arith.constant dense<0.000000e+00> : vector<30x128xf32>
    %263 = tpu.matmul %260, %262, %cst_395 {dimension_numbers = #tpu.dot_dimension_numbers<[1], [0], [0], [1], [0, 0, 1, 1], [], []>} : vector<30x3xbf16>, vector<3x128xbf16>, vector<30x128xf32> -> vector<30x128xf32>
    %264 = arith.addf %258, %263 : vector<30x128xf32>
    %c0_396 = arith.constant 0 : index
    %c0_397 = arith.constant 0 : index
    %c1_398 = arith.constant 1 : index
    %c0_399 = arith.constant 0 : index
    %c6_400 = arith.constant 6 : index
    %c0_401 = arith.constant 0 : index
    %265 = vector.load %arg5[%c0_396, %c0_397, %c1_398, %c0_399, %c6_400, %c0_401] : memref<1x1x2x2x42x3xbf16, #tpu.memory_space<vmem>>, vector<1x1x1x1x30x3xbf16>
    %266 = vector.shape_cast %265 : vector<1x1x1x1x30x3xbf16> to vector<30x3xbf16>
    %c44 = arith.constant 44 : index
    %c0_402 = arith.constant 0 : index
    %c0_403 = arith.constant 0 : index
    %267 = vector.load %arg7[%c44, %c0_402, %c0_403] : memref<64x3x128xbf16, #tpu.memory_space<vmem>>, vector<1x3x128xbf16>
    %268 = vector.shape_cast %267 : vector<1x3x128xbf16> to vector<3x128xbf16>
    %cst_404 = arith.constant dense<0.000000e+00> : vector<30x128xf32>
    %269 = tpu.matmul %266, %268, %cst_404 {dimension_numbers = #tpu.dot_dimension_numbers<[1], [0], [0], [1], [0, 0, 1, 1], [], []>} : vector<30x3xbf16>, vector<3x128xbf16>, vector<30x128xf32> -> vector<30x128xf32>
    %270 = arith.addf %264, %269 : vector<30x128xf32>
    %c0_405 = arith.constant 0 : index
    %c0_406 = arith.constant 0 : index
    %c1_407 = arith.constant 1 : index
    %c1_408 = arith.constant 1 : index
    %c6_409 = arith.constant 6 : index
    %c0_410 = arith.constant 0 : index
    %271 = vector.load %arg5[%c0_405, %c0_406, %c1_407, %c1_408, %c6_409, %c0_410] : memref<1x1x2x2x42x3xbf16, #tpu.memory_space<vmem>>, vector<1x1x1x1x30x3xbf16>
    %272 = vector.shape_cast %271 : vector<1x1x1x1x30x3xbf16> to vector<30x3xbf16>
    %c45 = arith.constant 45 : index
    %c0_411 = arith.constant 0 : index
    %c0_412 = arith.constant 0 : index
    %273 = vector.load %arg7[%c45, %c0_411, %c0_412] : memref<64x3x128xbf16, #tpu.memory_space<vmem>>, vector<1x3x128xbf16>
    %274 = vector.shape_cast %273 : vector<1x3x128xbf16> to vector<3x128xbf16>
    %cst_413 = arith.constant dense<0.000000e+00> : vector<30x128xf32>
    %275 = tpu.matmul %272, %274, %cst_413 {dimension_numbers = #tpu.dot_dimension_numbers<[1], [0], [0], [1], [0, 0, 1, 1], [], []>} : vector<30x3xbf16>, vector<3x128xbf16>, vector<30x128xf32> -> vector<30x128xf32>
    %276 = arith.addf %270, %275 : vector<30x128xf32>
    %c0_414 = arith.constant 0 : index
    %c0_415 = arith.constant 0 : index
    %c1_416 = arith.constant 1 : index
    %c0_417 = arith.constant 0 : index
    %c7_418 = arith.constant 7 : index
    %c0_419 = arith.constant 0 : index
    %277 = vector.load %arg5[%c0_414, %c0_415, %c1_416, %c0_417, %c7_418, %c0_419] : memref<1x1x2x2x42x3xbf16, #tpu.memory_space<vmem>>, vector<1x1x1x1x30x3xbf16>
    %278 = vector.shape_cast %277 : vector<1x1x1x1x30x3xbf16> to vector<30x3xbf16>
    %c46 = arith.constant 46 : index
    %c0_420 = arith.constant 0 : index
    %c0_421 = arith.constant 0 : index
    %279 = vector.load %arg7[%c46, %c0_420, %c0_421] : memref<64x3x128xbf16, #tpu.memory_space<vmem>>, vector<1x3x128xbf16>
    %280 = vector.shape_cast %279 : vector<1x3x128xbf16> to vector<3x128xbf16>
    %cst_422 = arith.constant dense<0.000000e+00> : vector<30x128xf32>
    %281 = tpu.matmul %278, %280, %cst_422 {dimension_numbers = #tpu.dot_dimension_numbers<[1], [0], [0], [1], [0, 0, 1, 1], [], []>} : vector<30x3xbf16>, vector<3x128xbf16>, vector<30x128xf32> -> vector<30x128xf32>
    %282 = arith.addf %276, %281 : vector<30x128xf32>
    %c0_423 = arith.constant 0 : index
    %c0_424 = arith.constant 0 : index
    %c1_425 = arith.constant 1 : index
    %c1_426 = arith.constant 1 : index
    %c7_427 = arith.constant 7 : index
    %c0_428 = arith.constant 0 : index
    %283 = vector.load %arg5[%c0_423, %c0_424, %c1_425, %c1_426, %c7_427, %c0_428] : memref<1x1x2x2x42x3xbf16, #tpu.memory_space<vmem>>, vector<1x1x1x1x30x3xbf16>
    %284 = vector.shape_cast %283 : vector<1x1x1x1x30x3xbf16> to vector<30x3xbf16>
    %c47 = arith.constant 47 : index
    %c0_429 = arith.constant 0 : index
    %c0_430 = arith.constant 0 : index
    %285 = vector.load %arg7[%c47, %c0_429, %c0_430] : memref<64x3x128xbf16, #tpu.memory_space<vmem>>, vector<1x3x128xbf16>
    %286 = vector.shape_cast %285 : vector<1x3x128xbf16> to vector<3x128xbf16>
    %cst_431 = arith.constant dense<0.000000e+00> : vector<30x128xf32>
    %287 = tpu.matmul %284, %286, %cst_431 {dimension_numbers = #tpu.dot_dimension_numbers<[1], [0], [0], [1], [0, 0, 1, 1], [], []>} : vector<30x3xbf16>, vector<3x128xbf16>, vector<30x128xf32> -> vector<30x128xf32>
    %288 = arith.addf %282, %287 : vector<30x128xf32>
    %c0_432 = arith.constant 0 : index
    %c0_433 = arith.constant 0 : index
    %c0_434 = arith.constant 0 : index
    %c0_435 = arith.constant 0 : index
    %c0_436 = arith.constant 0 : index
    %c0_437 = arith.constant 0 : index
    %289 = vector.load %arg6[%c0_432, %c0_433, %c0_434, %c0_435, %c0_436, %c0_437] : memref<1x1x2x2x42x3xbf16, #tpu.memory_space<vmem>>, vector<1x1x1x1x30x3xbf16>
    %290 = vector.shape_cast %289 : vector<1x1x1x1x30x3xbf16> to vector<30x3xbf16>
    %c48 = arith.constant 48 : index
    %c0_438 = arith.constant 0 : index
    %c0_439 = arith.constant 0 : index
    %291 = vector.load %arg7[%c48, %c0_438, %c0_439] : memref<64x3x128xbf16, #tpu.memory_space<vmem>>, vector<1x3x128xbf16>
    %292 = vector.shape_cast %291 : vector<1x3x128xbf16> to vector<3x128xbf16>
    %cst_440 = arith.constant dense<0.000000e+00> : vector<30x128xf32>
    %293 = tpu.matmul %290, %292, %cst_440 {dimension_numbers = #tpu.dot_dimension_numbers<[1], [0], [0], [1], [0, 0, 1, 1], [], []>} : vector<30x3xbf16>, vector<3x128xbf16>, vector<30x128xf32> -> vector<30x128xf32>
    %294 = arith.addf %288, %293 : vector<30x128xf32>
    %c0_441 = arith.constant 0 : index
    %c0_442 = arith.constant 0 : index
    %c0_443 = arith.constant 0 : index
    %c1_444 = arith.constant 1 : index
    %c0_445 = arith.constant 0 : index
    %c0_446 = arith.constant 0 : index
    %295 = vector.load %arg6[%c0_441, %c0_442, %c0_443, %c1_444, %c0_445, %c0_446] : memref<1x1x2x2x42x3xbf16, #tpu.memory_space<vmem>>, vector<1x1x1x1x30x3xbf16>
    %296 = vector.shape_cast %295 : vector<1x1x1x1x30x3xbf16> to vector<30x3xbf16>
    %c49 = arith.constant 49 : index
    %c0_447 = arith.constant 0 : index
    %c0_448 = arith.constant 0 : index
    %297 = vector.load %arg7[%c49, %c0_447, %c0_448] : memref<64x3x128xbf16, #tpu.memory_space<vmem>>, vector<1x3x128xbf16>
    %298 = vector.shape_cast %297 : vector<1x3x128xbf16> to vector<3x128xbf16>
    %cst_449 = arith.constant dense<0.000000e+00> : vector<30x128xf32>
    %299 = tpu.matmul %296, %298, %cst_449 {dimension_numbers = #tpu.dot_dimension_numbers<[1], [0], [0], [1], [0, 0, 1, 1], [], []>} : vector<30x3xbf16>, vector<3x128xbf16>, vector<30x128xf32> -> vector<30x128xf32>
    %300 = arith.addf %294, %299 : vector<30x128xf32>
    %c0_450 = arith.constant 0 : index
    %c0_451 = arith.constant 0 : index
    %c0_452 = arith.constant 0 : index
    %c0_453 = arith.constant 0 : index
    %c1_454 = arith.constant 1 : index
    %c0_455 = arith.constant 0 : index
    %301 = vector.load %arg6[%c0_450, %c0_451, %c0_452, %c0_453, %c1_454, %c0_455] : memref<1x1x2x2x42x3xbf16, #tpu.memory_space<vmem>>, vector<1x1x1x1x30x3xbf16>
    %302 = vector.shape_cast %301 : vector<1x1x1x1x30x3xbf16> to vector<30x3xbf16>
    %c50 = arith.constant 50 : index
    %c0_456 = arith.constant 0 : index
    %c0_457 = arith.constant 0 : index
    %303 = vector.load %arg7[%c50, %c0_456, %c0_457] : memref<64x3x128xbf16, #tpu.memory_space<vmem>>, vector<1x3x128xbf16>
    %304 = vector.shape_cast %303 : vector<1x3x128xbf16> to vector<3x128xbf16>
    %cst_458 = arith.constant dense<0.000000e+00> : vector<30x128xf32>
    %305 = tpu.matmul %302, %304, %cst_458 {dimension_numbers = #tpu.dot_dimension_numbers<[1], [0], [0], [1], [0, 0, 1, 1], [], []>} : vector<30x3xbf16>, vector<3x128xbf16>, vector<30x128xf32> -> vector<30x128xf32>
    %306 = arith.addf %300, %305 : vector<30x128xf32>
    %c0_459 = arith.constant 0 : index
    %c0_460 = arith.constant 0 : index
    %c0_461 = arith.constant 0 : index
    %c1_462 = arith.constant 1 : index
    %c1_463 = arith.constant 1 : index
    %c0_464 = arith.constant 0 : index
    %307 = vector.load %arg6[%c0_459, %c0_460, %c0_461, %c1_462, %c1_463, %c0_464] : memref<1x1x2x2x42x3xbf16, #tpu.memory_space<vmem>>, vector<1x1x1x1x30x3xbf16>
    %308 = vector.shape_cast %307 : vector<1x1x1x1x30x3xbf16> to vector<30x3xbf16>
    %c51 = arith.constant 51 : index
    %c0_465 = arith.constant 0 : index
    %c0_466 = arith.constant 0 : index
    %309 = vector.load %arg7[%c51, %c0_465, %c0_466] : memref<64x3x128xbf16, #tpu.memory_space<vmem>>, vector<1x3x128xbf16>
    %310 = vector.shape_cast %309 : vector<1x3x128xbf16> to vector<3x128xbf16>
    %cst_467 = arith.constant dense<0.000000e+00> : vector<30x128xf32>
    %311 = tpu.matmul %308, %310, %cst_467 {dimension_numbers = #tpu.dot_dimension_numbers<[1], [0], [0], [1], [0, 0, 1, 1], [], []>} : vector<30x3xbf16>, vector<3x128xbf16>, vector<30x128xf32> -> vector<30x128xf32>
    %312 = arith.addf %306, %311 : vector<30x128xf32>
    %c0_468 = arith.constant 0 : index
    %c0_469 = arith.constant 0 : index
    %c1_470 = arith.constant 1 : index
    %c0_471 = arith.constant 0 : index
    %c0_472 = arith.constant 0 : index
    %c0_473 = arith.constant 0 : index
    %313 = vector.load %arg6[%c0_468, %c0_469, %c1_470, %c0_471, %c0_472, %c0_473] : memref<1x1x2x2x42x3xbf16, #tpu.memory_space<vmem>>, vector<1x1x1x1x30x3xbf16>
    %314 = vector.shape_cast %313 : vector<1x1x1x1x30x3xbf16> to vector<30x3xbf16>
    %c52 = arith.constant 52 : index
    %c0_474 = arith.constant 0 : index
    %c0_475 = arith.constant 0 : index
    %315 = vector.load %arg7[%c52, %c0_474, %c0_475] : memref<64x3x128xbf16, #tpu.memory_space<vmem>>, vector<1x3x128xbf16>
    %316 = vector.shape_cast %315 : vector<1x3x128xbf16> to vector<3x128xbf16>
    %cst_476 = arith.constant dense<0.000000e+00> : vector<30x128xf32>
    %317 = tpu.matmul %314, %316, %cst_476 {dimension_numbers = #tpu.dot_dimension_numbers<[1], [0], [0], [1], [0, 0, 1, 1], [], []>} : vector<30x3xbf16>, vector<3x128xbf16>, vector<30x128xf32> -> vector<30x128xf32>
    %318 = arith.addf %312, %317 : vector<30x128xf32>
    %c0_477 = arith.constant 0 : index
    %c0_478 = arith.constant 0 : index
    %c1_479 = arith.constant 1 : index
    %c1_480 = arith.constant 1 : index
    %c0_481 = arith.constant 0 : index
    %c0_482 = arith.constant 0 : index
    %319 = vector.load %arg6[%c0_477, %c0_478, %c1_479, %c1_480, %c0_481, %c0_482] : memref<1x1x2x2x42x3xbf16, #tpu.memory_space<vmem>>, vector<1x1x1x1x30x3xbf16>
    %320 = vector.shape_cast %319 : vector<1x1x1x1x30x3xbf16> to vector<30x3xbf16>
    %c53 = arith.constant 53 : index
    %c0_483 = arith.constant 0 : index
    %c0_484 = arith.constant 0 : index
    %321 = vector.load %arg7[%c53, %c0_483, %c0_484] : memref<64x3x128xbf16, #tpu.memory_space<vmem>>, vector<1x3x128xbf16>
    %322 = vector.shape_cast %321 : vector<1x3x128xbf16> to vector<3x128xbf16>
    %cst_485 = arith.constant dense<0.000000e+00> : vector<30x128xf32>
    %323 = tpu.matmul %320, %322, %cst_485 {dimension_numbers = #tpu.dot_dimension_numbers<[1], [0], [0], [1], [0, 0, 1, 1], [], []>} : vector<30x3xbf16>, vector<3x128xbf16>, vector<30x128xf32> -> vector<30x128xf32>
    %324 = arith.addf %318, %323 : vector<30x128xf32>
    %c0_486 = arith.constant 0 : index
    %c0_487 = arith.constant 0 : index
    %c1_488 = arith.constant 1 : index
    %c0_489 = arith.constant 0 : index
    %c1_490 = arith.constant 1 : index
    %c0_491 = arith.constant 0 : index
    %325 = vector.load %arg6[%c0_486, %c0_487, %c1_488, %c0_489, %c1_490, %c0_491] : memref<1x1x2x2x42x3xbf16, #tpu.memory_space<vmem>>, vector<1x1x1x1x30x3xbf16>
    %326 = vector.shape_cast %325 : vector<1x1x1x1x30x3xbf16> to vector<30x3xbf16>
    %c54 = arith.constant 54 : index
    %c0_492 = arith.constant 0 : index
    %c0_493 = arith.constant 0 : index
    %327 = vector.load %arg7[%c54, %c0_492, %c0_493] : memref<64x3x128xbf16, #tpu.memory_space<vmem>>, vector<1x3x128xbf16>
    %328 = vector.shape_cast %327 : vector<1x3x128xbf16> to vector<3x128xbf16>
    %cst_494 = arith.constant dense<0.000000e+00> : vector<30x128xf32>
    %329 = tpu.matmul %326, %328, %cst_494 {dimension_numbers = #tpu.dot_dimension_numbers<[1], [0], [0], [1], [0, 0, 1, 1], [], []>} : vector<30x3xbf16>, vector<3x128xbf16>, vector<30x128xf32> -> vector<30x128xf32>
    %330 = arith.addf %324, %329 : vector<30x128xf32>
    %c0_495 = arith.constant 0 : index
    %c0_496 = arith.constant 0 : index
    %c1_497 = arith.constant 1 : index
    %c1_498 = arith.constant 1 : index
    %c1_499 = arith.constant 1 : index
    %c0_500 = arith.constant 0 : index
    %331 = vector.load %arg6[%c0_495, %c0_496, %c1_497, %c1_498, %c1_499, %c0_500] : memref<1x1x2x2x42x3xbf16, #tpu.memory_space<vmem>>, vector<1x1x1x1x30x3xbf16>
    %332 = vector.shape_cast %331 : vector<1x1x1x1x30x3xbf16> to vector<30x3xbf16>
    %c55 = arith.constant 55 : index
    %c0_501 = arith.constant 0 : index
    %c0_502 = arith.constant 0 : index
    %333 = vector.load %arg7[%c55, %c0_501, %c0_502] : memref<64x3x128xbf16, #tpu.memory_space<vmem>>, vector<1x3x128xbf16>
    %334 = vector.shape_cast %333 : vector<1x3x128xbf16> to vector<3x128xbf16>
    %cst_503 = arith.constant dense<0.000000e+00> : vector<30x128xf32>
    %335 = tpu.matmul %332, %334, %cst_503 {dimension_numbers = #tpu.dot_dimension_numbers<[1], [0], [0], [1], [0, 0, 1, 1], [], []>} : vector<30x3xbf16>, vector<3x128xbf16>, vector<30x128xf32> -> vector<30x128xf32>
    %336 = arith.addf %330, %335 : vector<30x128xf32>
    %c0_504 = arith.constant 0 : index
    %c0_505 = arith.constant 0 : index
    %c0_506 = arith.constant 0 : index
    %c0_507 = arith.constant 0 : index
    %c6_508 = arith.constant 6 : index
    %c0_509 = arith.constant 0 : index
    %337 = vector.load %arg6[%c0_504, %c0_505, %c0_506, %c0_507, %c6_508, %c0_509] : memref<1x1x2x2x42x3xbf16, #tpu.memory_space<vmem>>, vector<1x1x1x1x30x3xbf16>
    %338 = vector.shape_cast %337 : vector<1x1x1x1x30x3xbf16> to vector<30x3xbf16>
    %c56 = arith.constant 56 : index
    %c0_510 = arith.constant 0 : index
    %c0_511 = arith.constant 0 : index
    %339 = vector.load %arg7[%c56, %c0_510, %c0_511] : memref<64x3x128xbf16, #tpu.memory_space<vmem>>, vector<1x3x128xbf16>
    %340 = vector.shape_cast %339 : vector<1x3x128xbf16> to vector<3x128xbf16>
    %cst_512 = arith.constant dense<0.000000e+00> : vector<30x128xf32>
    %341 = tpu.matmul %338, %340, %cst_512 {dimension_numbers = #tpu.dot_dimension_numbers<[1], [0], [0], [1], [0, 0, 1, 1], [], []>} : vector<30x3xbf16>, vector<3x128xbf16>, vector<30x128xf32> -> vector<30x128xf32>
    %342 = arith.addf %336, %341 : vector<30x128xf32>
    %c0_513 = arith.constant 0 : index
    %c0_514 = arith.constant 0 : index
    %c0_515 = arith.constant 0 : index
    %c1_516 = arith.constant 1 : index
    %c6_517 = arith.constant 6 : index
    %c0_518 = arith.constant 0 : index
    %343 = vector.load %arg6[%c0_513, %c0_514, %c0_515, %c1_516, %c6_517, %c0_518] : memref<1x1x2x2x42x3xbf16, #tpu.memory_space<vmem>>, vector<1x1x1x1x30x3xbf16>
    %344 = vector.shape_cast %343 : vector<1x1x1x1x30x3xbf16> to vector<30x3xbf16>
    %c57 = arith.constant 57 : index
    %c0_519 = arith.constant 0 : index
    %c0_520 = arith.constant 0 : index
    %345 = vector.load %arg7[%c57, %c0_519, %c0_520] : memref<64x3x128xbf16, #tpu.memory_space<vmem>>, vector<1x3x128xbf16>
    %346 = vector.shape_cast %345 : vector<1x3x128xbf16> to vector<3x128xbf16>
    %cst_521 = arith.constant dense<0.000000e+00> : vector<30x128xf32>
    %347 = tpu.matmul %344, %346, %cst_521 {dimension_numbers = #tpu.dot_dimension_numbers<[1], [0], [0], [1], [0, 0, 1, 1], [], []>} : vector<30x3xbf16>, vector<3x128xbf16>, vector<30x128xf32> -> vector<30x128xf32>
    %348 = arith.addf %342, %347 : vector<30x128xf32>
    %c0_522 = arith.constant 0 : index
    %c0_523 = arith.constant 0 : index
    %c0_524 = arith.constant 0 : index
    %c0_525 = arith.constant 0 : index
    %c7_526 = arith.constant 7 : index
    %c0_527 = arith.constant 0 : index
    %349 = vector.load %arg6[%c0_522, %c0_523, %c0_524, %c0_525, %c7_526, %c0_527] : memref<1x1x2x2x42x3xbf16, #tpu.memory_space<vmem>>, vector<1x1x1x1x30x3xbf16>
    %350 = vector.shape_cast %349 : vector<1x1x1x1x30x3xbf16> to vector<30x3xbf16>
    %c58 = arith.constant 58 : index
    %c0_528 = arith.constant 0 : index
    %c0_529 = arith.constant 0 : index
    %351 = vector.load %arg7[%c58, %c0_528, %c0_529] : memref<64x3x128xbf16, #tpu.memory_space<vmem>>, vector<1x3x128xbf16>
    %352 = vector.shape_cast %351 : vector<1x3x128xbf16> to vector<3x128xbf16>
    %cst_530 = arith.constant dense<0.000000e+00> : vector<30x128xf32>
    %353 = tpu.matmul %350, %352, %cst_530 {dimension_numbers = #tpu.dot_dimension_numbers<[1], [0], [0], [1], [0, 0, 1, 1], [], []>} : vector<30x3xbf16>, vector<3x128xbf16>, vector<30x128xf32> -> vector<30x128xf32>
    %354 = arith.addf %348, %353 : vector<30x128xf32>
    %c0_531 = arith.constant 0 : index
    %c0_532 = arith.constant 0 : index
    %c0_533 = arith.constant 0 : index
    %c1_534 = arith.constant 1 : index
    %c7_535 = arith.constant 7 : index
    %c0_536 = arith.constant 0 : index
    %355 = vector.load %arg6[%c0_531, %c0_532, %c0_533, %c1_534, %c7_535, %c0_536] : memref<1x1x2x2x42x3xbf16, #tpu.memory_space<vmem>>, vector<1x1x1x1x30x3xbf16>
    %356 = vector.shape_cast %355 : vector<1x1x1x1x30x3xbf16> to vector<30x3xbf16>
    %c59 = arith.constant 59 : index
    %c0_537 = arith.constant 0 : index
    %c0_538 = arith.constant 0 : index
    %357 = vector.load %arg7[%c59, %c0_537, %c0_538] : memref<64x3x128xbf16, #tpu.memory_space<vmem>>, vector<1x3x128xbf16>
    %358 = vector.shape_cast %357 : vector<1x3x128xbf16> to vector<3x128xbf16>
    %cst_539 = arith.constant dense<0.000000e+00> : vector<30x128xf32>
    %359 = tpu.matmul %356, %358, %cst_539 {dimension_numbers = #tpu.dot_dimension_numbers<[1], [0], [0], [1], [0, 0, 1, 1], [], []>} : vector<30x3xbf16>, vector<3x128xbf16>, vector<30x128xf32> -> vector<30x128xf32>
    %360 = arith.addf %354, %359 : vector<30x128xf32>
    %c0_540 = arith.constant 0 : index
    %c0_541 = arith.constant 0 : index
    %c1_542 = arith.constant 1 : index
    %c0_543 = arith.constant 0 : index
    %c6_544 = arith.constant 6 : index
    %c0_545 = arith.constant 0 : index
    %361 = vector.load %arg6[%c0_540, %c0_541, %c1_542, %c0_543, %c6_544, %c0_545] : memref<1x1x2x2x42x3xbf16, #tpu.memory_space<vmem>>, vector<1x1x1x1x30x3xbf16>
    %362 = vector.shape_cast %361 : vector<1x1x1x1x30x3xbf16> to vector<30x3xbf16>
    %c60 = arith.constant 60 : index
    %c0_546 = arith.constant 0 : index
    %c0_547 = arith.constant 0 : index
    %363 = vector.load %arg7[%c60, %c0_546, %c0_547] : memref<64x3x128xbf16, #tpu.memory_space<vmem>>, vector<1x3x128xbf16>
    %364 = vector.shape_cast %363 : vector<1x3x128xbf16> to vector<3x128xbf16>
    %cst_548 = arith.constant dense<0.000000e+00> : vector<30x128xf32>
    %365 = tpu.matmul %362, %364, %cst_548 {dimension_numbers = #tpu.dot_dimension_numbers<[1], [0], [0], [1], [0, 0, 1, 1], [], []>} : vector<30x3xbf16>, vector<3x128xbf16>, vector<30x128xf32> -> vector<30x128xf32>
    %366 = arith.addf %360, %365 : vector<30x128xf32>
    %c0_549 = arith.constant 0 : index
    %c0_550 = arith.constant 0 : index
    %c1_551 = arith.constant 1 : index
    %c1_552 = arith.constant 1 : index
    %c6_553 = arith.constant 6 : index
    %c0_554 = arith.constant 0 : index
    %367 = vector.load %arg6[%c0_549, %c0_550, %c1_551, %c1_552, %c6_553, %c0_554] : memref<1x1x2x2x42x3xbf16, #tpu.memory_space<vmem>>, vector<1x1x1x1x30x3xbf16>
    %368 = vector.shape_cast %367 : vector<1x1x1x1x30x3xbf16> to vector<30x3xbf16>
    %c61 = arith.constant 61 : index
    %c0_555 = arith.constant 0 : index
    %c0_556 = arith.constant 0 : index
    %369 = vector.load %arg7[%c61, %c0_555, %c0_556] : memref<64x3x128xbf16, #tpu.memory_space<vmem>>, vector<1x3x128xbf16>
    %370 = vector.shape_cast %369 : vector<1x3x128xbf16> to vector<3x128xbf16>
    %cst_557 = arith.constant dense<0.000000e+00> : vector<30x128xf32>
    %371 = tpu.matmul %368, %370, %cst_557 {dimension_numbers = #tpu.dot_dimension_numbers<[1], [0], [0], [1], [0, 0, 1, 1], [], []>} : vector<30x3xbf16>, vector<3x128xbf16>, vector<30x128xf32> -> vector<30x128xf32>
    %372 = arith.addf %366, %371 : vector<30x128xf32>
    %c0_558 = arith.constant 0 : index
    %c0_559 = arith.constant 0 : index
    %c1_560 = arith.constant 1 : index
    %c0_561 = arith.constant 0 : index
    %c7_562 = arith.constant 7 : index
    %c0_563 = arith.constant 0 : index
    %373 = vector.load %arg6[%c0_558, %c0_559, %c1_560, %c0_561, %c7_562, %c0_563] : memref<1x1x2x2x42x3xbf16, #tpu.memory_space<vmem>>, vector<1x1x1x1x30x3xbf16>
    %374 = vector.shape_cast %373 : vector<1x1x1x1x30x3xbf16> to vector<30x3xbf16>
    %c62 = arith.constant 62 : index
    %c0_564 = arith.constant 0 : index
    %c0_565 = arith.constant 0 : index
    %375 = vector.load %arg7[%c62, %c0_564, %c0_565] : memref<64x3x128xbf16, #tpu.memory_space<vmem>>, vector<1x3x128xbf16>
    %376 = vector.shape_cast %375 : vector<1x3x128xbf16> to vector<3x128xbf16>
    %cst_566 = arith.constant dense<0.000000e+00> : vector<30x128xf32>
    %377 = tpu.matmul %374, %376, %cst_566 {dimension_numbers = #tpu.dot_dimension_numbers<[1], [0], [0], [1], [0, 0, 1, 1], [], []>} : vector<30x3xbf16>, vector<3x128xbf16>, vector<30x128xf32> -> vector<30x128xf32>
    %378 = arith.addf %372, %377 : vector<30x128xf32>
    %c0_567 = arith.constant 0 : index
    %c0_568 = arith.constant 0 : index
    %c1_569 = arith.constant 1 : index
    %c1_570 = arith.constant 1 : index
    %c7_571 = arith.constant 7 : index
    %c0_572 = arith.constant 0 : index
    %379 = vector.load %arg6[%c0_567, %c0_568, %c1_569, %c1_570, %c7_571, %c0_572] : memref<1x1x2x2x42x3xbf16, #tpu.memory_space<vmem>>, vector<1x1x1x1x30x3xbf16>
    %380 = vector.shape_cast %379 : vector<1x1x1x1x30x3xbf16> to vector<30x3xbf16>
    %c63 = arith.constant 63 : index
    %c0_573 = arith.constant 0 : index
    %c0_574 = arith.constant 0 : index
    %381 = vector.load %arg7[%c63, %c0_573, %c0_574] : memref<64x3x128xbf16, #tpu.memory_space<vmem>>, vector<1x3x128xbf16>
    %382 = vector.shape_cast %381 : vector<1x3x128xbf16> to vector<3x128xbf16>
    %cst_575 = arith.constant dense<0.000000e+00> : vector<30x128xf32>
    %383 = tpu.matmul %380, %382, %cst_575 {dimension_numbers = #tpu.dot_dimension_numbers<[1], [0], [0], [1], [0, 0, 1, 1], [], []>} : vector<30x3xbf16>, vector<3x128xbf16>, vector<30x128xf32> -> vector<30x128xf32>
    %384 = arith.addf %378, %383 : vector<30x128xf32>
    %c0_576 = arith.constant 0 : index
    %c0_577 = arith.constant 0 : index
    %385 = vector.load %arg8[%c0_576, %c0_577] : memref<1x128xf32, #tpu.memory_space<vmem>>, vector<1x128xf32>
    %386 = vector.broadcast %385 : vector<1x128xf32> to vector<30x128xf32>
    %387 = arith.addf %384, %386 : vector<30x128xf32>
    %cst_578 = arith.constant 0.000000e+00 : f32
    %388 = vector.broadcast %cst_578 : f32 to vector<30x128xf32>
    %389 = arith.cmpf ogt, %387, %388 : vector<30x128xf32>
    %cst_579 = arith.constant 2.000000e-01 : f32
    %390 = vector.broadcast %cst_579 : f32 to vector<30x128xf32>
    %391 = arith.mulf %390, %387 : vector<30x128xf32>
    %392 = arith.select %389, %387, %391 : vector<30x128xi1>, vector<30x128xf32>
    %c0_580 = arith.constant 0 : index
    %c0_581 = arith.constant 0 : index
    %c0_582 = arith.constant 0 : index
    %c0_583 = arith.constant 0 : index
    %393 = vector.load %arg9[%c0_580, %c0_581, %c0_582, %c0_583] : memref<1x1x30x128xf32, #tpu.memory_space<vmem>>, vector<1x1x30x128xf32>
    %394 = vector.shape_cast %393 : vector<1x1x30x128xf32> to vector<30x128xf32>
    %395 = vector.shape_cast %392 : vector<30x128xf32> to vector<1x1x30x128xf32>
    tpu.vector_store %arg9[%c0_580, %c0_581, %c0_582, %c0_583], %395 {strides = array<i32>} : memref<1x1x30x128xf32, #tpu.memory_space<vmem>>, vector<1x1x30x128xf32>,
    return
  }
  func.func @transform_0(%arg0: i32, %arg1: i32, %arg2: i32) -> (i32, i32, i32, i32, i32, i32) {
    %c2_i32 = arith.constant 2 : i32
    %0 = arith.muli %c2_i32, %arg2 : i32
    %c0_i32 = arith.constant 0 : i32
    %1 = arith.addi %0, %c0_i32 : i32
    %c0_i32_0 = arith.constant 0 : i32
    %c0_i32_1 = arith.constant 0 : i32
    %c0_i32_2 = arith.constant 0 : i32
    %c0_i32_3 = arith.constant 0 : i32
    %c0_i32_4 = arith.constant 0 : i32
    return %arg1, %1, %c0_i32_0, %c0_i32_1, %c0_i32_2, %c0_i32_3 : i32, i32, i32, i32, i32, i32
  }
  func.func @transform_1(%arg0: i32, %arg1: i32, %arg2: i32) -> (i32, i32, i32, i32, i32, i32) {
    %c2_i32 = arith.constant 2 : i32
    %0 = arith.muli %c2_i32, %arg2 : i32
    %c1_i32 = arith.constant 1 : i32
    %1 = arith.addi %0, %c1_i32 : i32
    %c0_i32 = arith.constant 0 : i32
    %c0_i32_0 = arith.constant 0 : i32
    %c0_i32_1 = arith.constant 0 : i32
    %c0_i32_2 = arith.constant 0 : i32
    %c0_i32_3 = arith.constant 0 : i32
    return %arg1, %1, %c0_i32, %c0_i32_0, %c0_i32_1, %c0_i32_2 : i32, i32, i32, i32, i32, i32
  }
  func.func @transform_2(%arg0: i32, %arg1: i32, %arg2: i32) -> (i32, i32, i32, i32, i32, i32) {
    %c2_i32 = arith.constant 2 : i32
    %0 = arith.muli %c2_i32, %arg2 : i32
    %c2_i32_0 = arith.constant 2 : i32
    %1 = arith.addi %0, %c2_i32_0 : i32
    %c0_i32 = arith.constant 0 : i32
    %c0_i32_1 = arith.constant 0 : i32
    %c0_i32_2 = arith.constant 0 : i32
    %c0_i32_3 = arith.constant 0 : i32
    %c0_i32_4 = arith.constant 0 : i32
    return %arg1, %1, %c0_i32, %c0_i32_1, %c0_i32_2, %c0_i32_3 : i32, i32, i32, i32, i32, i32
  }
  func.func @transform_3(%arg0: i32, %arg1: i32, %arg2: i32) -> (i32, i32, i32, i32, i32, i32) {
    %c2_i32 = arith.constant 2 : i32
    %0 = arith.muli %c2_i32, %arg2 : i32
    %c3_i32 = arith.constant 3 : i32
    %1 = arith.addi %0, %c3_i32 : i32
    %c0_i32 = arith.constant 0 : i32
    %c0_i32_0 = arith.constant 0 : i32
    %c0_i32_1 = arith.constant 0 : i32
    %c0_i32_2 = arith.constant 0 : i32
    %c0_i32_3 = arith.constant 0 : i32
    return %arg1, %1, %c0_i32, %c0_i32_0, %c0_i32_1, %c0_i32_2 : i32, i32, i32, i32, i32, i32
  }
  func.func @transform_4(%arg0: i32, %arg1: i32, %arg2: i32) -> (i32, i32, i32) {
    %c0_i32 = arith.constant 0 : i32
    %c0_i32_0 = arith.constant 0 : i32
    %c0_i32_1 = arith.constant 0 : i32
    return %c0_i32, %c0_i32_0, %arg0 : i32, i32, i32
  }
  func.func @transform_5(%arg0: i32, %arg1: i32, %arg2: i32) -> (i32, i32) {
    %c0_i32 = arith.constant 0 : i32
    %c0_i32_0 = arith.constant 0 : i32
    return %c0_i32, %arg0 : i32, i32
  }
  func.func @transform_6(%arg0: i32, %arg1: i32, %arg2: i32) -> (i32, i32, i32, i32) {
    %c0_i32 = arith.constant 0 : i32
    %c0_i32_0 = arith.constant 0 : i32
    return %arg1, %arg2, %c0_i32, %arg0 : i32, i32, i32, i32
  }
}

</mosaic_0001>

<bundles_post_ra>
// kernel: tpu_custom_call.1
= control target key start
LH: loop header
LB: loop body
LE: loop exit
PB: predicated region body
PF: predicated region fallthrough
CT: control target
= control target key end

     0   :  { %s9416_s0 = inlined_call_operand.hbm [shape: bf16[2,12,2,2,42,3], index: 0, kind: input, shape index: {}]   ;;  %s9417_s1 = inlined_call_operand.hbm [shape: bf16[2,12,2,2,42,3], index: 1, kind: input, shape index: {}]   ;;  %s9418_s2 = inlined_call_operand.hbm [shape: bf16[2,12,2,2,42,3], index: 2, kind: input, shape index: {}]   ;;  %s9419_s3 = inlined_call_operand.hbm [shape: bf16[2,12,2,2,42,3], index: 3, kind: input, shape index: {}]   ;;  %s9420_s4 = inlined_call_operand.hbm [shape: bf16[64,3,128], index: 4, kind: input, shape index: {}]   ;;  %s9421_s5 = inlined_call_operand.hbm [shape: f32[1,128], index: 5, kind: input, shape index: {}]   ;;  %s9422_s6 = inlined_call_operand.hbm [shape: f32[2,5,30,128], index: 6, kind: output, shape index: {}]  }
   0x1   :  { %9460 = sst [smem:[#allocation41_spill]] %s9416_s0 }
   0x2   :  { %9461 = sst [smem:[#allocation42_spill]] %s9417_s1 }
   0x3   :  { %9462 = sst [smem:[#allocation43_spill]] %s9418_s2 }
   0x4   :  { %9463 = sst [smem:[#allocation44_spill]] %s9419_s3 }
   0x5   :  { %9464 = sst [smem:[#allocation45_spill]] %s9420_s4 }
   0x6   :  { %9465 = sst [smem:[#allocation46_spill]] %s9421_s5 }
   0x7   :  { %9466 = sst [smem:[#allocation47_spill]] %s9422_s6 }
   0x8   :  { %11 = vsyncpa [#allocation3], 0 }
   0x9   :  { %13 = vsyncpa [#allocation3 + $0x1], 0 }
   0xa   :  { %14 = vsyncpa [#allocation6], 0 }
   0xb   :  { %16 = vsyncpa [#allocation6 + $0x1], 0 }
   0xc   :  { %17 = vsyncpa [#allocation9], 0 }
   0xd   :  { %19 = vsyncpa [#allocation9 + $0x1], 0 }
   0xe   :  { %20 = vsyncpa [#allocation12], 0 }
   0xf   :  { %21 = vsyncpa [#allocation4], 0 }
  0x10   :  { %23 = vsyncpa [#allocation4 + $0x1], 0  ;;  %s8225_s21 = smov 0   ;;  %s8227_s22 = smov 0  }
  0x11   :  { %s8229_s23 = smov 0   ;;  %s8231_s24 = smov 0  }
  0x12   :  { %s8233_s25 = smov 0   ;;  %s8235_s26 = smov 0  }
  0x13   :  { %s8237_s27 = smov 0   ;;  %s8239_s28 = smov 0  }
  0x14   :  { %s8241_s29 = smov 0   ;;  %s8243_s30 = smov 0  }
  0x15   :  { %s8245_s7 = smov 0   ;;  %s8247_s8 = smov 0  }
  0x16   :  { %s8249_s9 = smov 0   ;;  %s8251_s10 = smov 0  }
  0x17   :  { %s8253_s11 = smov 0   ;;  %s8255_s12 = smov 0  }
  0x18   :  { %s8257_s13 = smov 0   ;;  %s8259_s14 = smov 0  }
  0x19   :  { %s8261_s15 = smov 0   ;;  %s8263_s16 = smov 0  }
  0x1a LB: > { %9467 = sst [smem:[#allocation21_spill]] %s8098_s21  ;;  %s8326_s17 = sadd.s32 4294967295, %s8174_s16   ;;  %s8174_s16 = sphi %s8263_s16, %s29_s16   ;;  %s8170_s15 = sphi %s8261_s15, %s9579_s15   ;;  %s8166_s14 = sphi %s8259_s14, %s9578_s14   ;;  %s8162_s13 = sphi %s8257_s13, %s9577_s13   ;;  %s8158_s12 = sphi %s8255_s12, %s9563_s12   ;;  %s8154_s11 = sphi %s8253_s11, %s9576_s11   ;;  %s8150_s10 = sphi %s8251_s10, %s9575_s10   ;;  %s8146_s9 = sphi %s8249_s9, %s9574_s9   ;;  %s8142_s8 = sphi %s8247_s8, %s9573_s8   ;;  %s8138_s7 = sphi %s8245_s7, %s9572_s7   ;;  %s8134_s30 = sphi %s8243_s30, %s9560_s30   ;;  %s8130_s29 = sphi %s8241_s29, %s9559_s29   ;;  %s8126_s28 = sphi %s8239_s28, %s9558_s28   ;;  %s8122_s27 = sphi %s8237_s27, %s9557_s27   ;;  %s8118_s26 = sphi %s8235_s26, %s9571_s26   ;;  %s8114_s25 = sphi %s8233_s25, %s9569_s25   ;;  %s8110_s24 = sphi %s8231_s24, %s9555_s24   ;;  %s8106_s23 = sphi %s8229_s23, %s9567_s23   ;;  %s8102_s22 = sphi %s8227_s22, %s9565_s22   ;;  %s8098_s21 = sphi %s8225_s21, %s9554_s21  }
  0x1b   : > { %9468 = sst [smem:[#allocation22_spill]] %s8102_s22  ;;  %s6206_s18 = sadd.s32 4294967294, %s8174_s16  }
  0x1c   : > { %9469 = sst [smem:[#allocation23_spill]] %s8110_s24  ;;  %p9432_p0 = scmp.eq.s32.totalorder %s8326_s17, 0 }
  0x1d   : > { %9470 = sst [smem:[#allocation24_spill]] %s8114_s25  ;;  %p247_p1 = scmp.ne.s32.totalorder %s8106_s23, %s8102_s22 }
  0x1e   : > { %9471 = sst [smem:[#allocation25_spill]] %s8118_s26  ;;  %p248_p2 = scmp.eq.s32.totalorder %s8326_s17, 9 }
  0x1f   : > { %9472 = sst [smem:[#allocation26_spill]] %s8122_s27  ;;  %p253_p3 = scmp.ne.s32.totalorder %s8102_s22, %s8098_s21 }
  0x20   : > { %9473 = sst [smem:[#allocation27_spill]] %s8126_s28  ;;  %p254_p4 = scmp.eq.s32.totalorder %s6206_s18, 9 }
  0x21   : > { %9474 = sst [smem:[#allocation28_spill]] %s8130_s29  ;;  %p6215_p5 = scmp.ge.s32.totalorder %s8174_s16, 1 }
  0x22   : > { %9475 = sst [smem:[#allocation29_spill]] %s8138_s7  ;;  %p8336_p6 = por %p248_p2, %p247_p1 }
  0x23   : > { %9476 = sst [smem:[#allocation30_spill]] %s8158_s12  ;;  %p261_p7 = scmp.lt.s32.totalorder %s8174_s16, 11 }
  0x24   : > { %9477 = sst [smem:[#allocation31_spill]] %s8162_s13  ;;  %p8341_p8 = por %p254_p4, %p253_p3 }
  0x25   : > { %9478 = sst [smem:[#allocation32_spill]] %s8166_s14  ;;  %p8345_p9 = pnand %p6215_p5, %p261_p7 }
  0x26   : > { %9479 = sst [smem:[#allocation33_spill]] %s8170_s15  ;;  %s8176_s12 = smov [#allocation10]  }
  0x27   : > { %s9480_s19 = scalar_select %p8336_p6, 1, 0 }
  0x28   : > { %s9482_s20 = scalar_select %p8341_p8, 1, 0 }
  0x29   : > { %9481 = sst [smem:[#allocation34_spill]] %s9480_s19  ;;  %s275_s13 = sshll.u32 %s8176_s12, 4  ;;  %s276_s13 = int_to_ptr.vmem [resolvable:$true] %s275_s13 }
  0x2a   : > { %9483 = sst [smem:[#allocation35_spill]] %s9482_s20  ;;  %p7470_p10 = pneg %p8345_p9 }
  0x2b   : > { %s9484_s6 = scalar_select %p8345_p9, 1, 0 }
  0x2c   : > { %p8353_p11 = pnand %p7470_p10, %p9432_p0  ;;  %s9487_s4 = sld [smem:[#allocation45_spill]] }
  0x2d   : > { %9485 = sst [smem:[#allocation36_spill]] %s9484_s6 }
  0x2e   : > { %p9448_p13 = pneg %p8353_p11 }
  0x32   : > { %s7781_s20 = scalar_lea.hbm %s9487_s4, 2048 }
  0x33   : > { %p7782_p12 = scmp.ne.s32.totalorder %s9487_s4, %s7781_s20  ;;  %p7788_p3 = scmp.lt.u32.totalorder %s7781_s20, %s9487_s4 }
  0x35   : > { %p7784_p1 = pnand %p9448_p13, %p7782_p12 }
  0x37   : > { %p7785_p2 = pneg %p7784_p1 }
  0x39   : > { %p7790_p4 = pnand %p7788_p3, %p7785_p2 }
  0x3b   : > { %7793 = shalt.err (!%p7790_p4)
}
  0x3c   : > { %s7794_s21 = scalar_lea.vmem %s276_s13, 2048  ;;  %p7802_p0 = scmp.lt.s32.totalorder %s276_s13, %s276_s13 }
  0x3d   : > { %p7795_p5 = scmp.ne.s32.totalorder %s276_s13, %s7794_s21  ;;  %p7803_p8 = scmp.lt.s32.totalorder %s7794_s21, %s7794_s21 }
  0x3f   : > { %p7797_p7 = pnand %p7795_p5, %p9448_p13  ;;  %p7804_p6 = por %p7803_p8, %p7802_p0 }
  0x41   : > { %p7798_p10 = pneg %p7797_p7 }
  0x43   : > { %p7805_p9 = pnand %p7804_p6, %p7798_p10 }
  0x45   : > { %7808 = shalt.err (!%p7805_p9)
}
  0x46   : > { %s8177_s3 = smov 32   ;;  %s8178_s6 = smov 2  }
  0x47   : > { %7473 = dma.hbm_to_vmem [thread:$0]  (!%p8353_p11), %s9487_s4, 2048, %s276_s13, [#allocation9], %s8177_s3, %s8177_s3, %s8178_s6  }
  0x48   : > { %s41_s20 = sadd.s32 1, %s8166_s14  ;;  %s44_s12 = sadd.s32 1, %s8170_s15 }
  0x49   : > { %p42_p0 = scmp.ge.s32.totalorder %s41_s20, 5  ;;  %s8382_s21 = sshll.u32 %s8166_s14, 1 }
  0x4a   : > { %p9447_p6 = scmp.eq.s32.totalorder %s8174_s16, 0  ;;  %s83_s24 = sadd.s32 1, %s8382_s21 }
  0x4b   : > { %s9581_s20 = smov (%p42_p0, %s41_s20), 0  ;;  %s9583_s12 = smov (!%p42_p0, %s44_s12), %s8170_s15 }
  0x4c   : > { %9488 = sst [smem:[#allocation37_spill]] %s9581_s20  ;;  %s8390_s13 = sshll.u32 %s9581_s20, 1 }
  0x4d   : > { %s91_s3 = sadd.s32 1, %s8142_s8  ;;  %p46_p8 = scmp.ge.s32.totalorder %s9583_s12, 2 }
  0x4e   : > { %s85_s6 = sadd.s32 1, %s8390_s13  ;;  %p98_p9 = scmp.ne.s32.totalorder %s8142_s8, %s8138_s7 }
  0x4f   : > { %s87_s22 = ssub.s32 %s83_s24, %s85_s6  ;;  %s9585_s12 = smov (%p46_p8, %s9583_s12), 0 }
  0x50   : > { %9489 = sst [smem:[#allocation38_spill]] %s9585_s12  ;;  %p8400_p12 = por %p98_p9, %p9447_p6 }
  0x51   : > { %p104_p1 = scmp.ne.s32.totalorder %s8138_s7, %s8134_s30  ;;  %s8408_s4 = ssub.s32 %s8170_s15, %s9585_s12 }
  0x52   : > { %s88_s24 = sor.u32 %s87_s22, %s8408_s4  ;;  %p9491_p2 = scmp.eq.s32.totalorder %s8326_s17, 0 }
  0x53   : > { %p89_p4 = scmp.eq.s32.totalorder %s88_s24, 0  ;;  %s231_s2 = ssub.s32 %s8166_s14, %s9581_s20 }
  0x54   : > { %p8414_p3 = por %p104_p1, %p9491_p2  ;;  %s237_s27 = sadd.s32 1, %s8106_s23 }
  0x55   : > { %s8423_s30 = scalar_select %p89_p4, %s8142_s8, %s91_s3  }
  0x56   : > { %s9492_s6 = scalar_select %p8414_p3, 1, 0 }
  0x57   : > { %9494 = sst [smem:[#allocation40_spill]] %s8423_s30  ;;  %s232_s12 = sor.u32 %s231_s2, %s8408_s4 }
  0x58   : > { %9493 = sst [smem:[#allocation39_spill]] %s9492_s6  ;;  %p9446_p5 = scmp.lt.s32.totalorder %s8174_s16, 10 }
  0x59   : > { %p235_p7 = scmp.eq.s32.totalorder %s232_s12, 0  ;;  %s7442_s25 = smul.u32 48, %s8166_s14 }
  0x5a   : > { %s7443_s22 = smul.u32 288, %s8170_s15  ;;  %s9450_s24 = sand.u32 1, %s8174_s16  }
  0x5b   : > { %s8430_s7 = scalar_select %p235_p7, %s8106_s23, %s237_s27  }
  0x5c   : > { %s313_s28 = sadd.s32 %s7443_s22, %s7442_s25  ;;  %s328_s26 = sand.u32 1, %s8142_s8  }
  0x5d   : > { %s8432_s29 = sshll.u32 %s313_s28, 6  ;;  %s7444_s20 = smul.u32 96, %s328_s26 }
  0x5e   : > { %s9495_s1 = sld [smem:[#allocation42_spill]]  ;;  %p8446_p10 = pnand %p9446_p5, %p8400_p12 }
  0x5f   : > { %s330_s25 = scalar_lea.vmem [#allocation5], %s7444_s20  ;;  %s8454_s0 = scalar_lea.sflag [#allocation6], %s9450_s24 }
  0x60   : > { %s341_s27 = sshll.u32 %s330_s25, 4  ;;  %p7811_p8 = pneg %p8446_p10  ;;  %s8450_s27 = int_to_ptr.vmem [resolvable:$true] %s341_s27 }
  0x64   : > { %s6061_s3 = scalar_lea.hbm %s9495_s1, %s8432_s29  ;;  %s7814_s19 = scalar_lea.hbm %s9495_s1, 36864 }
  0x65   : > { %s8440_s30 = scalar_lea.hbm %s6061_s3, 1536  ;;  %s7839_s26 = scalar_lea.hbm %s6061_s3, 3072 }
  0x66   : > { %p7810_p0 = scmp.ne.s32.totalorder %s8440_s30, %s7839_s26  ;;  %p7815_p1 = scmp.lt.u32.totalorder %s8440_s30, %s9495_s1 }
  0x67   : > { %p7816_p2 = scmp.lt.u32.totalorder %s7814_s19, %s7839_s26  ;;  %p7818_p7 = scmp.lt.u32.totalorder %s7839_s26, %s8440_s30 }
  0x68   : > { %p7812_p9 = pnand %p7811_p8, %p7810_p0 }
  0x69   : > { %p7817_p4 = por %p7816_p2, %p7815_p1 }
  0x6a   : > { %p7813_p12 = pneg %p7812_p9 }
  0x6b   : > { %p7819_p5 = por %p7818_p7, %p7817_p4 }
  0x6d   : > { %p7820_p6 = pnand %p7819_p5, %p7813_p12 }
  0x6f   : > { %7823 = shalt.err (!%p7820_p6)
}
  0x70   : > { %s7824_s22 = scalar_lea.vmem %s8450_s27, 1536  ;;  %s8179_s3 = smov [#allocation5]  }
  0x71   : > { %p7825_p0 = scmp.ne.s32.totalorder %s8450_s27, %s7824_s22  ;;  %s7829_s25 = sshll.u32 %s8179_s3, 4  ;;  %s7830_s25 = int_to_ptr.vmem [resolvable:$false] %s7829_s25 }
  0x72   : > { %s7831_s28 = scalar_lea.vmem %s7830_s25, 3072  ;;  %p7832_p3 = scmp.lt.s32.totalorder %s8450_s27, %s7830_s25 }
  0x73   : > { %p7827_p9 = pnand %p7825_p0, %p7811_p8  ;;  %p7833_p1 = scmp.lt.s32.totalorder %s7831_s28, %s7824_s22 }
  0x75   : > { %p7828_p13 = pneg %p7827_p9  ;;  %p7834_p2 = por %p7833_p1, %p7832_p3 }
  0x77   : > { %p7835_p4 = pnand %p7834_p2, %p7828_p13 }
  0x79   : > { %7838 = shalt.err (!%p7835_p4)
}
  0x7a   : > { %s9451_s26 = smov 64   ;;  %s9453_s12 = smov 4  }
  0x7b   : > { %7483 = dma.hbm_to_vmem [thread:$0]  (!%p8446_p10), %s8440_s30, 1536, %s8450_s27, %s8454_s0, %s9451_s26, %s9451_s26, %s9453_s12  }
  0x7c   : > { %s8182_s19 = smov [#allocation11]   ;;  %s9497_s5 = sld [smem:[#allocation46_spill]] }
  0x7d   : > { %s291_s6 = sshll.u32 %s8182_s19, 4  ;;  %p9498_p6 = pneg %p8353_p11  ;;  %s292_s6 = int_to_ptr.vmem [resolvable:$true] %s291_s6 }
  0x82   : > { %s7840_s3 = scalar_lea.hbm %s9497_s5, 16 }
  0x83   : > { %p7841_p13 = scmp.ne.s32.totalorder %s9497_s5, %s7840_s3  ;;  %p7847_p8 = scmp.lt.u32.totalorder %s7840_s3, %s9497_s5 }
  0x85   : > { %p7843_p3 = pnand %p7841_p13, %p9498_p6 }
  0x87   : > { %p7844_p5 = pneg %p7843_p3 }
  0x89   : > { %p7849_p10 = pnand %p7847_p8, %p7844_p5 }
  0x8b   : > { %7852 = shalt.err (!%p7849_p10)
}
  0x8c   : > { %s7853_s30 = scalar_lea.vmem %s292_s6, 16  ;;  %p9499_p7 = pmov %p9498_p6 }
  0x8d   : > { %p7854_p12 = scmp.ne.s32.totalorder %s292_s6, %s7853_s30  ;;  %s7860_s27 = scalar_lea.vmem %s292_s6, 32 }
  0x8e   : > { %p7861_p1 = scmp.lt.s32.totalorder %s292_s6, %s292_s6  ;;  %p7862_p2 = scmp.lt.s32.totalorder %s7860_s27, %s7853_s30 }
  0x8f   : > { %p7856_p0 = pnand %p7854_p12, %p9499_p7 }
  0x90   : > { %p7863_p4 = por %p7862_p2, %p7861_p1 }
  0x91   : > { %p7857_p9 = pneg %p7856_p0 }
  0x93   : > { %p7864_p6 = pnand %p7863_p4, %p7857_p9 }
  0x95   : > { %7867 = shalt.err (!%p7864_p6)
}
  0x96   : > { %7476 = dma.hbm_to_vmem [thread:$0]  (!%p8353_p11), %s9497_s5, 16, %s292_s6, [#allocation12]  }
  0x97   : > { %s55_s20 = ssub.s32 %s8382_s21, %s8390_s13  ;;  %s59_s18 = sadd.s32 1, %s8154_s11 }
  0x98   : > { %s56_s22 = sor.u32 %s55_s20, %s8408_s4  ;;  %p66_p13 = scmp.ne.s32.totalorder %s8154_s11, %s8150_s10 }
  0x99   : > { %p57_p3 = scmp.eq.s32.totalorder %s56_s22, 0  ;;  %p72_p5 = scmp.ne.s32.totalorder %s8150_s10, %s8146_s9 }
  0x9a   : > { %p9500_p8 = scmp.eq.s32.totalorder %s8174_s16, 0  ;;  %s302_s3 = sand.u32 1, %s8154_s11  }
  0x9b   : > { %s8516_s25 = scalar_select %p57_p3, %s8154_s11, %s59_s18  }
  0x9c   : > { %p68_p10 = por %p9500_p8, %p66_p13  ;;  %p9501_p12 = scmp.eq.s32.totalorder %s8326_s17, 0 }
  0x9d   : > { %s7441_s2 = smul.u32 96, %s302_s3  ;;  %s9503_s6 = sld [smem:[#allocation41_spill]] }
  0x9e   : > { %p8520_p7 = por %p9501_p12, %p72_p5  ;;  %p9504_p11 = scmp.lt.s32.totalorder %s8174_s16, 10 }
  0x9f   : > { %s306_s24 = scalar_lea.vmem [#allocation2], %s7441_s2  ;;  %s8538_s18 = scalar_lea.sflag [#allocation3], %s302_s3 }
  0xa0   : > { %p8532_p0 = pnand %p9504_p11, %p68_p10  ;;  %s316_s20 = sshll.u32 %s306_s24, 4  ;;  %s8536_s20 = int_to_ptr.vmem [resolvable:$true] %s316_s20 }
  0xa2   : > { %p7870_p1 = pneg %p8532_p0 }
  0xa3   : > { %s8528_s19 = scalar_lea.hbm %s9503_s6, %s8432_s29  ;;  %s7873_s26 = scalar_lea.hbm %s9503_s6, 36864 }
  0xa4   : > { %s7868_s22 = scalar_lea.hbm %s8528_s19, 1536  ;;  %p7874_p6 = scmp.lt.u32.totalorder %s8528_s19, %s9503_s6 }
  0xa5   : > { %p7869_p9 = scmp.ne.s32.totalorder %s8528_s19, %s7868_s22  ;;  %p7875_p13 = scmp.lt.u32.totalorder %s7873_s26, %s7868_s22 }
  0xa6   : > { %p7877_p5 = scmp.lt.u32.totalorder %s7868_s22, %s8528_s19 }
  0xa7   : > { %p7871_p2 = pnand %p7870_p1, %p7869_p9  ;;  %p7876_p3 = por %p7875_p13, %p7874_p6 }
  0xa9   : > { %p7872_p4 = pneg %p7871_p2  ;;  %p7878_p8 = por %p7877_p5, %p7876_p3 }
  0xab   : > { %p7879_p10 = pnand %p7878_p8, %p7872_p4 }
  0xad   : > { %7882 = shalt.err (!%p7879_p10)
}
  0xae   : > { %s7883_s3 = scalar_lea.vmem %s8536_s20, 1536  ;;  %s8183_s2 = smov [#allocation2]  }
  0xaf   : > { %p7884_p12 = scmp.ne.s32.totalorder %s8536_s20, %s7883_s3  ;;  %s7888_s24 = sshll.u32 %s8183_s2, 4  ;;  %s7889_s24 = int_to_ptr.vmem [resolvable:$false] %s7888_s24 }
  0xb0   : > { %s7890_s1 = scalar_lea.vmem %s7889_s24, 3072  ;;  %p7891_p2 = scmp.lt.s32.totalorder %s8536_s20, %s7889_s24 }
  0xb1   : > { %p7886_p11 = pnand %p7884_p12, %p7870_p1  ;;  %p7892_p6 = scmp.lt.s32.totalorder %s7890_s1, %s7883_s3 }
  0xb3   : > { %p7887_p9 = pneg %p7886_p11  ;;  %p7893_p13 = por %p7892_p6, %p7891_p2 }
  0xb5   : > { %p7894_p3 = pnand %p7893_p13, %p7887_p9 }
  0xb7   : > { %7897 = shalt.err (!%p7894_p3)
}
  0xb8   : > { %s9506_s26 = smov 4   ;;  %s9507_s12 = smov 64  }
  0xb9   : > { %s9508_s22 = sld [smem:[#allocation28_spill]]  ;;  %s9509_s30 = sld [smem:[#allocation27_spill]] }
  0xba   : > { %s9510_s27 = sld [smem:[#allocation26_spill]]  ;;  %s117_s9 = sadd.s32 2, %s8390_s13 }
  0xbb   : > { %7480 = dma.hbm_to_vmem [thread:$0]  (!%p8532_p0), %s8528_s19, 1536, %s8536_s20, %s8538_s18, %s9507_s12, %s9507_s12, %s9506_s26  }
  0xbc   : > { %s9511_s3 = sadd.s32 2, %s8382_s21  ;;  %p9512_p8 = scmp.eq.s32.totalorder %s8174_s16, 0 }
  0xbd   : > { %s119_s2 = ssub.s32 %s9511_s3, %s117_s9  ;;  %p9513_p12 = scmp.eq.s32.totalorder %s8326_s17, 0 }
  0xbe   : > { %s120_s1 = sor.u32 %s119_s2, %s8408_s4  ;;  %s9515_s18 = sld [smem:[#allocation43_spill]] }
  0xbf   : > { %s123_s24 = sadd.s32 1, %s9508_s22  ;;  %p130_p1 = scmp.ne.s32.totalorder %s9508_s22, %s9509_s30 }
  0xc0   : > { %p121_p4 = scmp.eq.s32.totalorder %s120_s1, 0  ;;  %p136_p5 = scmp.ne.s32.totalorder %s9509_s30, %s9510_s27 }
  0xc1   : > { %p132_p10 = por %p130_p1, %p9512_p8  ;;  %s353_s5 = sand.u32 1, %s9508_s22  }
  0xc2   : > { %s9587_s22 = smov (!%p121_p4, %s9508_s22), %s123_s24  ;;  %p8586_p11 = por %p136_p5, %p9513_p12 }
  0xc3   : > { %s7445_s15 = smul.u32 96, %s353_s5  ;;  %p9516_p0 = scmp.lt.s32.totalorder %s8174_s16, 10 }
  0xc4   : > { %s9514_s6 = scalar_select %p8586_p11, 1, 0 }
  0xc5   : > { %s6071_s9 = scalar_lea.hbm %s9515_s18, %s8432_s29  ;;  %p8596_p9 = pnand %p9516_p0, %p132_p10 }
  0xc6   : > { %s8600_s30 = scalar_lea.hbm %s6071_s9, 3072  ;;  %s355_s27 = scalar_lea.vmem [#allocation7], %s7445_s15 }
  0xc7   : > { %s366_s2 = sshll.u32 %s355_s27, 4  ;;  %s7928_s5 = scalar_lea.hbm %s6071_s9, 4608  ;;  %s8602_s2 = int_to_ptr.vmem [resolvable:$true] %s366_s2 }
  0xc8   : > { %p7899_p2 = scmp.ne.s32.totalorder %s8600_s30, %s7928_s5  ;;  %p7900_p6 = pneg %p8596_p9 }
  0xc9   : > { %s7903_s19 = scalar_lea.hbm %s9515_s18, 36864  ;;  %p7904_p1 = scmp.lt.u32.totalorder %s8600_s30, %s9515_s18 }
  0xca   : > { %p7901_p13 = pnand %p7900_p6, %p7899_p2  ;;  %p7905_p4 = scmp.lt.u32.totalorder %s7903_s19, %s7928_s5 }
  0xcb   : > { %p7907_p8 = scmp.lt.u32.totalorder %s7928_s5, %s8600_s30 }
  0xcc   : > { %p7902_p3 = pneg %p7901_p13  ;;  %p7906_p5 = por %p7905_p4, %p7904_p1 }
  0xce   : > { %p7908_p10 = por %p7907_p8, %p7906_p5 }
  0xd0   : > { %p7909_p12 = pnand %p7908_p10, %p7902_p3 }
  0xd2   : > { %7912 = shalt.err (!%p7909_p12)
}
  0xd3   : > { %s7913_s15 = scalar_lea.vmem %s8602_s2, 1536  ;;  %s8184_s9 = smov [#allocation7]  }
  0xd4   : > { %p7914_p0 = scmp.ne.s32.totalorder %s8602_s2, %s7913_s15  ;;  %s7918_s27 = sshll.u32 %s8184_s9, 4  ;;  %s7919_s27 = int_to_ptr.vmem [resolvable:$false] %s7918_s27 }
  0xd5   : > { %s7920_s14 = scalar_lea.vmem %s7919_s27, 3072  ;;  %p7921_p11 = scmp.lt.s32.totalorder %s8602_s2, %s7919_s27 }
  0xd6   : > { %p7916_p2 = pnand %p7914_p0, %p7900_p6  ;;  %p7922_p1 = scmp.lt.s32.totalorder %s7920_s14, %s7913_s15 }
  0xd8   : > { %p7917_p13 = pneg %p7916_p2  ;;  %p7923_p4 = por %p7922_p1, %p7921_p11 }
  0xda   : > { %p7924_p5 = pnand %p7923_p4, %p7917_p13 }
  0xdc   : > { %7927 = shalt.err (!%p7924_p5)
}
  0xdd   : > { %s9518_s5 = sld [smem:[#allocation25_spill]]  ;;  %s9519_s24 = sld [smem:[#allocation24_spill]] }
  0xde   : > { %s9520_s1 = sld [smem:[#allocation23_spill]]  ;;  %s149_s3 = sadd.s32 3, %s8390_s13 }
  0xdf   : > { %7486 = dma.hbm_to_vmem [thread:$0]  (!%p8596_p9), %s8600_s30, 1536, %s8602_s2, %s8454_s0, %s9507_s12, %s9507_s12, %s9506_s26  }
  0xe0   : > { %s9521_s19 = sadd.s32 3, %s8382_s21  ;;  %p9522_p8 = scmp.eq.s32.totalorder %s8174_s16, 0 }
  0xe1   : > { %s151_s20 = ssub.s32 %s9521_s19, %s149_s3  ;;  %p9523_p12 = scmp.eq.s32.totalorder %s8326_s17, 0 }
  0xe2   : > { %s152_s9 = sor.u32 %s151_s20, %s8408_s4  ;;  %s9525_s30 = sld [smem:[#allocation44_spill]] }
  0xe3   : > { %s155_s15 = sadd.s32 1, %s9518_s5  ;;  %p162_p11 = scmp.ne.s32.totalorder %s9518_s5, %s9519_s24 }
  0xe4   : > { %p153_p6 = scmp.eq.s32.totalorder %s152_s9, 0  ;;  %p168_p3 = scmp.ne.s32.totalorder %s9519_s24, %s9520_s1 }
  0xe5   : > { %p164_p10 = por %p162_p11, %p9522_p8  ;;  %s378_s27 = sand.u32 1, %s9518_s5  }
  0xe6   : > { %s9589_s5 = smov (!%p153_p6, %s9518_s5), %s155_s15  ;;  %p8649_p0 = por %p168_p3, %p9523_p12 }
  0xe7   : > { %s7446_s0 = smul.u32 96, %s378_s27  ;;  %p9527_p9 = scmp.lt.s32.totalorder %s8174_s16, 10 }
  0xe8   : > { %s9524_s14 = scalar_select %p8649_p0, 1, 0 }
  0xe9   : > { %s9526_s2 = smov %s9525_s30  ;;  %s6081_s3 = scalar_lea.hbm %s9525_s30, %s8432_s29 }
  0xea   : > { %p8659_p2 = pnand %p9527_p9, %p164_p10  ;;  %s8663_s24 = scalar_lea.hbm %s6081_s3, 4608 }
  0xeb   : > { %s380_s1 = scalar_lea.vmem [#allocation8], %s7446_s0  ;;  %s9529_s20 = sand.u32 1, %s8174_s16  }
  0xec   : > { %s391_s19 = sshll.u32 %s380_s1, 4  ;;  %s8669_s15 = scalar_lea.sflag [#allocation9], %s9529_s20  ;;  %s8665_s19 = int_to_ptr.vmem [resolvable:$true] %s391_s19 }
  0xed   : > { %s7959_s29 = scalar_lea.hbm %s6081_s3, 6144  ;;  %p7931_p1 = pneg %p8659_p2 }
  0xee   : > { %p7930_p13 = scmp.ne.s32.totalorder %s8663_s24, %s7959_s29  ;;  %s7934_s13 = scalar_lea.hbm %s9526_s2, 36864 }
  0xef   : > { %p7935_p11 = scmp.lt.u32.totalorder %s8663_s24, %s9526_s2  ;;  %p7936_p6 = scmp.lt.u32.totalorder %s7934_s13, %s7959_s29 }
  0xf0   : > { %p7932_p4 = pnand %p7931_p1, %p7930_p13  ;;  %p7938_p8 = scmp.lt.u32.totalorder %s7959_s29, %s8663_s24 }
  0xf1   : > { %p7937_p3 = por %p7936_p6, %p7935_p11 }
  0xf2   : > { %p7933_p5 = pneg %p7932_p4 }
  0xf3   : > { %p7939_p10 = por %p7938_p8, %p7937_p3 }
  0xf5   : > { %p7940_p12 = pnand %p7939_p10, %p7933_p5 }
  0xf7   : > { %7943 = shalt.err (!%p7940_p12)
}
  0xf8   : > { %s7944_s30 = scalar_lea.vmem %s8665_s19, 1536  ;;  %s8185_s3 = smov [#allocation8]  }
  0xf9   : > { %p7945_p9 = scmp.ne.s32.totalorder %s8665_s19, %s7944_s30  ;;  %s7949_s1 = sshll.u32 %s8185_s3, 4  ;;  %s7950_s1 = int_to_ptr.vmem [resolvable:$false] %s7949_s1 }
  0xfa   : > { %s7951_s20 = scalar_lea.vmem %s7950_s1, 3072  ;;  %p7952_p0 = scmp.lt.s32.totalorder %s8665_s19, %s7950_s1 }
  0xfb   : > { %p7947_p13 = pnand %p7945_p9, %p7931_p1  ;;  %p7953_p11 = scmp.lt.s32.totalorder %s7951_s20, %s7944_s30 }
  0xfd   : > { %p7948_p4 = pneg %p7947_p13  ;;  %p7954_p6 = por %p7953_p11, %p7952_p0 }
  0xff   : > { %p7955_p3 = pnand %p7954_p6, %p7948_p4 }
 0x101   : > { %7958 = shalt.err (!%p7955_p3)
}
 0x102   : > { %7489 = dma.hbm_to_vmem [thread:$0]  (!%p8659_p2), %s8663_s24, 1536, %s8665_s19, %s8669_s15, %s9507_s12, %s9507_s12, %s9506_s26  }
 0x103   : > { %s9530_s29 = sld [smem:[#allocation36_spill]] }
 0x109   : > { %p9531_p1 = scmp.ne.s32.totalorder %s9530_s29, 0 }
 0x10a   : > { %s405_s9 = sand.u32 (!%p9531_p1), 1, %s8150_s10  }
 0x10b   : > { %403 = sbr.rel (%p9531_p1) target bundleno = 932 (0x3a4), region = 44  ;;  %s406_s13 = scalar_lea.sflag (!%p9531_p1), [#allocation3], %s405_s9 }
 0x10c   : > { %s7447_s27 = smul.u32 (!%p9531_p1), 96, %s405_s9 }
 0x10e   : > { %s8702_s21 = scalar_lea.vmem (!%p9531_p1), [#allocation2], %s7447_s27 }
 0x112   : > { %8069 = dma.done.wait (%p8520_p7), %s406_s13, 1536  }
 0x113   : > { %8071 = vsyncadd (%p8520_p7), %s406_s13, 4294965760  ;;  %s9532_s4 = sld [smem:[#allocation29_spill]]  ;;  %s9533_s0 = sld [smem:[#allocation39_spill]] }
 0x114   : > { %s414_s30 = sand.u32 1, %s8326_s17  }
 0x115   : > { %s415_s24 = scalar_lea.sflag [#allocation6], %s414_s30 }
 0x119   : > { %s416_s26 = sand.u32 1, %s9532_s4   ;;  %p9534_p0 = scmp.ne.s32.totalorder %s9533_s0, 0 }
 0x11a   : > { %s7448_s12 = smul.u32 96, %s416_s26 }
 0x11c   : > { %s8710_s19 = scalar_lea.vmem [#allocation5], %s7448_s12 }
 0x11d   : > { %8073 = dma.done.wait (%p9534_p0), %s415_s24, 1536  }
 0x11e   : > { %8075 = vsyncadd (%p9534_p0), %s415_s24, 4294965760  ;;  %s9535_s15 = sld [smem:[#allocation27_spill]]  ;;  %p9536_p7 = scmp.ne.s32.totalorder %s9514_s6, 0 }
 0x124   : > { %s425_s3 = sand.u32 1, %s9535_s15  }
 0x125   : > { %s7449_s1 = smul.u32 96, %s425_s3 }
 0x127   : > { %s8717_s28 = scalar_lea.vmem [#allocation7], %s7449_s1 }
 0x128   : > { %8077 = dma.done.wait (%p9536_p7), %s415_s24, 1536  }
 0x129   : > { %8079 = vsyncadd (%p9536_p7), %s415_s24, 4294965760  ;;  %s9537_s20 = sld [smem:[#allocation24_spill]]  ;;  %s433_s27 = scalar_lea.sflag [#allocation9], %s414_s30 }
 0x12a   : > { %p9538_p2 = scmp.ne.s32.totalorder %s9524_s14, 0 }
 0x12f   : > { %s434_s29 = sand.u32 1, %s9537_s20  }
 0x130   : > { %s7450_s9 = smul.u32 96, %s434_s29 }
 0x132   : > { %s8724_s13 = scalar_lea.vmem [#allocation8], %s7450_s9 }
 0x133   : > { %8081 = dma.done.wait (%p9538_p2), %s433_s27, 1536  }
 0x134   : > { %8083 = vsyncadd (%p9538_p2), %s433_s27, 4294965760  ;;  %p9539_p5 = scmp.eq.s32.totalorder %s8326_s17, 0 }
 0x136   : > { %8085 = dma.done.wait (%p9539_p5), [#allocation9], 2048   ;;  %p9540_p8 = pmov %p9539_p5 }
 0x137   : > { %p9541_p10 = pmov %p9539_p5 }
 0x138   : > { %8087 = vsyncadd (%p9540_p8), [#allocation9], 4294965248 }
 0x139   : > { %8089 = dma.done.wait (%p9541_p10), [#allocation12], 16   ;;  %p9542_p12 = pmov %p9539_p5 }
 0x13a   : > { %vm525_vm0 = vcmask 1040384   ;;  %vm526_vm1 = vcmask 1041408   ;;  %v8186_v0 = vmov 65535   ;;  %v507_v3 = vld [vmem:[#allocation10 + $0x2] sm:$0x3]  ;;  %v8743_v7 = vld [vmem:[%s8702_s21 + $0x18] sm:$0xff]  }
 0x13b   : > { %8091 = vsyncadd (%p9542_p12), [#allocation12], 4294967280  ;;  %v527_v1 = vsel %vm525_vm0, 4294967295, %v8186_v0  ;;  %v3234_v4 = vld [vmem:[#allocation10 + $0x40] sm:$0x3]  ;;  %vm518_vm2 = vcmask 23552  }
 0x13c   : > { %v8738_v2 = vsel %vm526_vm1, %v527_v1, 0  ;;  %v7670_v8 = vld [vmem:[%s8717_s28] sm:$0xff]   ;;  %v3231_v13 = vld [vmem:[%s8717_s28 + $0x8] sm:$0xf]  ;;  %6807 = vmatprep.mubr.msk.bf16.mxu1 %vm518_vm2, %v8743_v7  ;;  %v3232_v15 = vld [vmem:[%s8717_s28 + $0xc] sm:$0x7] }
 0x13d   : > { %v530_v5 = vand.u32 %v8738_v2, %v507_v3  ;;  %v3252_v6 = vand.u32 %v3234_v4, %v8738_v2  ;;  %v6237_v9 = vld [vmem:[%s8702_s21 + $0x20] sm:$0xf]  ;;  %v6238_v10 = vld [vmem:[%s8702_s21 + $0x24] sm:$0x7]  ;;  %6999 = vmatprep.mubr.msk.bf16.mxu0 %vm518_vm2, %v7670_v8  ;;  %v3386_v16 = vld [vmem:[%s8717_s28 + $0xc] sm:$0xf]  ;;  %v6422_v19 = vcombine.low %v3231_v13, %v3232_v15 }
 0x13e   : > { %v6240_v11 = vcombine.low %v6237_v9, %v6238_v10  ;;  %v500_v12 = vld [vmem:[#allocation10] sm:$0x3]  ;;  %v3394_v18 = vshll.u32 %v7670_v8, 16  ;;  %v3313_v20 = vld [vmem:[#allocation10 + $0x42] sm:$0x3]  ;;  %v8757_v21 = vcombine.low %v3231_v13, %v3386_v16  ;;  %v8762_v23 = vld [vmem:[%s8717_s28 + $0x18] sm:$0xff]  }
 0x13f   : > { %6805 = vmatprep.subr.bf16.mxu1 %v530_v5  ;;  %6997 = vmatprep.subr.bf16.mxu0 %v3252_v6  ;;  %v598_v14 = vand.u32 %v8738_v2, %v500_v12  ;;  %v7675_v17 = vld [vmem:[%s8702_s21] sm:$0xff]   ;;  %v3331_v22 = vand.u32 %v3313_v20, %v8738_v2  ;;  %v3392_v24 = vshrl.u32 %v7670_v8, 16  ;;  %v498_v25 = vld [vmem:[%s8702_s21 + $0x8] sm:$0xf]  ;;  %v649_v29 = vld [vmem:[%s8702_s21 + $0xc] sm:$0xf] }
 0x140   : > { %6806 = vmatpush3.bf16.msra.mxu1 %v530_v5  ;;  %6998 = vmatpush3.bf16.msra.mxu0 %v3252_v6  ;;  %v651_v26 = vld [vmem:[#allocation10 + $0x4] sm:$0x3]  ;;  %v656_v30 = vshrl.u32 %v7675_v17, 16  ;;  %v658_v31 = vshll.u32 %v7675_v17, 16  ;;  %v3396_v32 = vrot.slane %v3394_v18, 1  ;;  %v6247_v34 = vcombine.low %v498_v25, %v649_v29  ;;  %s9543_s17 = sld [smem:[#allocation22_spill]] }
 0x141   : > { %6811 = vmatprep.subr.bf16.mxu1 %v598_v14  ;;  %7003 = vmatprep.subr.bf16.mxu0 %v3331_v22  ;;  %v677_v27 = vand.u32 %v651_v26, %v8738_v2  ;;  %v3388_v28 = vld [vmem:[#allocation10 + $0x44] sm:$0x3]  ;;  %v3399_v35 = vshll.u32 %v8757_v21, 16  ;;  %v499_v36 = vld [vmem:[%s8702_s21 + $0xc] sm:$0x7]  ;;  %v740_v51 = vshll.u32 %v8743_v7, 16 }
 0x142   : > { %v3413_v33 = vand.u32 %v3388_v28, %v8738_v2  ;;  %vm655_vm3 = vsmask.f32 7424  ;;  %v660_v37 = vrot.slane %v658_v31, 1  ;;  %v6250_v38 = vld [vmem:[%s8702_s21 + $0x24] sm:$0xf]  ;;  %v663_v41 = vshll.u32 %v6247_v34, 16 }
 0x143   : > { %6808 = vmatmul.mubr.msk.bf16.vlgmr.msra.gmra.mrb[0].mxu1 %vm518_vm2, %v6240_v11  ;;  %7000 = vmatmul.mubr.msk.bf16.vlgmr.msra.gmra.mrb[0].mxu0 %vm518_vm2, %v6422_v19  ;;  %v6427_v39 = vld [vmem:[%s8717_s28 + $0x20] sm:$0xf]  ;;  %v6428_v40 = vld [vmem:[%s8717_s28 + $0x24] sm:$0x7]  ;;  %v6244_v44 = vcombine.low %v498_v25, %v499_v36  ;;  %v3397_v46 = vor.u32 %v3396_v32, %v3392_v24  ;;  %v3401_v47 = vrot.slane %v3399_v35, 1  ;;  %v6251_v52 = vcombine.low %v6237_v9, %v6250_v38  ;;  %v7685_v36 = vld [vmem:[%s8702_s21 + $0x48] sm:$0xff]  }
 0x144   : > { %6812 = vmatpush3.bf16.msra.mxu1 %v598_v14  ;;  %6813 = vmatprep.mubr.msk.bf16.mxu1 %vm518_vm2, %v7675_v17  ;;  %v661_v42 = vor.u32 %v660_v37, %v656_v30  ;;  %v734_v43 = vld [vmem:[#allocation10 + $0x6] sm:$0x3]  ;;  %v665_v45 = vrot.slane %v663_v41, 1  ;;  %v6430_v48 = vcombine.low %v6427_v39, %v6428_v40  ;;  %v3476_v55 = vshll.u32 %v8762_v23, 16  ;;  %v820_v6 = vld [vmem:[#allocation10 + $0x8] sm:$0x3] }
 0x145   : > { %7004 = vmatpush3.bf16.msra.mxu0 %v3331_v22  ;;  %7005 = vmatprep.mubr.msk.bf16.mxu0 %vm518_vm2, %v8762_v23  ;;  %v3470_v49 = vld [vmem:[#allocation10 + $0x46] sm:$0x3]  ;;  %v759_v54 = vand.u32 %v734_v43, %v8738_v2  ;;  %v3402_v56 = vsel %vm655_vm3, %v3397_v46, %v3401_v47  ;;  %v738_v59 = vshrl.u32 %v8743_v7, 16  ;;  %v742_v60 = vrot.slane %v740_v51, 1  ;;  %v3556_v11 = vld [vmem:[#allocation10 + $0x48] sm:$0x3] }
 0x146   : > { %6817 = vmatprep.subr.bf16.mxu1 %v677_v27  ;;  %7009 = vmatprep.subr.bf16.mxu0 %v3413_v33  ;;  %v6436_v50 = vld [vmem:[%s8717_s28 + $0x24] sm:$0xf]  ;;  %v666_v53 = vsel %vm655_vm3, %v661_v42, %v665_v45  ;;  %v3495_v57 = vand.u32 %v3470_v49, %v8738_v2  ;;  %v745_v61 = vshll.u32 %v6251_v52, 16  ;;  %v667_v62 = vshrl.u32 %v6247_v34, 16  ;;  %v899_v19 = vld [vmem:[#allocation10 + $0xa] sm:$0x3] }
 0x147   : > { %v6437_v58 = vcombine.low %v6427_v39, %v6436_v50  ;;  %v3474_v63 = vshrl.u32 %v8762_v23, 16  ;;  %v3478_v0 = vrot.slane %v3476_v55, 1  ;;  %v3403_v3 = vshrl.u32 %v8757_v21, 16  ;;  %v3635_v21 = vld [vmem:[#allocation10 + $0x4a] sm:$0x3]  ;;  %v7681_v22 = vld [vmem:[%s8702_s21 + $0x30] sm:$0xff]  }
 0x148   : > { %v743_v4 = vor.u32 %v742_v60, %v738_v59  ;;  %v747_v5 = vrot.slane %v745_v61, 1  ;;  %v669_v8 = vor.u32 %v667_v62, %v665_v45  ;;  %v838_v13 = vand.u32 %v820_v6, %v8738_v2  ;;  %v7682_v23 = vld [vmem:[%s8717_s28 + $0x30] sm:$0xff]   ;;  %v6256_v26 = vld [vmem:[%s8702_s21 + $0x38] sm:$0xf]  ;;  %v6443_v29 = vld [vmem:[%s8717_s28 + $0x3c] sm:$0x7] }
 0x149   : > { %v3481_v1 = vshll.u32 %v6437_v58, 16  ;;  %v3479_v9 = vor.u32 %v3478_v0, %v3474_v63  ;;  %v3405_v7 = vor.u32 %v3403_v3, %v3401_v47  ;;  %v3574_v15 = vand.u32 %v3556_v11, %v8738_v2  ;;  %v6442_v28 = vld [vmem:[%s8717_s28 + $0x38] sm:$0xf]  ;;  %v974_v31 = vld [vmem:[#allocation10 + $0xc] sm:$0x3]  ;;  %s9544_s6 = sld [smem:[#allocation31_spill]] }
 0x14a   : > { %v748_v12 = vsel %vm655_vm3, %v743_v4, %v747_v5  ;;  %v749_v16 = vshrl.u32 %v6251_v52, 16  ;;  %v3485_v17 = vshrl.u32 %v6437_v58, 16  ;;  %v917_v24 = vand.u32 %v899_v19, %v8738_v2  ;;  %v6270_v32 = vld [vmem:[%s8702_s21 + $0x3c] sm:$0xf]  ;;  %v3710_v34 = vld [vmem:[#allocation10 + $0x4c] sm:$0x3] }
 0x14b   : > { %v3483_v10 = vrot.slane %v3481_v1, 1  ;;  %v3653_v25 = vand.u32 %v3635_v21, %v8738_v2  ;;  %v6456_v35 = vld [vmem:[%s8717_s28 + $0x3c] sm:$0xf]  ;;  %v8814_v37 = vld [vmem:[%s8717_s28 + $0x48] sm:$0xff]   ;;  %v999_v38 = vand.u32 %v974_v31, %v8738_v2  ;;  %v6271_v39 = vcombine.low %v6256_v26, %v6270_v32  ;;  %v6264_v50 = vld [vmem:[%s8702_s21 + $0x50] sm:$0xf] }
 0x14c   : > { %v751_v18 = vor.u32 %v749_v16, %v747_v5  ;;  %v980_v40 = vshll.u32 %v7681_v22, 16  ;;  %v3735_v41 = vand.u32 %v3710_v34, %v8738_v2  ;;  %v6457_v42 = vcombine.low %v6442_v28, %v6456_v35  ;;  %v6265_v51 = vld [vmem:[%s8702_s21 + $0x54] sm:$0x7]  ;;  %v6450_v52 = vld [vmem:[%s8717_s28 + $0x50] sm:$0xf]  ;;  %s9545_s14 = sld [smem:[#allocation30_spill]] }
 0x14d   : > { %v3484_v14 = vsel %vm655_vm3, %v3479_v9, %v3483_v10  ;;  %v3487_v20 = vor.u32 %v3485_v17, %v3483_v10  ;;  %v3716_v43 = vshll.u32 %v7682_v23, 16  ;;  %v985_v46 = vshll.u32 %v6271_v39, 16  ;;  %v6274_v58 = vld [vmem:[%s8702_s21 + $0x54] sm:$0xf]  ;;  %v7695_v31 = vld [vmem:[%s8717_s28] sm:$0xf8]  }
 0x14e   : > { %v982_v45 = vrot.slane %v980_v40, 1  ;;  %v3714_v47 = vshrl.u32 %v7682_v23, 16  ;;  %v3721_v49 = vshll.u32 %v6457_v42, 16  ;;  %v6267_v59 = vcombine.low %v6264_v50, %v6265_v51  ;;  %v6460_v62 = vld [vmem:[%s8717_s28 + $0x54] sm:$0xf]  ;;  %v8856_v40 = vld [vmem:[%s8702_s21 + $0x20] sm:$0xff]  }
 0x14f   : > { %6814 = vmatmul.mubr.msk.bf16.vlgmr.msra.gmra.mrb[0].mxu1 %vm518_vm2, %v6244_v44  ;;  %7006 = vmatmul.mubr.msk.bf16.vlgmr.msra.gmra.mrb[0].mxu0 %vm518_vm2, %v6430_v48  ;;  %v978_v44 = vshrl.u32 %v7681_v22, 16  ;;  %v3718_v48 = vrot.slane %v3716_v43, 1  ;;  %v1062_v0 = vshll.u32 %v7685_v36, 16  ;;  %v6275_v4 = vcombine.low %v6264_v50, %v6274_v58  ;;  %v7698_v43 = vld [vmem:[%s8717_s28 + $0x10] ss:$0 sps:$4 sm:$0x33]  }
 0x150   : > { %6818 = vmatpush3.bf16.msra.mxu1 %v677_v27  ;;  %7010 = vmatpush3.bf16.msra.mxu0 %v3413_v33  ;;  %v6257_v27 = vld [vmem:[%s8702_s21 + $0x3c] sm:$0x7]  ;;  %v6445_v33 = vcombine.low %v6442_v28, %v6443_v29  ;;  %v3723_v61 = vrot.slane %v3721_v49, 1  ;;  %v3798_v9 = vshll.u32 %v8814_v37, 16  ;;  %v1060_v10 = vshrl.u32 %v7685_v36, 16  ;;  %v8846_v29 = vld [vmem:[%s8702_s21 + $0x8] sm:$0xff]  }
 0x151   : > { %6819 = vmatprep.mubr.msk.bf16.mxu1 %vm518_vm2, %v666_v53  ;;  %7011 = vmatprep.mubr.msk.bf16.mxu0 %vm518_vm2, %v3402_v56  ;;  %v6259_v30 = vcombine.low %v6256_v26, %v6257_v27  ;;  %v6451_v53 = vld [vmem:[%s8717_s28 + $0x54] sm:$0x7]  ;;  %v983_v55 = vor.u32 %v982_v45, %v978_v44  ;;  %v987_v56 = vrot.slane %v985_v46, 1  ;;  %v3719_v60 = vor.u32 %v3718_v48, %v3714_v47  ;;  %v3965_v45 = vld [vmem:[#allocation10 + $0x52] sm:$0x3]  ;;  %v8868_v51 = vld [vmem:[%s8717_s28 + $0x20] sm:$0xff]  }
 0x152   : > { %6823 = vmatprep.subr.bf16.mxu1 %v759_v54  ;;  %7015 = vmatprep.subr.bf16.mxu0 %v3495_v57  ;;  %v6453_v63 = vcombine.low %v6450_v52, %v6451_v53  ;;  %v1067_v11 = vshll.u32 %v6275_v4, 16  ;;  %v3725_v16 = vshrl.u32 %v6457_v42, 16  ;;  %v1071_v32 = vshrl.u32 %v6275_v4, 16  ;;  %v8860_v46 = vld [vmem:[%s8702_s21 + $0x18] sm:$0xf8]   ;;  %s7451_s4 = smul.u32 20, %s9544_s6 }
 0x153   : > { %v988_v1 = vsel %vm655_vm3, %v983_v55, %v987_v56  ;;  %v3724_v5 = vsel %vm655_vm3, %v3719_v60, %v3723_v61  ;;  %vm1156_vm4 = vcmask 1044480   ;;  %v8863_v47 = vld [vmem:[%s8717_s28 + $0x18] sm:$0xf8]   ;;  %v3895_v53 = vrot.slane %v7698_v43, 3  ;;  %s6609_s0 = sshll.u32 %s9545_s14, 2  ;;  %s9546_s15 = sld [smem:[#allocation34_spill]] }
 0x154   : > { %v8874_v55 = vld [vmem:[%s8702_s21 + $0x28] ss:$0 sps:$4 sm:$0x33]   ;;  %v3979_v60 = vrot.slane %v8863_v47, 3  ;;  %v4053_v4 = vshrl.u32 %v7695_v31, 16  ;;  %v4147_v43 = vshrl.u32 %v8863_v47, 16  ;;  %s6004_s26 = sadd.s32 %s7451_s4, %s6609_s0 }
 0x155   : > { %v8879_v58 = vld [vmem:[%s8717_s28 + $0x28] ss:$0 sps:$4 sm:$0x33]   ;;  %vm1317_vm5 = vsmask.f32 4352 }
 0x159   : > { %p9549_p13 = scmp.ne.s32.totalorder %s9546_s15, 0 }
 0x15b   : > { %6820 = vmatmul.mubr.msk.bf16.vlgmr.msra.gmra.mrb[0].mxu1 %vm518_vm2, %v669_v8  ;;  %7012 = vmatmul.mubr.msk.bf16.vlgmr.msra.gmra.mrb[0].mxu0 %vm518_vm2, %v3405_v7  ;;  %v6461_v8 = vcombine.low %v6450_v52, %v6460_v62  ;;  %v1064_v7 = vrot.slane %v1062_v0, 1 }
 0x15c   : > { %6824 = vmatpush3.bf16.msra.mxu1 %v759_v54  ;;  %7016 = vmatpush3.bf16.msra.mxu0 %v3495_v57  ;;  %v1056_v54 = vld [vmem:[#allocation10 + $0xe] sm:$0x3] }
 0x15d   : > { %6825 = vmatprep.mubr.msk.bf16.mxu1 %vm518_vm2, %v748_v12  ;;  %7017 = vmatprep.mubr.msk.bf16.mxu0 %vm518_vm2, %v3484_v14  ;;  %v3792_v57 = vld [vmem:[#allocation10 + $0x4e] sm:$0x3]  ;;  %v1081_v3 = vand.u32 %v1056_v54, %v8738_v2  ;;  %v989_v12 = vshrl.u32 %v6271_v39, 16  ;;  %v3800_v14 = vrot.slane %v3798_v9, 1  ;;  %v1065_v17 = vor.u32 %v1064_v7, %v1060_v10  ;;  %v1230_v39 = vld [vmem:[#allocation10 + $0x12] sm:$0x3] }
 0x15e   : > { %6829 = vmatprep.subr.bf16.mxu1 %v838_v13  ;;  %7021 = vmatprep.subr.bf16.mxu0 %v3574_v15  ;;  %v3817_v6 = vand.u32 %v3792_v57, %v8738_v2  ;;  %v3807_v34 = vshrl.u32 %v6461_v8, 16  ;;  %v1256_v50 = vand.u32 %v1230_v39, %v8738_v2  ;;  %v3991_v54 = vand.u32 %v3965_v45, %v8738_v2  ;;  %v1313_v9 = vld [vmem:[#allocation10 + $0x14] sm:$0x3]  ;;  %v7705_v10 = vld [vmem:[%s8702_s21 + $0x10] ss:$0 sps:$4 sm:$0x77]  }
 0x15f   : > { %v991_v19 = vor.u32 %v989_v12, %v987_v56  ;;  %v1245_v57 = vrot.slane %v8856_v40, 3  ;;  %v7706_v7 = vld [vmem:[%s8717_s28 + $0x10] ss:$0 sps:$4 sm:$0x77]   ;;  %v4048_v12 = vld [vmem:[#allocation10 + $0x54] sm:$0x3] }
 0x167   : > { %6826 = vmatmul.mubr.msk.bf16.vlgmr.msra.gmra.mrb[0].mxu1 %vm518_vm2, %v751_v18  ;;  %7018 = vmatmul.mubr.msk.bf16.vlgmr.msra.gmra.mrb[0].mxu0 %vm518_vm2, %v3487_v20  ;;  %v1069_v18 = vrot.slane %v1067_v11, 1  ;;  %v3982_v11 = vrot.slane %v8879_v58, 3 }
 0x168   : > { %6830 = vmatpush3.bf16.msra.mxu1 %v838_v13  ;;  %7022 = vmatpush3.bf16.msra.mxu0 %v3574_v15  ;;  %v3796_v13 = vshrl.u32 %v8814_v37, 16  ;;  %v3803_v15 = vshll.u32 %v6461_v8, 16 }
 0x169   : > { %6831 = vmatprep.mubr.msk.bf16.mxu1 %vm518_vm2, %v7681_v22  ;;  %7023 = vmatprep.mubr.msk.bf16.mxu0 %vm518_vm2, %v7682_v23  ;;  %v1142_v22 = vld [vmem:[#allocation10 + $0x10] sm:$0x3]  ;;  %v3727_v23 = vor.u32 %v3725_v16, %v3723_v61  ;;  %v3980_v61 = vrot.slane %v8868_v51, 3 }
 0x16a   : > { %6835 = vmatprep.subr.bf16.mxu1 %v917_v24  ;;  %7027 = vmatprep.subr.bf16.mxu0 %v3653_v25  ;;  %v3801_v20 = vor.u32 %v3800_v14, %v3796_v13  ;;  %v3805_v21 = vrot.slane %v3803_v15, 1  ;;  %v1169_v26 = vand.u32 %v1142_v22, %v8738_v2  ;;  %v1336_v22 = vshrl.u32 %v7705_v10, 16 }
 0x16c   : > { %v3806_v27 = vsel %vm655_vm3, %v3801_v20, %v3805_v21  ;;  %v3809_v44 = vor.u32 %v3807_v34, %v3805_v21 }
 0x173   : > { %6832 = vmatmul.mubr.msk.bf16.vlgmr.msra.gmra.mrb[0].mxu1 %vm518_vm2, %v6259_v30  ;;  %7024 = vmatmul.mubr.msk.bf16.vlgmr.msra.gmra.mrb[0].mxu0 %vm518_vm2, %v6445_v33  ;;  %v7693_v30 = vld [vmem:[%s8702_s21] sm:$0xf8]   ;;  %v7696_v33 = vld [vmem:[%s8717_s28 + $0x8] sm:$0xff]  }
 0x174   : > { %6836 = vmatpush3.bf16.msra.mxu1 %v917_v24  ;;  %7028 = vmatpush3.bf16.msra.mxu0 %v3653_v25  ;;  %v3878_v24 = vld [vmem:[#allocation10 + $0x50] sm:$0x3]  ;;  %v1070_v25 = vsel %vm655_vm3, %v1065_v17, %v1069_v18  ;;  %v1157_v35 = vrot.slane %v7693_v30, 3  ;;  %v3893_v42 = vrot.slane %v7696_v33, 3  ;;  %v1319_v56 = vshrl.u32 %v7693_v30, 16 }
 0x175   : > { %6837 = vmatprep.mubr.msk.bf16.mxu1 %vm518_vm2, %v7685_v36  ;;  %7029 = vmatprep.mubr.msk.bf16.mxu0 %vm518_vm2, %v8814_v37  ;;  %v3904_v28 = vand.u32 %v3878_v24, %v8738_v2  ;;  %v1158_v36 = vrot.slane %v8846_v29, 3  ;;  %v3892_v37 = vrot.slane %v7695_v31, 3  ;;  %v1322_v62 = vshll.u32 %v7693_v30, 16 }
 0x176   : > { %6841 = vmatprep.subr.bf16.mxu1 %v999_v38  ;;  %7033 = vmatprep.subr.bf16.mxu0 %v3735_v41  ;;  %v1321_v0 = vrot.slane %v1319_v56, 3  ;;  %v4064_v8 = vshll.u32 %v7696_v33, 16  ;;  %v4055_v17 = vrot.slane %v4053_v4, 3  ;;  %v3896_v21 = vsel %vm1156_vm4, %v3893_v42, %v3895_v53 }
 0x177   : > { %v1159_v48 = vsel %vm1156_vm4, %v1157_v35, %v1158_v36  ;;  %v3894_v52 = vsel %vm1156_vm4, %v3892_v37, %v3893_v42  ;;  %v1324_v13 = vrot.slane %v1322_v62, 4  ;;  %v1413_v30 = vshrl.u32 %v8860_v46, 16 }
 0x178   : > { %v4066_v20 = vrot.slane %v4064_v8, 4  ;;  %v1424_v42 = vshll.u32 %v8856_v40, 16  ;;  %v1506_v8 = vld [vmem:[#allocation10 + $0x18] sm:$0x3] }
 0x179   : > { %v1325_v34 = vor.u32 %v1324_v13, %v1321_v0  ;;  %v1415_v39 = vrot.slane %v1413_v30, 3 }
 0x17f   : > { %6838 = vmatmul.mubr.msk.bf16.vlgmr.msra.gmra.mrb[0].mxu1 %vm518_vm2, %v6267_v59  ;;  %7030 = vmatmul.mubr.msk.bf16.vlgmr.msra.gmra.mrb[0].mxu0 %vm518_vm2, %v6453_v63  ;;  %v1244_v59 = vrot.slane %v8860_v46, 3  ;;  %v1247_v63 = vrot.slane %v8874_v55, 3 }
 0x180   : > { %6842 = vmatpush3.bf16.msra.mxu1 %v999_v38  ;;  %7034 = vmatpush3.bf16.msra.mxu0 %v3735_v41  ;;  %v7697_v38 = vld [vmem:[%s8702_s21 + $0x10] ss:$0 sps:$4 sm:$0x33]   ;;  %v1073_v41 = vor.u32 %v1071_v32, %v1069_v18  ;;  %v1338_v32 = vrot.slane %v1336_v22, 3 }
 0x181   : > { %6843 = vmatprep.mubr.msk.bf16.mxu1 %vm518_vm2, %v988_v1  ;;  %7035 = vmatprep.mubr.msk.bf16.mxu0 %vm518_vm2, %v3724_v5  ;;  %v1160_v49 = vrot.slane %v7697_v38, 3  ;;  %v1327_v1 = vshrl.u32 %v8846_v29, 16  ;;  %v4056_v5 = vshll.u32 %v7695_v31, 16  ;;  %v1246_v24 = vsel %vm1156_vm4, %v1244_v59, %v1245_v57  ;;  %v1408_v38 = vld [vmem:[#allocation10 + $0x16] sm:$0x3] }
 0x182   : > { %6847 = vmatprep.subr.bf16.mxu1 %v1081_v3  ;;  %7039 = vmatprep.subr.bf16.mxu0 %v3817_v6  ;;  %v1416_v31 = vshll.u32 %v8860_v46, 16  ;;  %v4150_v46 = vshll.u32 %v8863_v47, 16  ;;  %v1248_v53 = vsel %vm1156_vm4, %v1245_v57, %v1247_v63  ;;  %v1445_v56 = vand.u32 %v1408_v38, %v8738_v2  ;;  %v7707_v63 = vld [vmem:[%s8702_s21 + $0x28] ss:$0 sps:$4 sm:$0x77]  }
 0x183   : > { %v1161_v14 = vsel %vm1156_vm4, %v1158_v36, %v1160_v49  ;;  %v1329_v15 = vrot.slane %v1327_v1, 3  ;;  %v4058_v18 = vrot.slane %v4056_v5, 4  ;;  %v4158_v49 = vshll.u32 %v8868_v51, 16  ;;  %v7708_v1 = vld [vmem:[%s8717_s28 + $0x28] ss:$0 sps:$4 sm:$0x77]  }
 0x184   : > { %v1418_v45 = vrot.slane %v1416_v31, 4  ;;  %v4149_v57 = vrot.slane %v4147_v43, 3  ;;  %v4152_v59 = vrot.slane %v4150_v46, 4  ;;  %v4164_v13 = vshrl.u32 %v7708_v1, 16  ;;  %v8975_v46 = vld [vmem:[%s8717_s28 + $0x48] sm:$0xf8]  }
 0x185   : > { %v7714_v43 = vld [vmem:[%s8717_s28 + $0x40] ss:$0 sps:$4 sm:$0x33]  }
 0x186   : > { %v4153_v5 = vor.u32 %v4152_v59, %v4149_v57 }
 0x18b   : > { %6844 = vmatmul.mubr.msk.bf16.vlgmr.msra.gmra.mrb[0].mxu1 %vm518_vm2, %v991_v19  ;;  %7036 = vmatmul.mubr.msk.bf16.vlgmr.msra.gmra.mrb[0].mxu0 %vm518_vm2, %v3727_v23  ;;  %v1339_v23 = vshll.u32 %v7705_v10, 16  ;;  %v1430_v10 = vshrl.u32 %v7707_v63, 16 }
 0x18c   : > { %6848 = vmatpush3.bf16.msra.mxu1 %v1081_v3  ;;  %7040 = vmatpush3.bf16.msra.mxu0 %v3817_v6  ;;  %v1330_v3 = vshll.u32 %v8846_v29, 16  ;;  %v4061_v6 = vshrl.u32 %v7696_v33, 16  ;;  %v4085_v29 = vand.u32 %v4048_v12, %v8738_v2 }
 0x18d   : > { %6849 = vmatprep.mubr.msk.bf16.mxu1 %vm518_vm2, %v1070_v25  ;;  %7041 = vmatprep.mubr.msk.bf16.mxu0 %vm518_vm2, %v3806_v27  ;;  %v1351_v25 = vand.u32 %v1313_v9, %v8738_v2  ;;  %v4073_v27 = vshll.u32 %v7706_v7, 16  ;;  %v1341_v33 = vrot.slane %v1339_v23, 4  ;;  %v8941_v23 = vld [vmem:[%s8702_s21 + $0x30] sm:$0xf8]  }
 0x18e   : > { %6853 = vmatprep.subr.bf16.mxu1 %v1169_v26  ;;  %7045 = vmatprep.subr.bf16.mxu0 %v3904_v28  ;;  %v1332_v16 = vrot.slane %v1330_v3, 4  ;;  %v4063_v19 = vrot.slane %v4061_v6, 3  ;;  %v1419_v3 = vor.u32 %v1418_v45, %v1415_v39  ;;  %v8970_v45 = vld [vmem:[%s8702_s21 + $0x50] sm:$0xff]   ;;  %v1681_v57 = vshrl.u32 %v8941_v23, 16 }
 0x18f   : > { %v4075_v37 = vrot.slane %v4073_v27, 4  ;;  %v1342_v62 = vor.u32 %v1341_v33, %v1338_v32  ;;  %v1593_v33 = vld [vmem:[#allocation10 + $0x1a] sm:$0x3] }
 0x190   : > { %v1333_v35 = vor.u32 %v1332_v16, %v1329_v15  ;;  %v1532_v16 = vand.u32 %v1506_v8, %v8738_v2  ;;  %v1619_v38 = vand.u32 %v1593_v33, %v8738_v2 }
 0x192   : > { %v1334_v55 = vsel %vm1317_vm5, %v1325_v34, %v1333_v35  ;;  %v1343_v9 = vsel %vm1317_vm5, %v1333_v35, %v1342_v62  ;;  %v4327_v35 = vld [vmem:[#allocation10 + $0x5a] sm:$0x3] }
 0x197   : > { %6850 = vmatmul.mubr.msk.bf16.vlgmr.msra.gmra.mrb[0].mxu1 %vm518_vm2, %v1073_v41  ;;  %7042 = vmatmul.mubr.msk.bf16.vlgmr.msra.gmra.mrb[0].mxu0 %vm518_vm2, %v3809_v44  ;;  %v1421_v41 = vshrl.u32 %v8856_v40, 16  ;;  %v4142_v44 = vld [vmem:[#allocation10 + $0x56] sm:$0x3] }
 0x198   : > { %6854 = vmatpush3.bf16.msra.mxu1 %v1169_v26  ;;  %7046 = vmatpush3.bf16.msra.mxu0 %v3904_v28  ;;  %v4070_v26 = vshrl.u32 %v7706_v7, 16  ;;  %v3981_v28 = vsel %vm1156_vm4, %v3979_v60, %v3980_v61  ;;  %v4179_v58 = vand.u32 %v4142_v44, %v8738_v2  ;;  %v1433_v7 = vshll.u32 %v7707_v63, 16  ;;  %v8967_v44 = vld [vmem:[%s8702_s21 + $0x48] sm:$0xf8]  }
 0x199   : > { %6855 = vmatprep.mubr.msk.bf16.mxu1 %vm518_vm2, %v1159_v48  ;;  %7047 = vmatprep.mubr.msk.bf16.mxu0 %vm518_vm2, %v3894_v52  ;;  %v4155_v48 = vshrl.u32 %v8868_v51, 16  ;;  %v4067_v52 = vor.u32 %v4066_v20, %v4063_v19  ;;  %v1423_v40 = vrot.slane %v1421_v41, 3  ;;  %v1426_v51 = vrot.slane %v1424_v42, 4  ;;  %v7713_v41 = vld [vmem:[%s8702_s21 + $0x40] ss:$0 sps:$4 sm:$0x33]  }
 0x19a   : > { %6859 = vmatprep.subr.bf16.mxu1 %v1256_v50  ;;  %7051 = vmatprep.subr.bf16.mxu0 %v3991_v54  ;;  %v4072_v36 = vrot.slane %v4070_v26, 3  ;;  %v1432_v19 = vrot.slane %v1430_v10, 3  ;;  %v1435_v20 = vrot.slane %v1433_v7, 4  ;;  %v8950_v26 = vld [vmem:[%s8717_s28 + $0x38] sm:$0xff]   ;;  %v4353_v42 = vand.u32 %v4327_v35, %v8738_v2 }
 0x19b   : > { %v4157_v60 = vrot.slane %v4155_v48, 3  ;;  %v1427_v4 = vor.u32 %v1426_v51, %v1423_v40  ;;  %v4255_v32 = vrot.slane %v8950_v26, 3  ;;  %v8978_v48 = vld [vmem:[%s8717_s28 + $0x50] sm:$0xff]   ;;  %v4410_v51 = vld [vmem:[#allocation10 + $0x5c] sm:$0x3]  ;;  %v1775_v35 = vshrl.u32 %v8967_v44, 16 }
 0x19c   : > { %v4076_v0 = vor.u32 %v4075_v37, %v4072_v36  ;;  %v1436_v27 = vor.u32 %v1435_v20, %v1432_v19  ;;  %v4447_v8 = vand.u32 %v4410_v51, %v8738_v2  ;;  %v7722_v19 = vld [vmem:[%s8717_s28 + $0x40] ss:$0 sps:$4 sm:$0x77]   ;;  %v7723_v51 = vld [vmem:[%s8702_s21 + $0x58] ss:$0 sps:$4 sm:$0x77]  }
 0x19d   : > { %v1428_v15 = vsel %vm1317_vm5, %v1419_v3, %v1427_v4  ;;  %v4426_v3 = vshll.u32 %v8950_v26, 16  ;;  %v4435_v33 = vshll.u32 %v7722_v19, 16 }
 0x19e   : > { %v4077_v12 = vsel %vm1317_vm5, %v4067_v52, %v4076_v0  ;;  %v1437_v34 = vsel %vm1317_vm5, %v1427_v4, %v1436_v27 }
 0x1a3   : > { %6856 = vmatmul.mubr.msk.bf16.vlgmr.msra.gmra.mrb[0].mxu1 %vm518_vm2, %v1161_v14  ;;  %7048 = vmatmul.mubr.msk.bf16.vlgmr.msra.gmra.mrb[0].mxu0 %vm518_vm2, %v3896_v21  ;;  %v4167_v14 = vshll.u32 %v7708_v1, 16  ;;  %v4166_v21 = vrot.slane %v4164_v13, 3  ;;  %v4423_v1 = vshrl.u32 %v8950_v26, 16 }
 0x1a4   : > { %6860 = vmatpush3.bf16.msra.mxu1 %v1256_v50  ;;  %7052 = vmatpush3.bf16.msra.mxu0 %v3991_v54  ;;  %v4059_v50 = vor.u32 %v4058_v18, %v4055_v17  ;;  %v3983_v54 = vsel %vm1156_vm4, %v3980_v61, %v3982_v11  ;;  %v4160_v61 = vrot.slane %v4158_v49, 4  ;;  %v4240_v11 = vld [vmem:[#allocation10 + $0x58] sm:$0x3]  ;;  %v1523_v49 = vrot.slane %v7713_v41, 3 }
 0x1a5   : > { %6861 = vmatprep.mubr.msk.bf16.mxu1 %vm518_vm2, %v1246_v24  ;;  %7053 = vmatprep.mubr.msk.bf16.mxu0 %vm518_vm2, %v3981_v28  ;;  %v4266_v18 = vand.u32 %v4240_v11, %v8738_v2  ;;  %v4169_v22 = vrot.slane %v4167_v14, 4  ;;  %v8944_v24 = vld [vmem:[%s8702_s21 + $0x38] sm:$0xff]   ;;  %v4425_v14 = vrot.slane %v4423_v1, 3  ;;  %v4509_v41 = vshrl.u32 %v8975_v46, 16 }
 0x1a6   : > { %6865 = vmatprep.subr.bf16.mxu1 %v1351_v25  ;;  %7057 = vmatprep.subr.bf16.mxu0 %v4085_v29  ;;  %v4068_v47 = vsel %vm1317_vm5, %v4059_v50, %v4067_v52  ;;  %v4161_v6 = vor.u32 %v4160_v61, %v4157_v60  ;;  %v1521_v30 = vrot.slane %v8944_v24, 3  ;;  %v4257_v50 = vrot.slane %v7714_v43, 3 }
 0x1a7   : > { %v4170_v28 = vor.u32 %v4169_v22, %v4166_v21  ;;  %v1607_v52 = vrot.slane %v8967_v44, 3  ;;  %v1684_v60 = vshll.u32 %v8941_v23, 16  ;;  %v1689_v61 = vshrl.u32 %v8944_v24, 16  ;;  %v1770_v22 = vld [vmem:[#allocation10 + $0x1e] sm:$0x3] }
 0x1a8   : > { %v4162_v17 = vsel %vm1317_vm5, %v4153_v5, %v4161_v6  ;;  %v1692_v62 = vshll.u32 %v8944_v24, 16  ;;  %v7719_v5 = vld [vmem:[%s8702_s21 + $0x58] ss:$0 sps:$4 sm:$0x33]   ;;  %v4517_v43 = vshrl.u32 %v8978_v48, 16 }
 0x1a9   : > { %v4171_v36 = vsel %vm1317_vm5, %v4161_v6, %v4170_v28  ;;  %v7720_v6 = vld [vmem:[%s8717_s28 + $0x58] ss:$0 sps:$4 sm:$0x33]   ;;  %v1686_v10 = vrot.slane %v1684_v60, 4  ;;  %v1691_v7 = vrot.slane %v1689_v61, 3 }
 0x1aa   : > { %v1694_v11 = vrot.slane %v1692_v62, 4 }
 0x1ac   : > { %v1695_v21 = vor.u32 %v1694_v11, %v1691_v7 }
 0x1af   : > { %6862 = vmatmul.mubr.msk.bf16.vlgmr.msra.gmra.mrb[0].mxu1 %vm518_vm2, %v1248_v53  ;;  %7054 = vmatmul.mubr.msk.bf16.vlgmr.msra.gmra.mrb[0].mxu0 %vm518_vm2, %v3983_v54  ;;  %v1608_v53 = vrot.slane %v8970_v45, 3  ;;  %v1676_v54 = vld [vmem:[#allocation10 + $0x1c] sm:$0x3] }
 0x1b0   : > { %6866 = vmatpush3.bf16.msra.mxu1 %v1351_v25  ;;  %7058 = vmatpush3.bf16.msra.mxu0 %v4085_v29  ;;  %v8947_v25 = vld [vmem:[%s8717_s28 + $0x30] sm:$0xf8]   ;;  %v1520_v29 = vrot.slane %v8941_v23, 3  ;;  %v1713_v59 = vand.u32 %v1676_v54, %v8738_v2 }
 0x1b1   : > { %6867 = vmatprep.mubr.msk.bf16.mxu1 %vm518_vm2, %v1334_v55  ;;  %7059 = vmatprep.mubr.msk.bf16.mxu0 %vm518_vm2, %v4068_v47  ;;  %v4254_v31 = vrot.slane %v8947_v25, 3  ;;  %v4341_v55 = vrot.slane %v8975_v46, 3  ;;  %v1524_v47 = vsel %vm1156_vm4, %v1521_v30, %v1523_v49  ;;  %v1609_v40 = vsel %vm1156_vm4, %v1607_v52, %v1608_v53 }
 0x1b2   : > { %6871 = vmatprep.subr.bf16.mxu1 %v1445_v56  ;;  %7063 = vmatprep.subr.bf16.mxu0 %v4179_v58  ;;  %v1522_v37 = vsel %vm1156_vm4, %v1520_v29, %v1521_v30  ;;  %v4415_v63 = vshrl.u32 %v8947_v25, 16  ;;  %v4418_v0 = vshll.u32 %v8947_v25, 16  ;;  %v4504_v25 = vld [vmem:[#allocation10 + $0x5e] sm:$0x3]  ;;  %v1807_v30 = vand.u32 %v1770_v22, %v8738_v2 }
 0x1b3   : > { %v4256_v39 = vsel %vm1156_vm4, %v4254_v31, %v4255_v32  ;;  %v4432_v31 = vshrl.u32 %v7722_v19, 16  ;;  %v4520_v49 = vshll.u32 %v8978_v48, 16  ;;  %v1946_v19 = vld [vmem:[#allocation10 + $0x22] sm:$0x3] }
 0x1b4   : > { %v4420_v13 = vrot.slane %v4418_v0, 4  ;;  %v1867_v0 = vld [vmem:[#allocation10 + $0x20] sm:$0x3] }
 0x1b5   : > { %v1885_v7 = vand.u32 %v1867_v0, %v8738_v2  ;;  %v6529_v0 = vld [vmem:[%s8724_s13 + $0x24] sm:$0xf] }
 0x1bb   : > { %6868 = vmatmul.mubr.msk.bf16.vlgmr.msra.gmra.mrb[0].mxu1 %vm518_vm2, %v1343_v9  ;;  %7060 = vmatmul.mubr.msk.bf16.vlgmr.msra.gmra.mrb[0].mxu0 %vm518_vm2, %v4077_v12  ;;  %v1683_v9 = vrot.slane %v1681_v57, 3  ;;  %v4417_v12 = vrot.slane %v4415_v63, 3 }
 0x1bc   : > { %6872 = vmatpush3.bf16.msra.mxu1 %v1445_v56  ;;  %7064 = vmatpush3.bf16.msra.mxu0 %v4179_v58  ;;  %v4342_v56 = vrot.slane %v8978_v48, 3  ;;  %v4258_v58 = vsel %vm1156_vm4, %v4255_v32, %v4257_v50  ;;  %v4511_v48 = vrot.slane %v4509_v41, 3 }
 0x1bd   : > { %6873 = vmatprep.mubr.msk.bf16.mxu1 %vm518_vm2, %v1428_v15  ;;  %7065 = vmatprep.mubr.msk.bf16.mxu0 %vm518_vm2, %v4162_v17  ;;  %v4428_v15 = vrot.slane %v4426_v3, 4  ;;  %v4344_v17 = vrot.slane %v7720_v6, 3  ;;  %v1687_v20 = vor.u32 %v1686_v10, %v1683_v9  ;;  %v4421_v23 = vor.u32 %v4420_v13, %v4417_v12 }
 0x1be   : > { %6877 = vmatprep.subr.bf16.mxu1 %v1532_v16  ;;  %7069 = vmatprep.subr.bf16.mxu0 %v4266_v18  ;;  %v4343_v4 = vsel %vm1156_vm4, %v4341_v55, %v4342_v56  ;;  %v1792_v3 = vshrl.u32 %v7723_v51, 16 }
 0x1bf   : > { %v4429_v24 = vor.u32 %v4428_v15, %v4425_v14  ;;  %v4345_v27 = vsel %vm1156_vm4, %v4342_v56, %v4344_v17  ;;  %v1696_v32 = vsel %vm1317_vm5, %v1687_v20, %v1695_v21 }
 0x1c0   : > { %v1794_v13 = vrot.slane %v1792_v3, 3 }
 0x1c7   : > { %6874 = vmatmul.mubr.msk.bf16.vlgmr.msra.gmra.mrb[0].mxu1 %vm518_vm2, %v1437_v34  ;;  %7066 = vmatmul.mubr.msk.bf16.vlgmr.msra.gmra.mrb[0].mxu0 %vm518_vm2, %v4171_v36  ;;  %v4541_v34 = vand.u32 %v4504_v25, %v8738_v2  ;;  %v4430_v36 = vsel %vm1317_vm5, %v4421_v23, %v4429_v24  ;;  %v7725_v23 = vld [vmem:[%s8710_s19] sm:$0xff]   ;;  %v1964_v25 = vand.u32 %v1946_v19, %v8738_v2 }
 0x1c8   : > { %6878 = vmatpush3.bf16.msra.mxu1 %v1532_v16  ;;  %7070 = vmatpush3.bf16.msra.mxu0 %v4266_v18  ;;  %v1610_v16 = vrot.slane %v7719_v5, 3  ;;  %v7721_v18 = vld [vmem:[%s8702_s21 + $0x40] ss:$0 sps:$4 sm:$0x77]   ;;  %s485_s21 = sand.u32 1, %s9543_s17  }
 0x1c9   : > { %6879 = vmatprep.mubr.msk.bf16.mxu1 %vm518_vm2, %v1522_v37  ;;  %7071 = vmatprep.mubr.msk.bf16.mxu0 %vm518_vm2, %v4256_v39  ;;  %v1698_v28 = vshrl.u32 %v7721_v18, 16  ;;  %v1701_v29 = vshll.u32 %v7721_v18, 16  ;;  %v1778_v37 = vshll.u32 %v8967_v44, 16  ;;  %v1786_v39 = vshll.u32 %v8970_v45, 16  ;;  %v4601_v5 = vld [vmem:[#allocation10 + $0x60] sm:$0x3] }
 0x1ca   : > { %6883 = vmatprep.subr.bf16.mxu1 %v1619_v38  ;;  %7075 = vmatprep.subr.bf16.mxu0 %v4353_v42  ;;  %v1611_v26 = vsel %vm1156_vm4, %v1608_v53, %v1610_v16  ;;  %v4434_v44 = vrot.slane %v4432_v31, 3  ;;  %v4619_v12 = vand.u32 %v4601_v5, %v8738_v2  ;;  %s6234_s30 = sshll.u32 %s485_s21, 5  ;;  %s9322_s9 = scalar_lea.sflag [#allocation4], %s485_s21 }
 0x1cb   : > { %v1700_v50 = vrot.slane %v1698_v28, 3  ;;  %v1703_v52 = vrot.slane %v1701_v29, 4  ;;  %v1780_v53 = vrot.slane %v1778_v37, 4  ;;  %v1788_v55 = vrot.slane %v1786_v39, 4  ;;  %v1865_v28 = vld [vmem:[%s8710_s19 + $0xc] sm:$0x7] }
 0x1cc   : > { %v4598_v29 = vld [vmem:[%s8724_s13 + $0x8] sm:$0xf]  ;;  %v7729_v37 = vld [vmem:[%s8710_s19 + $0x18] sm:$0xff]   ;;  %s487_s12 = scalar_lea.vmem [#allocation13], %s6234_s30 }
 0x1cd   : > { %v2109_v5 = vshll.u32 %v7729_v37, 16  ;;  %s6007_s24 = sshll.u32 %s487_s12, 4  ;;  %s9313_s24 = int_to_ptr.vmem [resolvable:$true] %s6007_s24 }
 0x1ce   : > { %s7960_s27 = scalar_lea.vmem %s9313_s24, 512 }
 0x1cf   : > { %p7961_p9 = scmp.ne.s32.totalorder %s9313_s24, %s7960_s27 }
 0x1d1   : > { %p7962_p4 = pnand %p7961_p9, %p9549_p13 }
 0x1d3   : > { %6880 = vmatmul.mubr.msk.bf16.vlgmr.msra.gmra.mrb[0].mxu1 %vm518_vm2, %v1524_v47  ;;  %7072 = vmatmul.mubr.msk.bf16.vlgmr.msra.gmra.mrb[0].mxu0 %vm518_vm2, %v4258_v58  ;;  %v4519_v47 = vrot.slane %v4517_v43, 3  ;;  %v4522_v58 = vrot.slane %v4520_v49, 4  ;;  %p7963_p11 = pneg %p7962_p4 }
 0x1d4   : > { %6884 = vmatpush3.bf16.msra.mxu1 %v1619_v38  ;;  %7076 = vmatpush3.bf16.msra.mxu0 %v4353_v42  ;;  %v1783_v38 = vshrl.u32 %v8970_v45, 16  ;;  %v4512_v42 = vshll.u32 %v8975_v46, 16  ;;  %v4437_v45 = vrot.slane %v4435_v33, 4  ;;  %v1777_v46 = vrot.slane %v1775_v35, 3  ;;  %v2019_v33 = vld [vmem:[%s8710_s19 + $0xc] sm:$0xf] }
 0x1d5   : > { %6885 = vmatprep.mubr.msk.bf16.mxu1 %vm518_vm2, %v1609_v40  ;;  %7077 = vmatprep.mubr.msk.bf16.mxu0 %vm518_vm2, %v4343_v4  ;;  %v1704_v40 = vor.u32 %v1703_v52, %v1700_v50  ;;  %v4523_v63 = vor.u32 %v4522_v58, %v4519_v47  ;;  %v1795_v4 = vshll.u32 %v7723_v51, 16  ;;  %v4755_v35 = vld [vmem:[#allocation10 + $0x64] sm:$0x3]  ;;  %v2025_v52 = vshrl.u32 %v7725_v23, 16 }
 0x1d6   : > { %6889 = vmatprep.subr.bf16.mxu1 %v1713_v59  ;;  %7081 = vmatprep.subr.bf16.mxu0 %v4447_v8  ;;  %v1785_v54 = vrot.slane %v1783_v38, 3  ;;  %v4514_v56 = vrot.slane %v4512_v42, 4  ;;  %v4438_v57 = vor.u32 %v4437_v45, %v4434_v44  ;;  %v1781_v60 = vor.u32 %v1780_v53, %v1777_v46  ;;  %v9054_v38 = vld [vmem:[%s8724_s13 + $0x18] sm:$0xff]   ;;  %v6521_v47 = vld [vmem:[%s8724_s13 + $0x24] sm:$0x7] }
 0x1d7   : > { %v1705_v1 = vsel %vm1317_vm5, %v1695_v21, %v1704_v40  ;;  %v1797_v14 = vrot.slane %v1795_v4, 4  ;;  %v4680_v21 = vld [vmem:[#allocation10 + $0x62] sm:$0x3]  ;;  %v2027_v42 = vshll.u32 %v7725_v23, 16  ;;  %v4780_v43 = vand.u32 %v4755_v35, %v8738_v2  ;;  %v5002_v35 = vld [vmem:[#allocation10 + $0x6a] sm:$0x3] }
 0x1d8   : > { %v1789_v61 = vor.u32 %v1788_v55, %v1785_v54  ;;  %v4515_v62 = vor.u32 %v4514_v56, %v4511_v48  ;;  %v4439_v6 = vsel %vm1317_vm5, %v4429_v24, %v4438_v57  ;;  %v7726_v24 = vld [vmem:[%s8724_s13] sm:$0xff]  }
 0x1d9   : > { %v1798_v17 = vor.u32 %v1797_v14, %v1794_v13  ;;  %v4761_v50 = vshll.u32 %v7726_v24, 16  ;;  %v2029_v44 = vrot.slane %v2027_v42, 1  ;;  %v4759_v46 = vshrl.u32 %v7726_v24, 16  ;;  %v6334_v55 = vld [vmem:[%s8710_s19 + $0x20] sm:$0xf] }
 0x1da   : > { %v1790_v10 = vsel %vm1317_vm5, %v1781_v60, %v1789_v61  ;;  %v4524_v11 = vsel %vm1317_vm5, %v4515_v62, %v4523_v63  ;;  %v6335_v48 = vld [vmem:[%s8710_s19 + $0x24] sm:$0x7]  ;;  %v6520_v56 = vld [vmem:[%s8724_s13 + $0x20] sm:$0xf]  ;;  %v4841_v14 = vshrl.u32 %v9054_v38, 16 }
 0x1db   : > { %v1799_v20 = vsel %vm1317_vm5, %v1789_v61, %v1798_v17  ;;  %v4763_v53 = vrot.slane %v4761_v50, 1  ;;  %v2030_v58 = vor.u32 %v2029_v44, %v2025_v52  ;;  %v6337_v51 = vcombine.low %v6334_v55, %v6335_v48  ;;  %v2103_v60 = vld [vmem:[#allocation10 + $0x26] sm:$0x3]  ;;  %v6350_v42 = vld [vmem:[%s8710_s19 + $0x3c] sm:$0x7] }
 0x1dc   : > { %v6343_v61 = vld [vmem:[%s8710_s19 + $0x24] sm:$0xf]  ;;  %v6523_v62 = vcombine.low %v6520_v56, %v6521_v47  ;;  %v2128_v3 = vand.u32 %v2103_v60, %v8738_v2  ;;  %v2343_v52 = vld [vmem:[#allocation10 + $0x2c] sm:$0x3]  ;;  %v6363_v44 = vld [vmem:[%s8710_s19 + $0x3c] sm:$0xf] }
 0x1dd   : > { %v4764_v57 = vor.u32 %v4763_v53, %v4759_v46  ;;  %v6344_v4 = vcombine.low %v6334_v55, %v6343_v61  ;;  %v5077_v46 = vld [vmem:[#allocation10 + $0x6c] sm:$0x3]  ;;  %v6549_v53 = vld [vmem:[%s8724_s13 + $0x3c] sm:$0xf]  ;;  %v2368_v48 = vand.u32 %v2343_v52, %v8738_v2 }
 0x1de   : > { %v9103_v55 = vld [vmem:[%s8724_s13 + $0x48] sm:$0xff]  }
 0x1df   : > { %6886 = vmatmul.mubr.msk.bf16.vlgmr.msra.gmra.mrb[0].mxu1 %vm518_vm2, %v1611_v26  ;;  %7078 = vmatmul.mubr.msk.bf16.vlgmr.msra.gmra.mrb[0].mxu0 %vm518_vm2, %v4345_v27  ;;  %v4698_v26 = vand.u32 %v4680_v21, %v8738_v2  ;;  %v1864_v27 = vld [vmem:[%s8710_s19 + $0x8] sm:$0xf] }
 0x1e0   : > { %6890 = vmatpush3.bf16.msra.mxu1 %v1713_v59  ;;  %7082 = vmatpush3.bf16.msra.mxu0 %v4447_v8  ;;  %v7724_v59 = vld [vmem:[%s8717_s28 + $0x58] ss:$0 sps:$4 sm:$0x77]   ;;  %v6329_v31 = vcombine.low %v1864_v27, %v1865_v28  ;;  %v6340_v41 = vcombine.low %v1864_v27, %v2019_v33  ;;  %v2268_v33 = vld [vmem:[#allocation10 + $0x2a] sm:$0x3]  ;;  %s9547_s28 = sld [smem:[#allocation47_spill]] }
 0x1e1   : > { %6891 = vmatprep.mubr.msk.bf16.mxu1 %vm518_vm2, %v1696_v32  ;;  %7083 = vmatprep.mubr.msk.bf16.mxu0 %vm518_vm2, %v4430_v36  ;;  %v4526_v8 = vshrl.u32 %v7724_v59, 16  ;;  %v4529_v9 = vshll.u32 %v7724_v59, 16  ;;  %v2021_v32 = vld [vmem:[#allocation10 + $0x24] sm:$0x3]  ;;  %v4753_v36 = vld [vmem:[%s8724_s13 + $0xc] sm:$0xf] }
 0x1e2   : > { %6895 = vmatprep.subr.bf16.mxu1 %v1807_v30  ;;  %7087 = vmatprep.subr.bf16.mxu0 %v4541_v34  ;;  %v2046_v39 = vand.u32 %v2021_v32, %v8738_v2  ;;  %v6526_v49 = vcombine.low %v4598_v29, %v4753_v36  ;;  %v2032_v45 = vshll.u32 %v6340_v41, 16  ;;  %v2036_v13 = vshrl.u32 %v6340_v41, 16  ;;  %v7737_v36 = vld [vmem:[%s8710_s19 + $0x30] sm:$0xff]   ;;  %v6349_v41 = vld [vmem:[%s8710_s19 + $0x38] sm:$0xf] }
 0x1e3   : > { %v4528_v15 = vrot.slane %v4526_v8, 3  ;;  %v4531_v16 = vrot.slane %v4529_v9, 4  ;;  %v6530_v9 = vcombine.low %v6520_v56, %v6529_v0  ;;  %v6352_v50 = vcombine.low %v6349_v41, %v6350_v42  ;;  %v6357_v0 = vld [vmem:[%s8710_s19 + $0x50] sm:$0xf] }
 0x1e4   : > { %v4766_v54 = vshll.u32 %v6526_v49, 16  ;;  %v2034_v40 = vrot.slane %v2032_v45, 1  ;;  %v4770_v17 = vshrl.u32 %v6526_v49, 16  ;;  %v6536_v49 = vld [vmem:[%s8724_s13 + $0x3c] sm:$0x7]  ;;  %v6364_v56 = vcombine.low %v6349_v41, %v6363_v44 }
 0x1e5   : > { %v4532_v18 = vor.u32 %v4531_v16, %v4528_v15  ;;  %v4848_v16 = vshll.u32 %v6530_v9, 16  ;;  %v2349_v47 = vshll.u32 %v7737_v36, 16  ;;  %v9139_v44 = vld [vmem:[%s8724_s13] sm:$0xf8]  }
 0x1e6   : > { %v4768_v59 = vrot.slane %v4766_v54, 1  ;;  %v7741_v54 = vld [vmem:[%s8710_s19 + $0x48] sm:$0xff]   ;;  %v2354_v60 = vshll.u32 %v6364_v56, 16  ;;  %s9548_s20 = smov %s9547_s28 }
 0x1e7   : > { %v4533_v22 = vsel %vm1317_vm5, %v4523_v63, %v4532_v18  ;;  %v4837_v63 = vld [vmem:[#allocation10 + $0x66] sm:$0x3] }
 0x1e8   : > { %v4862_v8 = vand.u32 %v4837_v63, %v8738_v2 }
 0x1eb   : > { %6892 = vmatmul.mubr.msk.bf16.vlgmr.msra.gmra.mrb[0].mxu1 %vm518_vm2, %v1705_v1  ;;  %7084 = vmatmul.mubr.msk.bf16.vlgmr.msra.gmra.mrb[0].mxu0 %vm518_vm2, %v4439_v6  ;;  %v2035_v1 = vsel %vm655_vm3, %v2030_v58, %v2034_v40  ;;  %v4769_v6 = vsel %vm655_vm3, %v4764_v57, %v4768_v59  ;;  %v5102_v58 = vand.u32 %v5077_v46, %v8738_v2  ;;  %v2347_v57 = vshrl.u32 %v7737_v36, 16 }
 0x1ec   : > { %6896 = vmatpush3.bf16.msra.mxu1 %v1807_v30  ;;  %7088 = vmatpush3.bf16.msra.mxu0 %v4541_v34  ;;  %v4599_v30 = vld [vmem:[%s8724_s13 + $0xc] sm:$0x7] }
 0x1ed   : > { %6897 = vmatprep.mubr.msk.bf16.mxu1 %vm518_vm2, %v1790_v10  ;;  %7089 = vmatprep.mubr.msk.bf16.mxu0 %vm518_vm2, %v4524_v11  ;;  %v6515_v34 = vcombine.low %v4598_v29, %v4599_v30  ;;  %v4843_v10 = vshll.u32 %v9054_v38, 16  ;;  %v2111_v11 = vrot.slane %v2109_v5, 1  ;;  %v2118_v30 = vshrl.u32 %v6344_v4, 16 }
 0x1ee   : > { %6901 = vmatprep.subr.bf16.mxu1 %v1885_v7  ;;  %7093 = vmatprep.subr.bf16.mxu0 %v4619_v12 }
 0x1ef   : > { %v4845_v15 = vrot.slane %v4843_v10, 1 }
 0x1f1   : > { %v4846_v21 = vor.u32 %v4845_v15, %v4841_v14  ;;  %v6553_v14 = vld [vmem:[%s8724_s13 + $0x54] sm:$0xf] }
 0x1f7   : > { %6898 = vmatmul.mubr.msk.bf16.vlgmr.msra.gmra.mrb[0].mxu1 %vm518_vm2, %v1799_v20  ;;  %7090 = vmatmul.mubr.msk.bf16.vlgmr.msra.gmra.mrb[0].mxu0 %vm518_vm2, %v4533_v22  ;;  %v2038_v20 = vor.u32 %v2036_v13, %v2034_v40  ;;  %v4850_v22 = vrot.slane %v4848_v16, 1  ;;  %v5159_v13 = vld [vmem:[#allocation10 + $0x6e] sm:$0x3] }
 0x1f8   : > { %6902 = vmatpush3.bf16.msra.mxu1 %v1885_v7  ;;  %7094 = vmatpush3.bf16.msra.mxu0 %v4619_v12  ;;  %v2107_v7 = vshrl.u32 %v7729_v37, 16  ;;  %v2114_v12 = vshll.u32 %v6344_v4, 16  ;;  %v6544_v4 = vld [vmem:[%s8724_s13 + $0x54] sm:$0x7] }
 0x1f9   : > { %6903 = vmatprep.mubr.msk.bf16.mxu1 %vm518_vm2, %v7725_v23  ;;  %7095 = vmatprep.mubr.msk.bf16.mxu0 %vm518_vm2, %v7726_v24  ;;  %v2189_v23 = vld [vmem:[#allocation10 + $0x28] sm:$0x3]  ;;  %v4772_v24 = vor.u32 %v4770_v17, %v4768_v59  ;;  %v4851_v28 = vsel %vm655_vm3, %v4846_v21, %v4850_v22  ;;  %v2351_v59 = vrot.slane %v2349_v47, 1  ;;  %v2598_v47 = vld [vmem:[#allocation10 + $0x32] sm:$0x3] }
 0x1fa   : > { %6907 = vmatprep.subr.bf16.mxu1 %v1964_v25  ;;  %7099 = vmatprep.subr.bf16.mxu0 %v4698_v26  ;;  %v2112_v18 = vor.u32 %v2111_v11, %v2107_v7  ;;  %v2116_v19 = vrot.slane %v2114_v12, 1  ;;  %v2207_v27 = vand.u32 %v2189_v23, %v8738_v2  ;;  %v2425_v7 = vld [vmem:[#allocation10 + $0x2e] sm:$0x3]  ;;  %v6367_v11 = vld [vmem:[%s8710_s19 + $0x54] sm:$0xf]  ;;  %v2429_v23 = vshrl.u32 %v7741_v54, 16 }
 0x1fb   : > { %v2352_v5 = vor.u32 %v2351_v59, %v2347_v57  ;;  %v2450_v16 = vand.u32 %v2425_v7, %v8738_v2  ;;  %v6368_v17 = vcombine.low %v6357_v0, %v6367_v11  ;;  %v2624_v57 = vand.u32 %v2598_v47, %v8738_v2 }
 0x1fc   : > { %v2120_v32 = vor.u32 %v2118_v30, %v2116_v19 }
 0x1fd   : > { %v2440_v52 = vshrl.u32 %v6368_v17, 16 }
 0x203   : > { %6904 = vmatmul.mubr.msk.bf16.vlgmr.msra.gmra.mrb[0].mxu1 %vm518_vm2, %v6329_v31  ;;  %7096 = vmatmul.mubr.msk.bf16.vlgmr.msra.gmra.mrb[0].mxu0 %vm518_vm2, %v6515_v34  ;;  %v4852_v31 = vshrl.u32 %v6530_v9, 16 }
 0x204   : > { %6908 = vmatpush3.bf16.msra.mxu1 %v1964_v25  ;;  %7100 = vmatpush3.bf16.msra.mxu0 %v4698_v26  ;;  %v4923_v25 = vld [vmem:[#allocation10 + $0x68] sm:$0x3]  ;;  %v2117_v26 = vsel %vm655_vm3, %v2112_v18, %v2116_v19  ;;  %v2431_v18 = vshll.u32 %v7741_v54, 16 }
 0x205   : > { %6909 = vmatprep.mubr.msk.bf16.mxu1 %vm518_vm2, %v7729_v37  ;;  %7101 = vmatprep.mubr.msk.bf16.mxu0 %vm518_vm2, %v9054_v38  ;;  %v4941_v29 = vand.u32 %v4923_v25, %v8738_v2  ;;  %v4854_v34 = vor.u32 %v4852_v31, %v4850_v22  ;;  %v7738_v37 = vld [vmem:[%s8724_s13 + $0x30] sm:$0xff]   ;;  %v2286_v38 = vand.u32 %v2268_v33, %v8738_v2  ;;  %v5165_v22 = vshll.u32 %v9103_v55, 16 }
 0x206   : > { %6913 = vmatprep.subr.bf16.mxu1 %v2046_v39  ;;  %7105 = vmatprep.subr.bf16.mxu0 %v4780_v43  ;;  %v5081_v61 = vshrl.u32 %v7738_v37, 16  ;;  %v2436_v25 = vshll.u32 %v6368_v17, 16 }
 0x20f   : > { %6910 = vmatmul.mubr.msk.bf16.vlgmr.msra.gmra.mrb[0].mxu1 %vm518_vm2, %v6337_v51  ;;  %7102 = vmatmul.mubr.msk.bf16.vlgmr.msra.gmra.mrb[0].mxu0 %vm518_vm2, %v6523_v62  ;;  %v5083_v51 = vshll.u32 %v7738_v37, 16 }
 0x210   : > { %6914 = vmatpush3.bf16.msra.mxu1 %v2046_v39  ;;  %7106 = vmatpush3.bf16.msra.mxu0 %v4780_v43  ;;  %v5020_v39 = vand.u32 %v5002_v35, %v8738_v2  ;;  %v6535_v43 = vld [vmem:[%s8724_s13 + $0x38] sm:$0xf] }
 0x211   : > { %6915 = vmatprep.mubr.msk.bf16.mxu1 %vm518_vm2, %v2035_v1  ;;  %7107 = vmatprep.mubr.msk.bf16.mxu0 %vm518_vm2, %v4769_v6  ;;  %v6538_v45 = vcombine.low %v6535_v43, %v6536_v49  ;;  %v6550_v40 = vcombine.low %v6535_v43, %v6549_v53  ;;  %v5085_v62 = vrot.slane %v5083_v51, 1  ;;  %v6358_v1 = vld [vmem:[%s8710_s19 + $0x54] sm:$0x7]  ;;  %v2356_v6 = vrot.slane %v2354_v60, 1  ;;  %v7749_v49 = vld [vmem:[%s8710_s19] sm:$0xf8]  }
 0x212   : > { %6919 = vmatprep.subr.bf16.mxu1 %v2128_v3  ;;  %7111 = vmatprep.subr.bf16.mxu0 %v4862_v8  ;;  %v2525_v53 = vrot.slane %v7749_v49, 3  ;;  %v7753_v60 = vld [vmem:[%s8710_s19 + $0x10] ss:$0 sps:$4 sm:$0x33]  }
 0x213   : > { %v5088_v63 = vshll.u32 %v6550_v40, 16  ;;  %v5086_v9 = vor.u32 %v5085_v62, %v5081_v61  ;;  %v2357_v15 = vsel %vm655_vm3, %v2352_v5, %v2356_v6  ;;  %v5092_v30 = vshrl.u32 %v6550_v40, 16  ;;  %v5332_v40 = vld [vmem:[#allocation10 + $0x72] sm:$0x3]  ;;  %v9166_v5 = vld [vmem:[%s8724_s13 + $0x20] sm:$0xff]  }
 0x214   : > { %v7754_v61 = vld [vmem:[%s8724_s13 + $0x10] ss:$0 sps:$4 sm:$0x33]   ;;  %v5358_v62 = vand.u32 %v5332_v40, %v8738_v2  ;;  %v5347_v11 = vrot.slane %v9166_v5, 3 }
 0x215   : > { %v5090_v10 = vrot.slane %v5088_v63, 1  ;;  %v9157_v63 = vld [vmem:[%s8710_s19 + $0x18] sm:$0xf8]  }
 0x216   : > { %v2780_v40 = vshrl.u32 %v9157_v63, 16 }
 0x217   : > { %v5091_v19 = vsel %vm655_vm3, %v5086_v9, %v5090_v10 }
 0x21b   : > { %6916 = vmatmul.mubr.msk.bf16.vlgmr.msra.gmra.mrb[0].mxu1 %vm518_vm2, %v2038_v20  ;;  %7108 = vmatmul.mubr.msk.bf16.vlgmr.msra.gmra.mrb[0].mxu0 %vm518_vm2, %v4772_v24  ;;  %v5184_v20 = vand.u32 %v5159_v13, %v8738_v2  ;;  %v2433_v24 = vrot.slane %v2431_v18, 1  ;;  %v5415_v13 = vld [vmem:[#allocation10 + $0x74] sm:$0x3]  ;;  %v5420_v18 = vshrl.u32 %v9139_v44, 16 }
 0x21c   : > { %6920 = vmatpush3.bf16.msra.mxu1 %v2128_v3  ;;  %7112 = vmatpush3.bf16.msra.mxu0 %v4862_v8  ;;  %v6543_v3 = vld [vmem:[%s8724_s13 + $0x50] sm:$0xf]  ;;  %v6360_v8 = vcombine.low %v6357_v0, %v6358_v1  ;;  %v9160_v0 = vld [vmem:[%s8710_s19 + $0x20] sm:$0xff]   ;;  %v2528_v1 = vrot.slane %v7753_v60, 3 }
 0x21d   : > { %6921 = vmatprep.mubr.msk.bf16.mxu1 %vm518_vm2, %v2117_v26  ;;  %7113 = vmatprep.mubr.msk.bf16.mxu0 %vm518_vm2, %v4851_v28  ;;  %v6546_v12 = vcombine.low %v6543_v3, %v6544_v4  ;;  %v6554_v21 = vcombine.low %v6543_v3, %v6553_v14  ;;  %v2358_v26 = vshrl.u32 %v6364_v56, 16  ;;  %v5167_v28 = vrot.slane %v5165_v22, 1  ;;  %v9163_v4 = vld [vmem:[%s8724_s13 + $0x18] sm:$0xf8]  }
 0x21e   : > { %6925 = vmatprep.subr.bf16.mxu1 %v2207_v27  ;;  %7117 = vmatprep.subr.bf16.mxu0 %v4941_v29  ;;  %v2434_v31 = vor.u32 %v2433_v24, %v2429_v23  ;;  %v5262_v3 = vrot.slane %v7754_v61, 3  ;;  %v5346_v7 = vrot.slane %v9163_v4, 3  ;;  %v2686_v14 = vshrl.u32 %v7749_v49, 16 }
 0x21f   : > { %v2360_v33 = vor.u32 %v2358_v26, %v2356_v6  ;;  %v5174_v46 = vshrl.u32 %v6554_v21, 16  ;;  %v2612_v6 = vrot.slane %v9157_v63, 3  ;;  %v7760_v26 = vld [vmem:[%s8724_s13 + $0x28] ss:$0 sps:$4 sm:$0x33]   ;;  %v5514_v60 = vshrl.u32 %v9163_v4, 16 }
 0x220   : > { %v5348_v24 = vsel %vm1156_vm4, %v5346_v7, %v5347_v11  ;;  %v5517_v61 = vshll.u32 %v9163_v4, 16  ;;  %v2782_v4 = vrot.slane %v2780_v40, 3 }
 0x222   : > { %v5519_v7 = vrot.slane %v5517_v61, 4  ;;  %v9249_v61 = vld [vmem:[%s8724_s13 + $0x48] sm:$0xf8]  }
 0x227   : > { %6922 = vmatmul.mubr.msk.bf16.vlgmr.msra.gmra.mrb[0].mxu1 %vm518_vm2, %v2120_v32  ;;  %7114 = vmatmul.mubr.msk.bf16.vlgmr.msra.gmra.mrb[0].mxu0 %vm518_vm2, %v4854_v34  ;;  %v2438_v32 = vrot.slane %v2436_v25, 1  ;;  %v7759_v25 = vld [vmem:[%s8710_s19 + $0x28] ss:$0 sps:$4 sm:$0x33]  }
 0x228   : > { %6926 = vmatpush3.bf16.msra.mxu1 %v2207_v27  ;;  %7118 = vmatpush3.bf16.msra.mxu0 %v4941_v29  ;;  %v5163_v27 = vshrl.u32 %v9103_v55, 16  ;;  %v5170_v29 = vshll.u32 %v6554_v21, 16 }
 0x229   : > { %6927 = vmatprep.mubr.msk.bf16.mxu1 %vm518_vm2, %v7737_v36  ;;  %7119 = vmatprep.mubr.msk.bf16.mxu0 %vm518_vm2, %v7738_v37  ;;  %v2511_v36 = vld [vmem:[#allocation10 + $0x30] sm:$0x3]  ;;  %v5094_v37 = vor.u32 %v5092_v30, %v5090_v10 }
 0x22a   : > { %6931 = vmatprep.subr.bf16.mxu1 %v2286_v38  ;;  %7123 = vmatprep.subr.bf16.mxu0 %v5020_v39  ;;  %v5168_v34 = vor.u32 %v5167_v28, %v5163_v27  ;;  %v5172_v35 = vrot.slane %v5170_v29, 1  ;;  %v2537_v41 = vand.u32 %v2511_v36, %v8738_v2  ;;  %v5452_v27 = vand.u32 %v5415_v13, %v8738_v2 }
 0x22b   : > { %v2688_v28 = vrot.slane %v2686_v14, 3  ;;  %v2615_v36 = vrot.slane %v7759_v25, 3  ;;  %v7763_v14 = vld [vmem:[%s8710_s19 + $0x28] ss:$0 sps:$4 sm:$0x77]  }
 0x22c   : > { %v5173_v42 = vsel %vm655_vm3, %v5168_v34, %v5172_v35  ;;  %v5607_v25 = vld [vmem:[#allocation10 + $0x78] sm:$0x3] }
 0x233   : > { %6928 = vmatmul.mubr.msk.bf16.vlgmr.msra.gmra.mrb[0].mxu1 %vm518_vm2, %v6352_v50  ;;  %7120 = vmatmul.mubr.msk.bf16.vlgmr.msra.gmra.mrb[0].mxu0 %vm518_vm2, %v6538_v45  ;;  %v7750_v50 = vld [vmem:[%s8710_s19 + $0x8] sm:$0xff]  }
 0x234   : > { %6932 = vmatpush3.bf16.msra.mxu1 %v2286_v38  ;;  %7124 = vmatpush3.bf16.msra.mxu0 %v5020_v39  ;;  %v5245_v38 = vld [vmem:[#allocation10 + $0x70] sm:$0x3]  ;;  %v2439_v39 = vsel %vm655_vm3, %v2434_v31, %v2438_v32  ;;  %v9142_v45 = vld [vmem:[%s8724_s13 + $0x8] sm:$0xff]   ;;  %v2697_v17 = vshll.u32 %v7750_v50, 16 }
 0x235   : > { %6933 = vmatprep.mubr.msk.bf16.mxu1 %vm518_vm2, %v7741_v54  ;;  %7125 = vmatprep.mubr.msk.bf16.mxu0 %vm518_vm2, %v9103_v55  ;;  %v5271_v43 = vand.u32 %v5245_v38, %v8738_v2  ;;  %v2526_v54 = vrot.slane %v7750_v50, 3  ;;  %v2442_v55 = vor.u32 %v2440_v52, %v2438_v32  ;;  %v5260_v56 = vrot.slane %v9142_v45, 3  ;;  %v5509_v52 = vld [vmem:[#allocation10 + $0x76] sm:$0x3] }
 0x236   : > { %6937 = vmatprep.subr.bf16.mxu1 %v2368_v48  ;;  %7129 = vmatprep.subr.bf16.mxu0 %v5102_v58  ;;  %v5431_v21 = vshll.u32 %v9142_v45, 16  ;;  %v2699_v31 = vrot.slane %v2697_v17, 4  ;;  %v5422_v32 = vrot.slane %v5420_v18, 3 }
 0x237   : > { %v2527_v51 = vsel %vm1156_vm4, %v2525_v53, %v2526_v54  ;;  %v2529_v9 = vsel %vm1156_vm4, %v2526_v54, %v2528_v1  ;;  %v5263_v10 = vsel %vm1156_vm4, %v5260_v56, %v5262_v3  ;;  %v5525_v1 = vshll.u32 %v9166_v5, 16 }
 0x23f   : > { %6934 = vmatmul.mubr.msk.bf16.vlgmr.msra.gmra.mrb[0].mxu1 %vm518_vm2, %v6360_v8  ;;  %7126 = vmatmul.mubr.msk.bf16.vlgmr.msra.gmra.mrb[0].mxu0 %vm518_vm2, %v6546_v12  ;;  %v2613_v8 = vrot.slane %v9160_v0, 3  ;;  %v2681_v12 = vld [vmem:[#allocation10 + $0x34] sm:$0x3] }
 0x240   : > { %6938 = vmatpush3.bf16.msra.mxu1 %v2368_v48  ;;  %7130 = vmatpush3.bf16.msra.mxu0 %v5102_v58  ;;  %v5259_v48 = vrot.slane %v9139_v44, 3  ;;  %v5176_v58 = vor.u32 %v5174_v46, %v5172_v35  ;;  %v2718_v23 = vand.u32 %v2681_v12, %v8738_v2  ;;  %v5433_v35 = vrot.slane %v5431_v21, 4  ;;  %v2873_v21 = vld [vmem:[#allocation10 + $0x38] sm:$0x3] }
 0x241   : > { %6939 = vmatprep.mubr.msk.bf16.mxu1 %vm518_vm2, %v2357_v15  ;;  %7131 = vmatprep.mubr.msk.bf16.mxu0 %vm518_vm2, %v5091_v19  ;;  %v2689_v15 = vshll.u32 %v7749_v49, 16  ;;  %v5423_v19 = vshll.u32 %v9139_v44, 16  ;;  %v2614_v22 = vsel %vm1156_vm4, %v2612_v6, %v2613_v8  ;;  %v2616_v44 = vsel %vm1156_vm4, %v2613_v8, %v2615_v36 }
 0x242   : > { %6943 = vmatprep.subr.bf16.mxu1 %v2450_v16  ;;  %7135 = vmatprep.subr.bf16.mxu0 %v5184_v20  ;;  %v5261_v59 = vsel %vm1156_vm4, %v5259_v48, %v5260_v56  ;;  %v5527_v12 = vrot.slane %v5525_v1, 4 }
 0x243   : > { %v2691_v29 = vrot.slane %v2689_v15, 4 }
 0x245   : > { %v2692_v38 = vor.u32 %v2691_v29, %v2688_v28 }
 0x24b   : > { %6940 = vmatmul.mubr.msk.bf16.vlgmr.msra.gmra.mrb[0].mxu1 %vm518_vm2, %v2360_v33  ;;  %7132 = vmatmul.mubr.msk.bf16.vlgmr.msra.gmra.mrb[0].mxu0 %vm518_vm2, %v5094_v37  ;;  %v5425_v33 = vrot.slane %v5423_v19, 4  ;;  %v5349_v37 = vrot.slane %v7760_v26, 3 }
 0x24c   : > { %6944 = vmatpush3.bf16.msra.mxu1 %v2450_v16  ;;  %7136 = vmatpush3.bf16.msra.mxu0 %v5184_v20  ;;  %v2694_v16 = vshrl.u32 %v7750_v50, 16  ;;  %v5428_v20 = vshrl.u32 %v9142_v45, 16  ;;  %v2775_v50 = vld [vmem:[#allocation10 + $0x36] sm:$0x3] }
 0x24d   : > { %6945 = vmatprep.mubr.msk.bf16.mxu1 %vm518_vm2, %v2439_v39  ;;  %7137 = vmatprep.mubr.msk.bf16.mxu0 %vm518_vm2, %v5173_v42  ;;  %v7762_v42 = vld [vmem:[%s8724_s13 + $0x10] ss:$0 sps:$4 sm:$0x77]   ;;  %v5350_v45 = vsel %vm1156_vm4, %v5347_v11, %v5349_v37  ;;  %v2812_v56 = vand.u32 %v2775_v50, %v8738_v2  ;;  %v7765_v37 = vld [vmem:[%s8710_s19 + $0x30] sm:$0xf8]  }
 0x24e   : > { %6949 = vmatprep.subr.bf16.mxu1 %v2537_v41  ;;  %7141 = vmatprep.subr.bf16.mxu0 %v5271_v43  ;;  %v2696_v30 = vrot.slane %v2694_v16, 3  ;;  %v5430_v34 = vrot.slane %v5428_v20, 3  ;;  %v5440_v47 = vshll.u32 %v7762_v42, 16  ;;  %v7764_v16 = vld [vmem:[%s8724_s13 + $0x28] ss:$0 sps:$4 sm:$0x77]  }
 0x24f   : > { %v5534_v28 = vshll.u32 %v7764_v16, 16 }
 0x250   : > { %v2700_v39 = vor.u32 %v2699_v31, %v2696_v30  ;;  %v5434_v49 = vor.u32 %v5433_v35, %v5430_v34  ;;  %v2899_v30 = vand.u32 %v2873_v21, %v8738_v2 }
 0x251   : > { %v5536_v36 = vrot.slane %v5534_v28, 4 }
 0x252   : > { %v2701_v46 = vsel %vm1317_vm5, %v2692_v38, %v2700_v39  ;;  %v7766_v38 = vld [vmem:[%s8710_s19 + $0x38] sm:$0xff]  }
 0x253   : > { %v2888_v50 = vrot.slane %v7766_v38, 3 }
 0x257   : > { %6946 = vmatmul.mubr.msk.bf16.vlgmr.msra.gmra.mrb[0].mxu1 %vm518_vm2, %v2442_v55  ;;  %7138 = vmatmul.mubr.msk.bf16.vlgmr.msra.gmra.mrb[0].mxu0 %vm518_vm2, %v5176_v58  ;;  %v5437_v55 = vshrl.u32 %v7762_v42, 16  ;;  %v5546_v58 = vand.u32 %v5509_v52, %v8738_v2 }
 0x258   : > { %6950 = vmatpush3.bf16.msra.mxu1 %v2537_v41  ;;  %7142 = vmatpush3.bf16.msra.mxu0 %v5271_v43  ;;  %v7761_v41 = vld [vmem:[%s8710_s19 + $0x10] ss:$0 sps:$4 sm:$0x77]   ;;  %v5426_v43 = vor.u32 %v5425_v33, %v5422_v32  ;;  %v5633_v32 = vand.u32 %v5607_v25, %v8738_v2 }
 0x259   : > { %6951 = vmatprep.mubr.msk.bf16.mxu1 %vm518_vm2, %v2527_v51  ;;  %7143 = vmatprep.mubr.msk.bf16.mxu0 %vm518_vm2, %v5261_v59  ;;  %v2703_v53 = vshrl.u32 %v7761_v41, 16  ;;  %v2706_v54 = vshll.u32 %v7761_v41, 16  ;;  %v2783_v51 = vshll.u32 %v9157_v63, 16  ;;  %v2791_v59 = vshll.u32 %v9160_v0, 16  ;;  %v9226_v41 = vld [vmem:[%s8724_s13 + $0x38] sm:$0xff]  }
 0x25a   : > { %6955 = vmatprep.subr.bf16.mxu1 %v2624_v57  ;;  %7147 = vmatprep.subr.bf16.mxu0 %v5358_v62  ;;  %v5435_v48 = vsel %vm1317_vm5, %v5426_v43, %v5434_v49  ;;  %v5439_v63 = vrot.slane %v5437_v55, 3 }
 0x25b   : > { %v2705_v3 = vrot.slane %v2703_v53, 3  ;;  %v2708_v6 = vrot.slane %v2706_v54, 4  ;;  %v2785_v8 = vrot.slane %v2783_v51, 4  ;;  %v5694_v53 = vld [vmem:[#allocation10 + $0x7a] sm:$0x3] }
 0x25c   : > { %v5720_v40 = vand.u32 %v5694_v53, %v8738_v2  ;;  %v9243_v51 = vld [vmem:[%s8710_s19 + $0x48] sm:$0xf8]  }
 0x25d   : > { %v2709_v13 = vor.u32 %v2708_v6, %v2705_v3  ;;  %v2786_v17 = vor.u32 %v2785_v8, %v2782_v4  ;;  %v2974_v1 = vrot.slane %v9243_v51, 3  ;;  %v3043_v8 = vld [vmem:[#allocation10 + $0x3c] sm:$0x3] }
 0x263   : > { %6952 = vmatmul.mubr.msk.bf16.vlgmr.msra.gmra.mrb[0].mxu1 %vm518_vm2, %v2529_v9  ;;  %7144 = vmatmul.mubr.msk.bf16.vlgmr.msra.gmra.mrb[0].mxu0 %vm518_vm2, %v5263_v10  ;;  %v2793_v10 = vrot.slane %v2791_v59, 4 }
 0x264   : > { %6956 = vmatpush3.bf16.msra.mxu1 %v2624_v57  ;;  %7148 = vmatpush3.bf16.msra.mxu0 %v5358_v62  ;;  %v2788_v57 = vshrl.u32 %v9160_v0, 16  ;;  %v5522_v62 = vshrl.u32 %v9166_v5, 16  ;;  %v5442_v0 = vrot.slane %v5440_v47, 4  ;;  %v5516_v5 = vrot.slane %v5514_v60, 3 }
 0x265   : > { %6957 = vmatprep.mubr.msk.bf16.mxu1 %vm518_vm2, %v2614_v22  ;;  %7149 = vmatprep.mubr.msk.bf16.mxu0 %vm518_vm2, %v5348_v24  ;;  %v2710_v22 = vsel %vm1317_vm5, %v2700_v39, %v2709_v13  ;;  %v2800_v24 = vshll.u32 %v7763_v14, 16  ;;  %v9223_v39 = vld [vmem:[%s8724_s13 + $0x30] sm:$0xf8]   ;;  %v7769_v47 = vld [vmem:[%s8710_s19 + $0x40] ss:$0 sps:$4 sm:$0x33]  }
 0x266   : > { %6961 = vmatprep.subr.bf16.mxu1 %v2718_v23  ;;  %7153 = vmatprep.subr.bf16.mxu0 %v5452_v27  ;;  %v2790_v9 = vrot.slane %v2788_v57, 3  ;;  %v5524_v11 = vrot.slane %v5522_v62, 3  ;;  %v5443_v15 = vor.u32 %v5442_v0, %v5439_v63  ;;  %v5520_v19 = vor.u32 %v5519_v7, %v5516_v5  ;;  %v9246_v57 = vld [vmem:[%s8710_s19 + $0x50] sm:$0xff]  }
 0x267   : > { %v2802_v34 = vrot.slane %v2800_v24, 4  ;;  %v5621_v52 = vrot.slane %v9223_v39, 3  ;;  %v2890_v59 = vrot.slane %v7769_v47, 3  ;;  %v9252_v62 = vld [vmem:[%s8724_s13 + $0x50] sm:$0xff]   ;;  %v2975_v3 = vrot.slane %v9246_v57, 3 }
 0x268   : > { %v2794_v18 = vor.u32 %v2793_v10, %v2790_v9  ;;  %v5528_v20 = vor.u32 %v5527_v12, %v5524_v11  ;;  %v5444_v26 = vsel %vm1317_vm5, %v5434_v49, %v5443_v15  ;;  %v2887_v49 = vrot.slane %v7765_v37, 3  ;;  %v5777_v9 = vld [vmem:[#allocation10 + $0x7c] sm:$0x3] }
 0x269   : > { %v2891_v6 = vsel %vm1156_vm4, %v2888_v50, %v2890_v59  ;;  %v5708_v0 = vrot.slane %v9249_v61, 3  ;;  %v5709_v4 = vrot.slane %v9252_v62, 3  ;;  %v3048_v10 = vshrl.u32 %v7765_v37, 16 }
 0x26a   : > { %v2795_v29 = vsel %vm1317_vm5, %v2786_v17, %v2794_v18  ;;  %v5529_v31 = vsel %vm1317_vm5, %v5520_v19, %v5528_v20  ;;  %v2889_v55 = vsel %vm1156_vm4, %v2887_v49, %v2888_v50  ;;  %v3051_v5 = vshll.u32 %v7765_v37, 16  ;;  %v7775_v19 = vld [vmem:[%s8710_s19 + $0x58] ss:$0 sps:$4 sm:$0x33]  }
 0x26b   : > { %v3056_v7 = vshrl.u32 %v7766_v38, 16  ;;  %v3059_v11 = vshll.u32 %v7766_v38, 16  ;;  %v5782_v12 = vshrl.u32 %v9223_v39, 16  ;;  %v5785_v13 = vshll.u32 %v9223_v39, 16  ;;  %v3137_v38 = vld [vmem:[#allocation10 + $0x3e] sm:$0x3] }
 0x26c   : > { %v5793_v15 = vshll.u32 %v9226_v41, 16  ;;  %v3080_v17 = vand.u32 %v3043_v8, %v8738_v2  ;;  %v5814_v21 = vand.u32 %v5777_v9, %v8738_v2  ;;  %v5871_v39 = vld [vmem:[#allocation10 + $0x7e] sm:$0x3]  ;;  %v5876_v47 = vshrl.u32 %v9249_v61, 16 }
 0x26d   : > { %v3058_v24 = vrot.slane %v3056_v7, 3  ;;  %v3061_v25 = vrot.slane %v3059_v11, 4  ;;  %v5908_v53 = vand.u32 %v5871_v39, %v8738_v2  ;;  %v5887_v59 = vshll.u32 %v9252_v62, 16  ;;  %v7779_v9 = vld [vmem:[%s8710_s19 + $0x58] ss:$0 sps:$4 sm:$0x77]  }
 0x26f   : > { %6958 = vmatmul.mubr.msk.bf16.vlgmr.msra.gmra.mrb[0].mxu1 %vm518_vm2, %v2616_v44  ;;  %7150 = vmatmul.mubr.msk.bf16.vlgmr.msra.gmra.mrb[0].mxu0 %vm518_vm2, %v5350_v45  ;;  %v5622_v44 = vrot.slane %v9226_v41, 3  ;;  %v2960_v45 = vld [vmem:[#allocation10 + $0x3a] sm:$0x3] }
 0x270   : > { %6962 = vmatpush3.bf16.msra.mxu1 %v2718_v23  ;;  %7154 = vmatpush3.bf16.msra.mxu0 %v5452_v27  ;;  %v2797_v23 = vshrl.u32 %v7763_v14, 16  ;;  %v5531_v27 = vshrl.u32 %v7764_v16, 16  ;;  %v5790_v14 = vshrl.u32 %v9226_v41, 16  ;;  %v2976_v16 = vsel %vm1156_vm4, %v2974_v1, %v2975_v3 }
 0x271   : > { %6963 = vmatprep.mubr.msk.bf16.mxu1 %vm518_vm2, %v2701_v46  ;;  %7155 = vmatprep.mubr.msk.bf16.mxu0 %vm518_vm2, %v5435_v48  ;;  %v2986_v48 = vand.u32 %v2960_v45, %v8738_v2  ;;  %v3174_v45 = vand.u32 %v3137_v38, %v8738_v2 }
 0x272   : > { %6967 = vmatprep.subr.bf16.mxu1 %v2812_v56  ;;  %7159 = vmatprep.subr.bf16.mxu0 %v5546_v58  ;;  %v2799_v33 = vrot.slane %v2797_v23, 3  ;;  %v5533_v35 = vrot.slane %v5531_v27, 3  ;;  %v3053_v23 = vrot.slane %v3051_v5, 4  ;;  %v5787_v27 = vrot.slane %v5785_v13, 4 }
 0x273   : > { %v5792_v28 = vrot.slane %v5790_v14, 3  ;;  %v7780_v5 = vld [vmem:[%s8724_s13 + $0x58] ss:$0 sps:$4 sm:$0x77]  }
 0x274   : > { %v2803_v42 = vor.u32 %v2802_v34, %v2799_v33  ;;  %v5537_v43 = vor.u32 %v5536_v36, %v5533_v35  ;;  %v3062_v33 = vor.u32 %v3061_v25, %v3058_v24  ;;  %v7777_v34 = vld [vmem:[%s8710_s19 + $0x40] ss:$0 sps:$4 sm:$0x77]   ;;  %s6610_s19 = sshll.u32 %s6004_s26, 7 }
 0x275   : > { %v7778_v35 = vld [vmem:[%s8724_s13 + $0x40] ss:$0 sps:$4 sm:$0x77]   ;;  %v3065_v49 = vshrl.u32 %v7777_v34, 16  ;;  %v3068_v50 = vshll.u32 %v7777_v34, 16  ;;  %s9318_s29 = scalar_lea.hbm %s9547_s28, %s6610_s19 }
 0x276   : > { %v2804_v46 = vsel %vm1317_vm5, %v2794_v18, %v2803_v42  ;;  %v5538_v54 = vsel %vm1317_vm5, %v5528_v20, %v5537_v43  ;;  %v5710_v18 = vsel %vm1156_vm4, %v5708_v0, %v5709_v4  ;;  %v7776_v20 = vld [vmem:[%s8724_s13 + $0x58] ss:$0 sps:$4 sm:$0x33]  }
 0x277   : > { %v3067_v2 = vrot.slane %v3065_v49, 3 }
 0x27b   : > { %6964 = vmatmul.mubr.msk.bf16.vlgmr.msra.gmra.mrb[0].mxu1 %vm518_vm2, %v2710_v22  ;;  %7156 = vmatmul.mubr.msk.bf16.vlgmr.msra.gmra.mrb[0].mxu0 %vm518_vm2, %v5444_v26  ;;  %v3050_v22 = vrot.slane %v3048_v10, 3  ;;  %v5784_v26 = vrot.slane %v5782_v12, 3 }
 0x27c   : > { %6968 = vmatpush3.bf16.msra.mxu1 %v2812_v56  ;;  %7160 = vmatpush3.bf16.msra.mxu0 %v5546_v58  ;;  %v5623_v56 = vsel %vm1156_vm4, %v5621_v52, %v5622_v44  ;;  %v7770_v58 = vld [vmem:[%s8724_s13 + $0x40] ss:$0 sps:$4 sm:$0x33]   ;;  %v5799_v52 = vshrl.u32 %v7778_v35, 16  ;;  %s8187_s13 = smov [#allocation13]  }
 0x27d   : > { %6969 = vmatprep.mubr.msk.bf16.mxu1 %vm518_vm2, %v2795_v29  ;;  %7161 = vmatprep.mubr.msk.bf16.mxu0 %vm518_vm2, %v5529_v31  ;;  %v5624_v60 = vrot.slane %v7770_v58, 3  ;;  %v5795_v29 = vrot.slane %v5793_v15, 4  ;;  %v5711_v31 = vrot.slane %v7776_v20, 3  ;;  %v5788_v36 = vor.u32 %v5787_v27, %v5784_v26  ;;  %s7964_s6 = sshll.u32 %s8187_s13, 4  ;;  %s7965_s6 = int_to_ptr.vmem [resolvable:$false] %s7964_s6 }
 0x27e   : > { %6973 = vmatprep.subr.bf16.mxu1 %v2899_v30  ;;  %7165 = vmatprep.subr.bf16.mxu0 %v5633_v32  ;;  %v5879_v58 = vshll.u32 %v9249_v61, 16  ;;  %v3159_v15 = vshrl.u32 %v7779_v9, 16  ;;  %s7966_s14 = scalar_lea.vmem %s7965_s6, 1024  ;;  %p7967_p6 = scmp.lt.s32.totalorder %s9313_s24, %s7965_s6 }
 0x27f   : > { %v5625_v63 = vsel %vm1156_vm4, %v5622_v44, %v5624_v60  ;;  %v5796_v37 = vor.u32 %v5795_v29, %v5792_v28  ;;  %v5712_v42 = vsel %vm1156_vm4, %v5709_v4, %v5711_v31  ;;  %v3070_v60 = vrot.slane %v3068_v50, 4  ;;  %p7968_p3 = scmp.lt.s32.totalorder %s7966_s14, %s7960_s27 }
 0x280   : > { %v5889_v4 = vrot.slane %v5887_v59, 4 }
 0x281   : > { %v5797_v44 = vsel %vm1317_vm5, %v5788_v36, %v5796_v37  ;;  %v3071_v8 = vor.u32 %v3070_v60, %v3067_v2  ;;  %p7969_p1 = por %p7968_p3, %p7967_p6 }
 0x283   : > { %v3072_v14 = vsel %vm1317_vm5, %v3062_v33, %v3071_v8  ;;  %p7970_p0 = pnand %p7969_p1, %p7963_p11 }
 0x287   : > { %6970 = vmatmul.mubr.msk.bf16.vlgmr.msra.gmra.mrb[0].mxu1 %vm518_vm2, %v2804_v46  ;;  %7162 = vmatmul.mubr.msk.bf16.vlgmr.msra.gmra.mrb[0].mxu0 %vm518_vm2, %v5538_v54  ;;  %v5802_v46 = vshll.u32 %v7778_v35, 16  ;;  %v3142_v54 = vshrl.u32 %v9243_v51, 16 }
 0x288   : > { %6974 = vmatpush3.bf16.msra.mxu1 %v2899_v30  ;;  %7166 = vmatpush3.bf16.msra.mxu0 %v5633_v32  ;;  %v2977_v30 = vrot.slane %v7775_v19, 3  ;;  %v3054_v32 = vor.u32 %v3053_v23, %v3050_v22  ;;  %v5896_v19 = vshll.u32 %v7780_v5, 16  ;;  %v3161_v22 = vrot.slane %v3159_v15, 3 }
 0x289   : > { %6975 = vmatprep.mubr.msk.bf16.mxu1 %vm518_vm2, %v2889_v55  ;;  %7167 = vmatprep.mubr.msk.bf16.mxu0 %vm518_vm2, %v5623_v56  ;;  %v3145_v55 = vshll.u32 %v9243_v51, 16  ;;  %v3153_v56 = vshll.u32 %v9246_v57, 16  ;;  %v5801_v51 = vrot.slane %v5799_v52, 3  ;;  %v3144_v61 = vrot.slane %v3142_v54, 3 }
 0x28a   : > { %6979 = vmatprep.subr.bf16.mxu1 %v2986_v48  ;;  %7171 = vmatprep.subr.bf16.mxu0 %v5720_v40  ;;  %v2978_v41 = vsel %vm1156_vm4, %v2975_v3, %v2977_v30  ;;  %v3063_v43 = vsel %vm1317_vm5, %v3054_v32, %v3062_v33  ;;  %v5898_v25 = vrot.slane %v5896_v19, 4  ;;  %v6607_v32 = vld [vmem:[#allocation11] ss:$0 sm:$0xff] }
 0x28b   : > { %v3147_v1 = vrot.slane %v3145_v55, 4 }
 0x28d   : > { %v3148_v7 = vor.u32 %v3147_v1, %v3144_v61 }
 0x293   : > { %6976 = vmatmul.mubr.msk.bf16.vlgmr.msra.gmra.mrb[0].mxu1 %vm518_vm2, %v2891_v6  ;;  %7168 = vmatmul.mubr.msk.bf16.vlgmr.msra.gmra.mrb[0].mxu0 %vm518_vm2, %v5625_v63  ;;  %v3155_v6 = vrot.slane %v3153_v56, 4  ;;  %v5881_v63 = vrot.slane %v5879_v58, 4 }
 0x294   : > { %6980 = vmatpush3.bf16.msra.mxu1 %v2986_v48  ;;  %7172 = vmatpush3.bf16.msra.mxu0 %v5720_v40  ;;  %v3150_v48 = vshrl.u32 %v9246_v57, 16  ;;  %v5884_v40 = vshrl.u32 %v9252_v62, 16  ;;  %v5804_v57 = vrot.slane %v5802_v46, 4  ;;  %v5878_v62 = vrot.slane %v5876_v47, 3 }
 0x295   : > { %6981 = vmatprep.mubr.msk.bf16.mxu1 %vm518_vm2, %v2976_v16  ;;  %7173 = vmatprep.mubr.msk.bf16.mxu0 %vm518_vm2, %v5710_v18  ;;  %v3162_v16 = vshll.u32 %v7779_v9, 16  ;;  %v5893_v18 = vshrl.u32 %v7780_v5, 16 }
 0x296   : > { %6985 = vmatprep.subr.bf16.mxu1 %v3080_v17  ;;  %7177 = vmatprep.subr.bf16.mxu0 %v5814_v21  ;;  %v3152_v3 = vrot.slane %v3150_v48, 3  ;;  %v5886_v0 = vrot.slane %v5884_v40, 3  ;;  %v5805_v10 = vor.u32 %v5804_v57, %v5801_v51  ;;  %v5882_v12 = vor.u32 %v5881_v63, %v5878_v62 }
 0x297   : > { %v3164_v23 = vrot.slane %v3162_v16, 4  ;;  %v5895_v24 = vrot.slane %v5893_v18, 3 }
 0x298   : > { %v3156_v11 = vor.u32 %v3155_v6, %v3152_v3  ;;  %v5890_v13 = vor.u32 %v5889_v4, %v5886_v0 }
 0x299   : > { %v3165_v26 = vor.u32 %v3164_v23, %v3161_v22  ;;  %v5899_v27 = vor.u32 %v5898_v25, %v5895_v24 }
 0x29a   : > { %v3157_v20 = vsel %vm1317_vm5, %v3148_v7, %v3156_v11 }
 0x29b   : > { %v3166_v28 = vsel %vm1317_vm5, %v3156_v11, %v3165_v26  ;;  %v5900_v29 = vsel %vm1317_vm5, %v5890_v13, %v5899_v27 }
 0x29f   : > { %6982 = vmatmul.mubr.msk.bf16.vlgmr.msra.gmra.mrb[0].mxu1 %vm518_vm2, %v2978_v41  ;;  %7174 = vmatmul.mubr.msk.bf16.vlgmr.msra.gmra.mrb[0].mxu0 %vm518_vm2, %v5712_v42 }
 0x2a0   : > { %6986 = vmatpush3.bf16.msra.mxu1 %v3080_v17  ;;  %7178 = vmatpush3.bf16.msra.mxu0 %v5814_v21  ;;  %v5806_v17 = vsel %vm1317_vm5, %v5796_v37, %v5805_v10  ;;  %v5891_v21 = vsel %vm1317_vm5, %v5882_v12, %v5890_v13 }
 0x2a1   : > { %6987 = vmatprep.mubr.msk.bf16.mxu1 %vm518_vm2, %v3063_v43  ;;  %7179 = vmatprep.mubr.msk.bf16.mxu0 %vm518_vm2, %v5797_v44 }
 0x2a2   : > { %6991 = vmatprep.subr.bf16.mxu1 %v3174_v45  ;;  %7183 = vmatprep.subr.bf16.mxu0 %v5908_v53 }
 0x2ab   : > { %6988 = vmatmul.mubr.msk.bf16.vlgmr.msra.gmra.mrb[0].mxu1 %vm518_vm2, %v3072_v14  ;;  %7180 = vmatmul.mubr.msk.bf16.vlgmr.msra.gmra.mrb[0].mxu0 %vm518_vm2, %v5806_v17 }
 0x2ac   : > { %6992 = vmatpush3.bf16.msra.mxu1 %v3174_v45  ;;  %7184 = vmatpush3.bf16.msra.mxu0 %v5908_v53 }
 0x2ad   : > { %6993 = vmatprep.mubr.msk.bf16.mxu1 %vm518_vm2, %v3157_v20  ;;  %7185 = vmatprep.mubr.msk.bf16.mxu0 %vm518_vm2, %v5891_v21 }
 0x2b7   : > { %6994 = vmatmul.mubr.msk.bf16.vlgmr.msra.gmra.mrb[0].mxu1 %vm518_vm2, %v3166_v28  ;;  %7186 = vmatmul.mubr.msk.bf16.vlgmr.msra.gmra.mrb[0].mxu0 %vm518_vm2, %v5900_v29 }
 0x38a   : > { %v6995_v30 = vpop.f32.mrb[0].mxu1  ;;  %v7187_v31 = vpop.f32.mrb[0].mxu0 }
 0x38b   : > { %v3210_v33 = vpop.f32.mrb[1].mxu1  ;;  %v7189_v34 = vadd.f32 %v7187_v31, %v6995_v30  ;;  %v5944_v35 = vpop.f32.mrb[1].mxu0 }
 0x38c   : > { %v6996_v36 = vpop.f32.mrb[2].mxu1  ;;  %v7190_v37 = vadd.f32 %v5944_v35, %v3210_v33  ;;  %v7188_v38 = vpop.f32.mrb[2].mxu0 }
 0x38d   : > { %v3213_v39 = vpop.f32.mrb[3].mxu1  ;;  %v5972_v41 = vadd.f32 %v7189_v34, %v6607_v32  ;;  %v7191_v42 = vadd.f32 %v7188_v38, %v6996_v36  ;;  %v5947_v43 = vpop.f32.mrb[3].mxu0 }
 0x38e   : > { %v5970_v49 = vadd.f32 %v7190_v37, %v6607_v32  ;;  %v7192_v50 = vadd.f32 %v5947_v43, %v3213_v39 }
 0x38f   : > { %vm5976_vm6 = vcmp.gt.f32.partialorder %v5972_v41, 0.0  ;;  %v5980_v52 = vmul.f32 0.2, %v5972_v41  ;;  %v5973_v44 = vadd.f32 %v7191_v42, %v6607_v32 }
 0x390   : > { %vm5974_vm7 = vcmp.gt.f32.partialorder %v5970_v49, 0.0  ;;  %v5978_v45 = vmul.f32 0.2, %v5970_v49  ;;  %v5971_v46 = vadd.f32 %v7192_v50, %v6607_v32 }
 0x391   : > { %v5984_v53 = vsel %vm5976_vm6, %v5972_v41, %v5980_v52  ;;  %vm5977_vm8 = vcmp.gt.f32.partialorder %v5973_v44, 0.0  ;;  %v5981_v54 = vmul.f32 0.2, %v5973_v44 }
 0x392   : > { %5988 = vst [vmem:[%s487_s12 + $0x10] sm:$0xff] %v5984_v53  ;;  %v5982_v55 = vsel %vm5974_vm7, %v5970_v49, %v5978_v45  ;;  %vm5975_vm9 = vcmp.gt.f32.partialorder %v5971_v46, 0.0  ;;  %v5979_v48 = vmul.f32 0.2, %v5971_v46 }
 0x393   : > { %5986 = vst [vmem:[%s487_s12] sm:$0xff] %v5982_v55  ;;  %v5985_v56 = vsel %vm5977_vm8, %v5973_v44, %v5981_v54 }
 0x394   : > { %5989 = vst [vmem:[%s487_s12 + $0x18] sm:$0x3f] %v5985_v56  ;;  %v5983_v47 = vsel %vm5975_vm9, %v5971_v46, %v5979_v48 }
 0x395   : > { %5987 = vst [vmem:[%s487_s12 + $0x8] sm:$0xff] %v5983_v47 }
 0x396   : > { %7973 = shalt.err (!%p7970_p0)
}
 0x397   : > { %s7974_s17 = scalar_lea.hbm %s9318_s29, 512  ;;  %s7978_s0 = scalar_lea.hbm %s9548_s20, 5120 }
 0x398   : > { %p7975_p7 = scmp.ne.s32.totalorder %s9318_s29, %s7974_s17  ;;  %p7979_p8 = scmp.lt.u32.totalorder %s9318_s29, %s9548_s20 }
 0x399   : > { %p7980_p10 = scmp.lt.u32.totalorder %s7978_s0, %s7974_s17  ;;  %p7982_p9 = scmp.lt.u32.totalorder %s7974_s17, %s9318_s29 }
 0x39a   : > { %p7976_p2 = pnand %p7975_p7, %p9549_p13 }
 0x39b   : > { %p7981_p12 = por %p7980_p10, %p7979_p8 }
 0x39c   : > { %p7977_p5 = pneg %p7976_p2 }
 0x39d   : > { %p7983_p4 = por %p7982_p9, %p7981_p12 }
 0x39f   : > { %p7984_p11 = pnand %p7983_p4, %p7977_p5 }
 0x3a1   : > { %7987 = shalt.err (!%p7984_p11)
}
 0x3a2   : > { %s8188_s12 = smov 128   ;;  %s8189_s19 = smov 8  }
 0x3a3   : > { %7468 = dma.vmem_to_hbm [thread:$0]  (%p9549_p13), %s9313_s24, 512, %s9318_s29, %s9322_s9, %s8188_s12, %s8188_s12, %s8189_s19  }
 0x3a4 PF: > { %s9550_s3 = sld [smem:[#allocation21_spill]]  ;;  %s9551_s1 = sld [smem:[#allocation35_spill]] }
 0x3a5   : > { %p7499_p6 = scmp.ge.s32.totalorder %s8174_s16, 2 }
 0x3aa   : > { %s6022_s28 = sand.u32 1, %s9550_s3   ;;  %p9552_p3 = scmp.ne.s32.totalorder %s9551_s1, 0 }
 0x3ab   : > { %s6023_s27 = scalar_lea.sflag [#allocation4], %s6022_s28 }
 0x3ac   : > { %p7491_p1 = pnand %p7499_p6, %p9552_p3 }
 0x3ae   : > { %8093 = dma.done.wait (!%p7491_p1), %s6023_s27, 512  }
 0x3af   : > { %8095 = vsyncadd (!%p7491_p1), %s6023_s27, 4294966784  ;;  %s29_s16 = sadd.s32 1, %s8174_s16   ;;  %s9554_s21 = sld [smem:[#allocation22_spill]] }
 0x3b0   : > { %p9351_p0 = scmp.ge.s32.totalorder %s29_s16, 12   ;;  %s9555_s24 = sld [smem:[#allocation24_spill]] }
 0x3b1   : > { %s9556_s15 = sld [smem:[#allocation25_spill]]  ;;  %s9557_s27 = sld [smem:[#allocation27_spill]] }
 0x3b2   : > { %s9558_s28 = sld [smem:[#allocation28_spill]]  ;;  %s9559_s29 = smov %s9587_s22 }
 0x3b3   : > { %s9560_s30 = sld [smem:[#allocation29_spill]]  ;;  %s9561_s9 = sld [smem:[#allocation40_spill]] }
 0x3b4   : > { %s9562_s6 = smov %s8516_s25  ;;  %s9563_s12 = sld [smem:[#allocation32_spill]] }
 0x3b5   : > { %s9564_s14 = sld [smem:[#allocation33_spill]]  ;;  %s9565_s22 = smov %s8106_s23 }
 0x3b6   : > { %s9566_s17 = sld [smem:[#allocation37_spill]]  ;;  %s9567_s23 = smov %s8430_s7 }
 0x3b7   : > { %s9568_s4 = sld [smem:[#allocation38_spill]]  ;;  %s9569_s25 = smov %s9556_s15 }
 0x3b8   : > { %s9571_s26 = smov %s9589_s5  ;;  %s9572_s7 = smov %s8142_s8 }
 0x3b9   : > { %s9573_s8 = smov %s9561_s9  ;;  %s9574_s9 = smov %s8150_s10 }
 0x3ba   : > { %s9575_s10 = smov %s8154_s11  ;;  %s9576_s11 = smov %s9562_s6 }
 0x3bb   : > { %s9577_s13 = smov %s9564_s14  ;;  %28 = sbr.rel (!%p9351_p0) target bundleno = 26 (0x1a), region = 211 }
 0x3bc   : > { %s9578_s14 = smov %s9566_s17 }
 0x3bd   : > { %s9579_s15 = smov %s9568_s4 }
 0x3c2   :  { %6028 = vsyncpa [#allocation3], 1 }
 0x3c3   :  { %6030 = vsyncpa [#allocation3 + $0x1], 1 }
 0x3c4   :  { %6031 = vsyncpa [#allocation6], 1 }
 0x3c5   :  { %6033 = vsyncpa [#allocation6 + $0x1], 1 }
 0x3c6   :  { %6034 = vsyncpa [#allocation9], 1 }
 0x3c7   :  { %6036 = vsyncpa [#allocation9 + $0x1], 1 }
 0x3c8   :  { %6037 = vsyncpa [#allocation12], 1 }
 0x3c9   :  { %6038 = vsyncpa [#allocation4], 1 }
 0x3ca   :  { %6040 = vsyncpa [#allocation4 + $0x1], 1 }

</bundles_post_ra>
